<compile_context>
chip_gen: v7x
topology: tpu7x:2x2x1
jax: 0.10.0
libtpu: 0.0.40
codegen_flags: <defaults>
</compile_context>

<pallas_src>
import functools

import jax
import jax.numpy as jnp
from jax.experimental import pallas as pl
from jax.experimental.pallas import tpu as pltpu

_F32 = jnp.float32
_BF16 = jnp.bfloat16
_LANE = 128                       # packed grouped-conv output tile width
_TM = 256                         # matmul row tile
_THW = 512                        # SE-fuse row tile
_VMEM_LIMIT = 32 * 1024 * 1024    # fits v7x (64 MiB) with headroom; fine on v5e/v6e


def _round_up(x, m):
    return (x + m - 1) // m * m


def _cparams(n_grid_axes):
    # All grid axes used below are independent (no cross-iteration accumulation),
    # so they can be sharded across v7x's two TensorCores.
    return pltpu.CompilerParams(
        dimension_semantics=("parallel",) * n_grid_axes,
        vmem_limit_bytes=_VMEM_LIMIT,
    )


# ---------------------------------------------------------------------------
# Pallas kernels
# ---------------------------------------------------------------------------
def _conv_mm_kernel(a_ref, w_ref, *rest, act, use_scale):
    """One (group-tile, M-tile): sum_t A[:,t,:] @ W[t] -> BN affine -> activation."""
    if use_scale:
        scale_ref, shift_ref, o_ref = rest
    else:
        scale_ref = None
        shift_ref, o_ref = rest
    kk = a_ref.shape[1]
    acc = jnp.dot(a_ref[:, 0, :], w_ref[0, 0], preferred_element_type=jnp.float32)
    for t in range(1, kk):
        acc = acc + jnp.dot(a_ref[:, t, :], w_ref[0, t],
                            preferred_element_type=jnp.float32)
    if use_scale:
        acc = acc * scale_ref[0]
    acc = acc + shift_ref[0]
    if act == "relu":
        acc = jnp.maximum(acc, 0.0)
    elif act == "sigmoid":
        acc = jax.nn.sigmoid(acc)
    o_ref[...] = acc.astype(o_ref.dtype)


@functools.lru_cache(maxsize=None)
def _build_conv_mm(num_gt, num_m, tm, kk, cg, ng, act, use_scale, out_dtype):
    kernel = functools.partial(_conv_mm_kernel, act=act, use_scale=use_scale)
    in_specs = [
        pl.BlockSpec((tm, kk, cg), lambda gt, m: (m, 0, gt)),        # activations
        pl.BlockSpec((1, kk, cg, ng), lambda gt, m: (gt, 0, 0, 0)),  # packed weights
    ]
    if use_scale:
        in_specs.append(pl.BlockSpec((1, 1, ng), lambda gt, m: (gt, 0, 0)))
    in_specs.append(pl.BlockSpec((1, 1, ng), lambda gt, m: (gt, 0, 0)))
    f = pl.pallas_call(
        kernel,
        out_shape=jax.ShapeDtypeStruct((num_m * tm, num_gt * ng), jnp.dtype(out_dtype)),
        grid=(num_gt, num_m),
        in_specs=in_specs,
        out_specs=pl.BlockSpec((tm, ng), lambda gt, m: (m, gt)),
        compiler_params=_cparams(2),
    )
    return jax.jit(f)


def _gap_kernel(x_ref, o_ref):
    # AdaptiveAvgPool2d(1): mean over the flattened spatial axis (f32 accumulation).
    o_ref[...] = jnp.mean(x_ref[...].astype(jnp.float32), axis=1, keepdims=True)


@functools.lru_cache(maxsize=None)
def _build_gap(B, HW, C):
    f = pl.pallas_call(
        _gap_kernel,
        out_shape=jax.ShapeDtypeStruct((B, 1, C), jnp.float32),
        grid=(B,),
        in_specs=[pl.BlockSpec((1, HW, C), lambda b: (b, 0, 0))],
        out_specs=pl.BlockSpec((1, 1, C), lambda b: (b, 0, 0)),
        compiler_params=_cparams(1),
    )
    return jax.jit(f)


def _se_fuse_kernel(x_ref, gate_ref, res_ref, o_ref):
    # out = relu(se_gate * x + residual), f32 math, bf16 store.
    y = x_ref[...].astype(jnp.float32) * gate_ref[...] + res_ref[...].astype(jnp.float32)
    o_ref[...] = jnp.maximum(y, 0.0).astype(o_ref.dtype)


@functools.lru_cache(maxsize=None)
def _build_se_fuse(B, hw_pad, thw, C):
    f = pl.pallas_call(
        _se_fuse_kernel,
        out_shape=jax.ShapeDtypeStruct((B, hw_pad, C), _BF16),
        grid=(B, hw_pad // thw),
        in_specs=[
            pl.BlockSpec((1, thw, C), lambda b, m: (b, m, 0)),
            pl.BlockSpec((1, 1, C), lambda b, m: (b, 0, 0)),
            pl.BlockSpec((1, thw, C), lambda b, m: (b, m, 0)),
        ],
        out_specs=pl.BlockSpec((1, thw, C), lambda b, m: (b, m, 0)),
        compiler_params=_cparams(2),
    )
    return jax.jit(f)


def _max_kernel(x_ref, o_ref):
    o_ref[...] = jnp.max(x_ref[...], axis=0)


@functools.lru_cache(maxsize=None)
def _build_max(kk, m_pad, tm, C):
    f = pl.pallas_call(
        _max_kernel,
        out_shape=jax.ShapeDtypeStruct((m_pad, C), _BF16),
        grid=(m_pad // tm,),
        in_specs=[pl.BlockSpec((kk, tm, C), lambda m: (0, m, 0))],
        out_specs=pl.BlockSpec((tm, C), lambda m: (m, 0)),
        compiler_params=_cparams(1),
    )
    return jax.jit(f)


# ---------------------------------------------------------------------------
# JAX glue: patch extraction, matmul/conv/linear/pool wrappers
# ---------------------------------------------------------------------------
def _im2col(x, kh, kw, stride, pad):
    """x: (B,H,W,C) -> (B,Ho,Wo,kk,C).  1x1 convs are pure views (no expansion)."""
    if pad:
        x = jnp.pad(x, ((0, 0), (pad, pad), (pad, pad), (0, 0)))
    B, Hp, Wp, C = x.shape
    Ho = (Hp - kh) // stride + 1
    Wo = (Wp - kw) // stride + 1
    if kh == 1 and kw == 1:
        patches = x[:, ::stride, ::stride, None, :] if stride > 1 else x[:, :, :, None, :]
        return patches, Ho, Wo
    cols = [x[:, i:i + stride * Ho:stride, j:j + stride * Wo:stride, :]
            for i in range(kh) for j in range(kw)]
    patches = jnp.stack(cols, axis=3)
    return patches, Ho, Wo


def _matmul(a3, wp, shift, scale=None, *, act="none", out_dtype=_BF16):
    """a3: (M, kk, Cin);  wp: (num_gt, kk, Cg, Ng);  scale/shift: (num_gt, 1, Ng)."""
    M, _, _ = a3.shape
    num_gt, kk, cg, ng = wp.shape
    tm = min(_TM, _round_up(M, 16))
    m_pad = _round_up(M, tm)
    if m_pad != M:
        a3 = jnp.pad(a3, ((0, m_pad - M), (0, 0), (0, 0)))
    a3 = a3.astype(_BF16)
    wp = wp.astype(_BF16)
    use_scale = scale is not None
    fn = _build_conv_mm(num_gt, m_pad // tm, tm, kk, cg, ng, act, use_scale,
                        jnp.dtype(out_dtype).name)
    args = (a3, wp) + ((scale,) if use_scale else ()) + (shift,)
    out = fn(*args)
    return out[:M]


def conv2d_bn_act(x, pc, *, stride=1, pad=0, act="none"):
    """x: (B,H,W,Cin) bf16 NHWC; pc: packed conv dict (weights + folded BN)."""
    kh, kw = pc["kh"], pc["kw"]
    B = x.shape[0]
    patches, Ho, Wo = _im2col(x, kh, kw, stride, pad)
    kk = kh * kw
    C = patches.shape[-1]
    M = B * Ho * Wo
    if pc["grouped"]:
        a3 = patches.reshape(M, kk, C)          # taps kept separate for group tiling
    else:
        a3 = patches.reshape(M, 1, kk * C)      # single dense contraction
    out = _matmul(a3, pc["wp"], pc["shift"], pc["scale"], act=act, out_dtype=_BF16)
    cout = pc["wp"].shape[0] * pc["wp"].shape[3]
    return out.reshape(B, Ho, Wo, cout)


def linear_act(x2d, w, b, act="none", out_dtype=jnp.float32):
    """x2d: (M, K); w: (K, N) bf16; b: (N,) f32."""
    K, N = w.shape
    a3 = x2d.reshape(x2d.shape[0], 1, K)
    wp = w.reshape(1, 1, K, N)
    return _matmul(a3, wp, b.reshape(1, 1, N), None, act=act, out_dtype=out_dtype)


def global_avg_pool(x):
    B, H, W, C = x.shape
    return _build_gap(B, H * W, C)(x.reshape(B, H * W, C)).reshape(B, C)


def maxpool2d_3x3_s2_ceil(x):
    # nn.MaxPool2d(3, stride=2, ceil_mode=True): pad right/bottom with -inf.
    B, H, W, C = x.shape
    Ho = -(-(H - 3) // 2) + 1
    Wo = -(-(W - 3) // 2) + 1
    ph = (Ho - 1) * 2 + 3 - H
    pw = (Wo - 1) * 2 + 3 - W
    xp = jnp.pad(x, ((0, 0), (0, ph), (0, pw), (0, 0)), constant_values=-jnp.inf)
    cols = [xp[:, i:i + 2 * Ho:2, j:j + 2 * Wo:2, :] for i in range(3) for j in range(3)]
    M = B * Ho * Wo
    stacked = jnp.stack(cols, axis=0).reshape(9, M, C)
    tm = min(_TM, _round_up(M, 16))
    m_pad = _round_up(M, tm)
    if m_pad != M:
        stacked = jnp.pad(stacked, ((0, 0), (0, m_pad - M), (0, 0)))
    out = _build_max(9, m_pad, tm, C)(stacked)
    return out[:M].reshape(B, Ho, Wo, C)


def se_gate(x, fc1, fc2):
    # SEModule: gap -> 1x1 conv (fc1) + ReLU -> 1x1 conv (fc2) + sigmoid.
    B, _, _, C = x.shape
    pooled = global_avg_pool(x)                       # (B, C) f32
    s = linear_act(pooled, fc1[0], fc1[1], act="relu", out_dtype=jnp.float32)
    s = linear_act(s, fc2[0], fc2[1], act="sigmoid", out_dtype=jnp.float32)
    return s.reshape(B, 1, C)


def se_fuse(out, gate, residual):
    B, H, W, C = out.shape
    HW = H * W
    thw = min(_THW, _round_up(HW, 16))
    hw_pad = _round_up(HW, thw)
    o3 = out.reshape(B, HW, C)
    r3 = residual.reshape(B, HW, C)
    if hw_pad != HW:
        o3 = jnp.pad(o3, ((0, 0), (0, hw_pad - HW), (0, 0)))
        r3 = jnp.pad(r3, ((0, 0), (0, hw_pad - HW), (0, 0)))
    fused = _build_se_fuse(B, hw_pad, thw, C)(o3, gate, r3)
    return fused[:, :HW].reshape(B, H, W, C)


def se_resnext_bottleneck(x, p):
    stride = p["stride"]
    out = conv2d_bn_act(x, p["conv1"], act="relu")
    out = conv2d_bn_act(out, p["conv2"], stride=stride, pad=1, act="relu")
    out = conv2d_bn_act(out, p["conv3"], act="none")
    if "down" in p:
        residual = conv2d_bn_act(x, p["down"], stride=stride, act="none")
    else:
        residual = x
    gate = se_gate(out, p["fc1"], p["fc2"])           # (B, 1, C) f32
    return se_fuse(out, gate, residual)
    # TODO(synk): the SE gap / residual could be accumulated in the conv3 epilogue
    # to save one activation read per block; kept as separate Pallas passes here.


# ---------------------------------------------------------------------------
# Deterministic synthetic parameters (shapes follow se_resnext50_32x4d),
# packed into the lane-dense inference layout described at the top.
# ---------------------------------------------------------------------------
class _KeyGen:
    def __init__(self, seed):
        self._key = jax.random.PRNGKey(seed)

    def next(self):
        self._key, sub = jax.random.split(self._key)
        return sub


def _conv_w(kg, kh, kw, cin_g, cout):
    fan_in = kh * kw * cin_g
    return jax.random.normal(kg.next(), (kh, kw, cin_g, cout), _F32) * (2.0 / fan_in) ** 0.5


def _bn(kg, c):
    gamma = 1.0 + 0.05 * jax.random.normal(kg.next(), (c,), _F32)
    beta = 0.05 * jax.random.normal(kg.next(), (c,), _F32)
    mean = 0.05 * jax.random.normal(kg.next(), (c,), _F32)
    var = 1.0 + 0.1 * jax.random.uniform(kg.next(), (c,), _F32)
    scale = gamma / jnp.sqrt(var + 1e-5)              # eval-mode BN folded to affine
    shift = beta - mean * scale
    return scale, shift


def _linear(kg, cin, cout):
    w = jax.random.normal(kg.next(), (cin, cout), _F32) * (1.0 / cin) ** 0.5
    b = 0.01 * jax.random.normal(kg.next(), (cout,), _F32)
    return w.astype(_BF16), b


def _pack_conv(w, bn, groups=1):
    """Pack HWIO (group-major cout) conv weights + folded BN into the kernel layout.

    Non-grouped: wp = (1, 1, kk*Cin, Cout).
    Grouped    : groups are tiled so each output tile is _LANE wide; weights are
                 block-diagonal inside a tile (zero blocks give the 32x->GPx
                 redundancy trade for a lane-dense, unmasked MXU matmul).
    """
    kh, kw, cin_g, cout = w.shape
    kk = kh * kw
    scale, shift = bn
    if groups == 1:
        return {"wp": w.reshape(1, 1, kk * cin_g, cout).astype(_BF16),
                "scale": scale.reshape(1, 1, cout),
                "shift": shift.reshape(1, 1, cout),
                "kh": kh, "kw": kw, "grouped": False}
    cout_g = cout // groups
    gp = max(1, min(groups, _LANE // max(1, cout_g)))   # groups per packed tile
    while groups % gp:
        gp -= 1
    num_gt = groups // gp
    cg, ng = gp * cin_g, gp * cout_g
    w5 = w.reshape(kk, cin_g, groups, cout_g)
    wp = jnp.zeros((num_gt, kk, cg, ng), _F32)
    for gt in range(num_gt):
        for p in range(gp):
            g = gt * gp + p
            wp = wp.at[gt, :, p * cin_g:(p + 1) * cin_g,
                       p * cout_g:(p + 1) * cout_g].set(w5[:, :, g, :])
    return {"wp": wp.astype(_BF16),
            "scale": scale.reshape(num_gt, 1, ng),
            "shift": shift.reshape(num_gt, 1, ng),
            "kh": kh, "kw": kw, "grouped": True}


def _make_block(kg, inplanes, planes, stride, downsample, groups=32, reduction=16):
    width = (planes * 4 // 64) * groups          # base_width=4
    out_c = planes * 4
    p = {
        "stride": stride,
        "conv1": _pack_conv(_conv_w(kg, 1, 1, inplanes, width), _bn(kg, width)),
        "conv2": _pack_conv(_conv_w(kg, 3, 3, width // groups, width),
                            _bn(kg, width), groups=groups),
        "conv3": _pack_conv(_conv_w(kg, 1, 1, width, out_c), _bn(kg, out_c)),
        "fc1": _linear(kg, out_c, out_c // reduction),
        "fc2": _linear(kg, out_c // reduction, out_c),
    }
    if downsample:
        p["down"] = _pack_conv(_conv_w(kg, 1, 1, inplanes, out_c), _bn(kg, out_c))
    return p


def make_params(seed=0, num_classes=340):
    kg = _KeyGen(seed)
    params = {
        "bn0": _bn(kg, 3),                                                  # BatchNorm2d(3)
        "layer0_conv": _pack_conv(_conv_w(kg, 7, 7, 3, 64), _bn(kg, 64)),   # 7x7/s2 + BN
    }
    w, b = _linear(kg, 2048, num_classes)
    n_pad = _round_up(num_classes, 128)                 # pad head to unmasked lane width
    params["last_linear"] = (jnp.pad(w, ((0, 0), (0, n_pad - num_classes))),
                             jnp.pad(b, (0, n_pad - num_classes)),
                             num_classes)
    inplanes = 64
    layers = []
    for planes, blocks, stride in [(64, 3, 1), (128, 4, 2), (256, 6, 2), (512, 3, 2)]:
        blks = []
        for i in range(blocks):
            blks.append(_make_block(kg, inplanes, planes,
                                    stride=stride if i == 0 else 1,
                                    downsample=(i == 0)))
            inplanes = planes * 4
        layers.append(blks)
    params["layers"] = layers
    return params


# ---------------------------------------------------------------------------
# Full forward pass
# ---------------------------------------------------------------------------
def seresnext50cs_forward(x_nchw, params):
    """SeResNext50Cs.forward (eval mode). Input: NCHW, 1 channel. Output: (B, 340)."""
    x = jnp.transpose(x_nchw, (0, 2, 3, 1)).astype(_F32)    # NCHW -> NHWC
    if x.shape[-1] == 1:                                    # ExpandChannels2d(3)
        x = jnp.repeat(x, 3, axis=-1)
    scale, shift = params["bn0"]                            # BatchNorm2d(3), eval:
    x = (x * scale + shift).astype(_BF16)                   # glue FMA (pre-pad, exact)
    # layer0: conv7x7/s2 + BN + ReLU + maxpool3x3/s2 (ceil_mode)
    x = conv2d_bn_act(x, params["layer0_conv"], stride=2, pad=3, act="relu")
    x = maxpool2d_3x3_s2_ceil(x)
    # layer1..layer4
    for layer in params["layers"]:
        for blk in layer:
            x = se_resnext_bottleneck(x, blk)
    # AdaptiveAvgPool2d(1) + Dropout(0.2)[eval: identity] + flatten + Linear(2048, 340)
    pooled = global_avg_pool(x)                             # (B, 2048) f32
    w, b, ncls = params["last_linear"]
    logits = linear_act(pooled, w, b, act="none", out_dtype=jnp.float32)
    return logits[:, :ncls]


if __name__ == "__main__":
    params = make_params(seed=0, num_classes=340)
    x = jax.random.normal(jax.random.PRNGKey(0), (2, 1, 64, 64), _F32)  # NCHW, 1 channel
    logits = seresnext50cs_forward(x, params)
    logits = jax.block_until_ready(logits)
    assert logits.shape == (2, 340), logits.shape
    assert bool(jnp.all(jnp.isfinite(logits)))
    print("KERNEL_OK")
</pallas_src>

<mosaic_0001>
module attributes {stable_mosaic.version = 11 : i64} {
  func.func @_conv_mm_kernel(%arg0: i32, %arg1: i32, %arg2: memref<256x1x147xbf16, #tpu.memory_space<vmem>>, %arg3: memref<1x1x147x64xbf16, #tpu.memory_space<vmem>>, %arg4: memref<1x1x64xf32, #tpu.memory_space<vmem>>, %arg5: memref<1x1x64xf32, #tpu.memory_space<vmem>>, %arg6: memref<256x64xbf16, #tpu.memory_space<vmem>>) attributes {dimension_semantics = [#tpu.dimension_semantics<parallel>, #tpu.dimension_semantics<parallel>], iteration_bounds = array<i64: 1, 8>, scalar_prefetch = 0 : i64, scratch_operands = 0 : i64, tpu.core_type = #tpu.core_type<tc>, window_params = [{transform_indices = @transform_0, window_bounds = array<i64: 256, 1, 147>}, {transform_indices = @transform_1, window_bounds = array<i64: 1, 1, 147, 64>}, {transform_indices = @transform_2, window_bounds = array<i64: 1, 1, 64>}, {transform_indices = @transform_3, window_bounds = array<i64: 1, 1, 64>}, {transform_indices = @transform_4, window_bounds = array<i64: 256, 64>}]} {
    %c0 = arith.constant 0 : index
    %c0_0 = arith.constant 0 : index
    %c0_1 = arith.constant 0 : index
    %0 = vector.load %arg2[%c0, %c0_0, %c0_1] : memref<256x1x147xbf16, #tpu.memory_space<vmem>>, vector<256x1x147xbf16>
    %1 = vector.shape_cast %0 : vector<256x1x147xbf16> to vector<256x147xbf16>
    %c0_2 = arith.constant 0 : index
    %c0_3 = arith.constant 0 : index
    %c0_4 = arith.constant 0 : index
    %c0_5 = arith.constant 0 : index
    %2 = vector.load %arg3[%c0_2, %c0_3, %c0_4, %c0_5] : memref<1x1x147x64xbf16, #tpu.memory_space<vmem>>, vector<1x1x147x64xbf16>
    %3 = vector.shape_cast %2 : vector<1x1x147x64xbf16> to vector<147x64xbf16>
    %cst = arith.constant dense<0.000000e+00> : vector<256x64xf32>
    %4 = tpu.matmul %1, %3, %cst {dimension_numbers = #tpu.dot_dimension_numbers<[1], [0], [0], [1], [0, 0, 1, 1], [], []>} : vector<256x147xbf16>, vector<147x64xbf16>, vector<256x64xf32> -> vector<256x64xf32>
    %c0_6 = arith.constant 0 : index
    %c0_7 = arith.constant 0 : index
    %c0_8 = arith.constant 0 : index
    %5 = vector.load %arg4[%c0_6, %c0_7, %c0_8] : memref<1x1x64xf32, #tpu.memory_space<vmem>>, vector<1x1x64xf32>
    %6 = vector.shape_cast %5 : vector<1x1x64xf32> to vector<1x64xf32>
    %7 = vector.broadcast %6 : vector<1x64xf32> to vector<256x64xf32>
    %8 = arith.mulf %4, %7 : vector<256x64xf32>
    %c0_9 = arith.constant 0 : index
    %c0_10 = arith.constant 0 : index
    %c0_11 = arith.constant 0 : index
    %9 = vector.load %arg5[%c0_9, %c0_10, %c0_11] : memref<1x1x64xf32, #tpu.memory_space<vmem>>, vector<1x1x64xf32>
    %10 = vector.shape_cast %9 : vector<1x1x64xf32> to vector<1x64xf32>
    %11 = vector.broadcast %10 : vector<1x64xf32> to vector<256x64xf32>
    %12 = arith.addf %8, %11 : vector<256x64xf32>
    %cst_12 = arith.constant 0.000000e+00 : f32
    %13 = vector.broadcast %cst_12 : f32 to vector<256x64xf32>
    %14 = arith.maximumf %12, %13 : vector<256x64xf32>
    %15 = arith.truncf %14 : vector<256x64xf32> to vector<256x64xbf16>
    %c0_13 = arith.constant 0 : index
    %c0_14 = arith.constant 0 : index
    %16 = vector.load %arg6[%c0_13, %c0_14] : memref<256x64xbf16, #tpu.memory_space<vmem>>, vector<256x64xbf16>
    tpu.vector_store %arg6[%c0_13, %c0_14], %15 {strides = array<i32>} : memref<256x64xbf16, #tpu.memory_space<vmem>>, vector<256x64xbf16>,
    return
  }
  func.func @transform_0(%arg0: i32, %arg1: i32) -> (i32, i32, i32) {
    %c0_i32 = arith.constant 0 : i32
    %c0_i32_0 = arith.constant 0 : i32
    return %arg1, %c0_i32, %arg0 : i32, i32, i32
  }
  func.func @transform_1(%arg0: i32, %arg1: i32) -> (i32, i32, i32, i32) {
    %c0_i32 = arith.constant 0 : i32
    %c0_i32_0 = arith.constant 0 : i32
    %c0_i32_1 = arith.constant 0 : i32
    %c0_i32_2 = arith.constant 0 : i32
    return %arg0, %c0_i32, %c0_i32_0, %c0_i32_1 : i32, i32, i32, i32
  }
  func.func @transform_2(%arg0: i32, %arg1: i32) -> (i32, i32, i32) {
    %c0_i32 = arith.constant 0 : i32
    %c0_i32_0 = arith.constant 0 : i32
    %c0_i32_1 = arith.constant 0 : i32
    return %arg0, %c0_i32, %c0_i32_0 : i32, i32, i32
  }
  func.func @transform_3(%arg0: i32, %arg1: i32) -> (i32, i32, i32) {
    %c0_i32 = arith.constant 0 : i32
    %c0_i32_0 = arith.constant 0 : i32
    %c0_i32_1 = arith.constant 0 : i32
    return %arg0, %c0_i32, %c0_i32_0 : i32, i32, i32
  }
  func.func @transform_4(%arg0: i32, %arg1: i32) -> (i32, i32) {
    %c0_i32 = arith.constant 0 : i32
    return %arg1, %arg0 : i32, i32
  }
}

</mosaic_0001>

<bundles_post_ra>
// kernel: tpu_custom_call.1
= control target key start
LH: loop header
LB: loop body
LE: loop exit
PB: predicated region body
PF: predicated region fallthrough
CT: control target
= control target key end

     0   :  { %s9045_s15 = smov 0   ;;  %s9047_s16 = smov 0   ;;  %s11904_s0 = inlined_call_operand.vmem [shape: bf16[2048,1,147], index: 0, kind: input, shape index: {}]   ;;  %s11905_s1 = inlined_call_operand.vmem [shape: bf16[1,1,147,64], index: 1, kind: input, shape index: {}]   ;;  %s11906_s2 = inlined_call_operand.vmem [shape: f32[1,1,64], index: 2, kind: input, shape index: {}]   ;;  %s11907_s3 = inlined_call_operand.vmem [shape: f32[1,1,64], index: 3, kind: input, shape index: {}]   ;;  %s11908_s4 = inlined_call_operand.vmem [shape: bf16[2048,64], index: 4, kind: output, shape index: {}]  }
   0x1   :  { %s9049_s17 = smov 0  }
   0x2 LB: > { %s23_s18 = sadd.s32 1, %s9011_s16  ;;  %p8581_p0 = scmp.ge.s32.totalorder %s9015_s17, 1  ;;  %s9015_s17 = sphi %s9049_s17, %s14_s17   ;;  %s9011_s16 = sphi %s9047_s16, %s12057_s16   ;;  %s9007_s15 = sphi %s9045_s15, %s12056_s15  }
   0x3   : > { %p24_p1 = scmp.ge.s32.totalorder %s23_s18, 8  ;;  %p210_p2 = scmp.lt.s32.totalorder %s9015_s17, 9 }
   0x5   : > { %s12059_s18 = smov (%p24_p1, %s23_s18), 0  ;;  %p211_p3 = pnand %p8581_p0, %p210_p2 }
   0x7   : > { %214 = sbr.rel (%p211_p3) target bundleno = 805 (0x325), region = 36 }
   0xe   : > { %v8983_v0 = vld [vmem:[%s11905_s1] sm:$0xff]   ;;  %v9017_v1 = vmov 0   ;;  %v8984_v2 = vld [vmem:[%s11905_s1 + $0x8] sm:$0xff]   ;;  %vm8018_vm0 = vcmask 1040384   ;;  %v8985_v3 = vld [vmem:[%s11905_s1 + $0x10] sm:$0xff]   ;;  %s8582_s25 = sshll.u32 %s9007_s15, 8  ;;  %v828_v4 = vlaneseq }
   0xf   : > { %8025 = vmatprep.subr.bf16.mxu0 %v9017_v1  ;;  %8936 = vmatprep.subr.bf16.mxu1 %v9017_v1  ;;  %p256_p4 = scmp.lt.s32.totalorder %s8582_s25, 2047  ;;  %v8986_v5 = vld [vmem:[%s11905_s1 + $0x18] sm:$0xff]   ;;  %vm8019_vm1 = vcmask 1041408   ;;  %v9018_v6 = vmov 65535   ;;  %v9019_v8 = vmov 1966171168  }
  0x10   : > { %8026 = vmatpush1.bf16.msra.mxu0 %v8983_v0  ;;  %8946 = vmatpush1.bf16.msra.mxu1 %v8983_v0  ;;  %v8020_v7 = vsel %vm8018_vm0, 4294967295, %v9018_v6  ;;  %v826_v9 = vunpack.c.l.s4 %v9019_v8  ;;  %v829_v10 = vshrl.u32 %v828_v4, 7  ;;  %v8992_v11 = vld [vmem:[%s11905_s1 + $0x48] ss:$0 sps:$4 sm:$0x33]   ;;  %v8987_v15 = vld [vmem:[%s11905_s1 + $0x20] sm:$0xff]  }
  0x11   : > { %8027 = vmatprep.subr.bf16.mxu0 %v9017_v1  ;;  %8937 = vmatprep.subr.bf16.mxu1 %v9017_v1  ;;  %s12061_s25 = smov (!%p256_p4, %s8582_s25), 2047  ;;  %v8021_v12 = vsel %vm8019_vm1, %v8020_v7, 0  ;;  %vm6962_vm2 = vcmask 1041409   ;;  %vm6965_vm3 = vcmask 1042434   ;;  %vm6968_vm4 = vcmask 1043459   ;;  %v8988_v29 = vld [vmem:[%s11905_s1 + $0x28] sm:$0xff]  }
  0x12   : > { %s8583_s28 = sshll.u32 %s12061_s25, 1  ;;  %v827_v14 = vunpack.c.0.s8 %v826_v9  ;;  %v9114_v21 = vand.u32 %v8992_v11, %v8021_v12  ;;  %vm6971_vm5 = vcmask 1044484   ;;  %vm6974_vm6 = vcmask 1045509   ;;  %v8989_v49 = vld [vmem:[%s11905_s1 + $0x30] sm:$0xff]   ;;  %v8990_v7 = vld [vmem:[%s11905_s1 + $0x38] sm:$0xff]   ;;  %s8584_s22 = sshll.u32 %s9007_s15, 5 }
  0x13   : > { %s9092_s7 = scalar_lea.vmem %s11904_s0, %s8583_s28  ;;  %vm6977_vm7 = vcmask 1046534   ;;  %vm6980_vm8 = vcmask 1047559   ;;  %vm7969_vm9 = vcmask 154624   ;;  %p11705_p5 = scmp.lt.s32.totalorder %s8584_s22, 255  ;;  %vm8424_vm10 = vcmask 519168  }
  0x14   : > { %8028 = vmatpush1.bf16.msra.mxu0 %v8984_v2  ;;  %8947 = vmatpush1.bf16.msra.mxu1 %v8984_v2  ;;  %v9095_v13 = vld.sshfl [vmem:[%s9092_s7] sm:$0x11 pattern:$0x75316420]  ;;  %v9110_v19 = vsub.s32 %v827_v14, %v829_v10 }
  0x15   : > { %8029 = vmatprep.subr.bf16.mxu0 %v9017_v1  ;;  %8938 = vmatprep.subr.bf16.mxu1 %v9017_v1  ;;  %v9101_v16 = vld.sshfl [vmem:[%s9092_s7 + $0x2] sm:$0x11 pattern:$0x75316420]  ;;  %v824_v17 = vcombine.high %v9095_v13, %v9095_v13  ;;  %s12063_s22 = smov (!%p11705_p5, %s8584_s22), 255 }
  0x16   : > { %v9108_v18 = vld.sshfl [vmem:[%s9092_s7 + $0x4] sm:$0x11 pattern:$0x75316420]  ;;  %v846_v20 = vcombine.high %v9101_v16, %v9101_v16  ;;  %s8585_s15 = sshll.u32 %s12063_s22, 2 }
  0x17   : > { %v9117_v22 = vld.sshfl [vmem:[%s9092_s7 + $0x6] sm:$0x11 pattern:$0x75316420]  ;;  %v868_v23 = vcombine.high %v9108_v18, %v9108_v18  ;;  %v838_v25 = vrot.slane %v824_v17, %v9110_v19  ;;  %s11757_s30 = scalar_lea.vmem %s11908_s4, %s8585_s15 }
  0x18   : > { %8030 = vmatpush1.bf16.msra.mxu0 %v8985_v3  ;;  %8948 = vmatpush1.bf16.msra.mxu1 %v8985_v3  ;;  %v9122_v24 = vld.sshfl [vmem:[%s9092_s7 + $0x8] sm:$0x11 pattern:$0x75316420]  ;;  %v860_v26 = vrot.slane %v846_v20, %v9110_v19  ;;  %v890_v27 = vcombine.high %v9117_v22, %v9117_v22 }
  0x19   : > { %8031 = vmatprep.subr.bf16.mxu0 %v9017_v1  ;;  %8939 = vmatprep.subr.bf16.mxu1 %v9017_v1  ;;  %v9134_v30 = vld.sshfl [vmem:[%s9092_s7 + $0xa] sm:$0x11 pattern:$0x75316420]  ;;  %v882_v31 = vrot.slane %v868_v23, %v9110_v19  ;;  %v912_v32 = vcombine.high %v9122_v24, %v9122_v24  ;;  %v6450_v37 = vunpack.c.l.b16 %v838_v25 }
  0x1a   : > { %v9144_v34 = vld.sshfl [vmem:[%s9092_s7 + $0xc] sm:$0x11 pattern:$0x75316420]  ;;  %v904_v35 = vrot.slane %v890_v27, %v9110_v19  ;;  %v934_v36 = vcombine.high %v9134_v30, %v9134_v30  ;;  %v6452_v38 = vunpack.c.l.b16 %v860_v26 }
  0x1b   : > { %v9150_v39 = vld.sshfl [vmem:[%s9092_s7 + $0xe] sm:$0x11 pattern:$0x75316420]  ;;  %v926_v40 = vrot.slane %v912_v32, %v9110_v19  ;;  %v956_v41 = vcombine.high %v9144_v34, %v9144_v34  ;;  %v6454_v42 = vunpack.c.l.b16 %v882_v31  ;;  %v8991_v32 = vld [vmem:[%s11905_s1 + $0x40] sm:$0xff]  }
  0x1c   : > { %8032 = vmatpush1.bf16.msra.mxu0 %v8986_v5  ;;  %8949 = vmatpush1.bf16.msra.mxu1 %v8986_v5  ;;  %v9158_v44 = vld.sshfl [vmem:[%s9092_s7 + $0x10] sm:$0x11 pattern:$0x75316420]  ;;  %v948_v45 = vrot.slane %v934_v36, %v9110_v19  ;;  %v978_v46 = vcombine.high %v9150_v39, %v9150_v39  ;;  %v6456_v47 = vunpack.c.l.b16 %v904_v35  ;;  %v6982_v48 = vrot.slane %v6452_v38, 7 }
  0x1d   : > { %8033 = vmatprep.subr.bf16.mxu0 %v9017_v1  ;;  %8940 = vmatprep.subr.bf16.mxu1 %v9017_v1  ;;  %v9167_v50 = vld.sshfl [vmem:[%s9092_s7 + $0x12] sm:$0x11 pattern:$0x75316420]  ;;  %v970_v51 = vrot.slane %v956_v41, %v9110_v19  ;;  %v1000_v52 = vcombine.high %v9158_v44, %v9158_v44  ;;  %v6458_v53 = vunpack.c.l.b16 %v926_v40  ;;  %v6984_v54 = vrot.slane %v6454_v42, 6 }
  0x1e   : > { %v9175_v55 = vld.sshfl [vmem:[%s9092_s7 + $0x14] sm:$0x11 pattern:$0x75316420]  ;;  %v992_v56 = vrot.slane %v978_v46, %v9110_v19  ;;  %v1022_v57 = vcombine.high %v9167_v50, %v9167_v50  ;;  %v6460_v58 = vunpack.c.l.b16 %v948_v45  ;;  %v6983_v59 = vsel %vm6962_vm2, %v6982_v48, %v6450_v37 }
  0x1f   : > { %v9182_v60 = vld.sshfl [vmem:[%s9092_s7 + $0x16] sm:$0x11 pattern:$0x75316420]  ;;  %v1014_v61 = vrot.slane %v1000_v52, %v9110_v19  ;;  %v1044_v62 = vcombine.high %v9175_v55, %v9175_v55  ;;  %v6462_v63 = vunpack.c.l.b16 %v970_v51  ;;  %v6985_v0 = vsel %vm6965_vm3, %v6984_v54, %v6983_v59 }
  0x20   : > { %8034 = vmatpush1.bf16.msra.mxu0 %v8987_v15  ;;  %8950 = vmatpush1.bf16.msra.mxu1 %v8987_v15  ;;  %v9189_v2 = vld.sshfl [vmem:[%s9092_s7 + $0x18] sm:$0x11 pattern:$0x75316420]  ;;  %v1036_v3 = vrot.slane %v1022_v57, %v9110_v19  ;;  %v1066_v4 = vcombine.high %v9182_v60, %v9182_v60  ;;  %v6464_v5 = vunpack.c.l.b16 %v992_v56  ;;  %v6986_v6 = vrot.slane %v6456_v47, 5 }
  0x21   : > { %8035 = vmatprep.subr.bf16.mxu0 %v9017_v1  ;;  %8941 = vmatprep.subr.bf16.mxu1 %v9017_v1  ;;  %v9198_v8 = vld.sshfl [vmem:[%s9092_s7 + $0x1a] sm:$0x11 pattern:$0x75316420]  ;;  %v1058_v9 = vrot.slane %v1044_v62, %v9110_v19  ;;  %v1088_v10 = vcombine.high %v9189_v2, %v9189_v2  ;;  %v6466_v11 = vunpack.c.l.b16 %v1014_v61  ;;  %v6988_v12 = vrot.slane %v6458_v53, 4 }
  0x22   : > { %v9206_v14 = vld.sshfl [vmem:[%s9092_s7 + $0x1c] sm:$0x11 pattern:$0x75316420]  ;;  %v1080_v15 = vrot.slane %v1066_v4, %v9110_v19  ;;  %v1110_v17 = vcombine.high %v9198_v8, %v9198_v8  ;;  %v6468_v20 = vunpack.c.l.b16 %v1036_v3  ;;  %v6987_v23 = vsel %vm6968_vm4, %v6986_v6, %v6985_v0 }
  0x23   : > { %v9213_v25 = vld.sshfl [vmem:[%s9092_s7 + $0x1e] sm:$0x11 pattern:$0x75316420]  ;;  %v1102_v26 = vrot.slane %v1088_v10, %v9110_v19  ;;  %v1132_v27 = vcombine.high %v9206_v14, %v9206_v14  ;;  %v6989_v31 = vsel %vm6971_vm5, %v6988_v12, %v6987_v23  ;;  %v6990_v38 = vrot.slane %v6460_v58, 3 }
  0x24   : > { %8036 = vmatpush1.bf16.msra.mxu0 %v8988_v29  ;;  %8951 = vmatpush1.bf16.msra.mxu1 %v8988_v29  ;;  %v6470_v29 = vunpack.c.l.b16 %v1058_v9  ;;  %v1124_v35 = vrot.slane %v1110_v17, %v9110_v19  ;;  %v1154_v36 = vcombine.high %v9213_v25, %v9213_v25  ;;  %v6472_v37 = vunpack.c.l.b16 %v1080_v15  ;;  %v9226_v40 = vld.sshfl [vmem:[%s9092_s7 + $0x100] sm:$0x11 pattern:$0x75316420] }
  0x25   : > { %8037 = vmatprep.subr.bf16.mxu0 %v9017_v1  ;;  %8942 = vmatprep.subr.bf16.mxu1 %v9017_v1  ;;  %v1146_v41 = vrot.slane %v1132_v27, %v9110_v19  ;;  %v6474_v42 = vunpack.c.l.b16 %v1102_v26  ;;  %v6992_v45 = vrot.slane %v6462_v63, 2  ;;  %v6994_v46 = vrot.slane %v6464_v5, 1  ;;  %v9230_v47 = vld.sshfl [vmem:[%s9092_s7 + $0x102] sm:$0x11 pattern:$0x75316420] }
  0x26   : > { %v1168_v48 = vrot.slane %v1154_v36, %v9110_v19  ;;  %v6991_v51 = vsel %vm6974_vm6, %v6990_v38, %v6989_v31  ;;  %v7010_v52 = vrot.slane %v6468_v20, 7  ;;  %v9237_v53 = vld.sshfl [vmem:[%s9092_s7 + $0x104] sm:$0x11 pattern:$0x75316420]  ;;  %v7012_v57 = vrot.slane %v6470_v29, 6 }
  0x27   : > { %v6478_v54 = vunpack.c.l.b16 %v1146_v41  ;;  %v6993_v56 = vsel %vm6977_vm7, %v6992_v45, %v6991_v51  ;;  %v7014_v58 = vrot.slane %v6472_v37, 5  ;;  %v9241_v59 = vld.sshfl [vmem:[%s9092_s7 + $0x106] sm:$0x11 pattern:$0x75316420]  ;;  %v7016_v0 = vrot.slane %v6474_v42, 4 }
  0x28   : > { %8038 = vmatpush1.bf16.msra.mxu0 %v8989_v49  ;;  %8952 = vmatpush1.bf16.msra.mxu1 %v8989_v49  ;;  %v6476_v49 = vunpack.c.l.b16 %v1124_v35  ;;  %v6480_v61 = vunpack.c.l.b16 %v1168_v48  ;;  %v6995_v62 = vsel %vm6980_vm8, %v6994_v46, %v6993_v56  ;;  %v7011_v63 = vsel %vm6962_vm2, %v7010_v52, %v6466_v11  ;;  %v9246_v3 = vld.sshfl [vmem:[%s9092_s7 + $0x108] sm:$0x11 pattern:$0x75316420] }
  0x29   : > { %8039 = vmatprep.subr.bf16.mxu0 %v9017_v1  ;;  %8943 = vmatprep.subr.bf16.mxu1 %v9017_v1  ;;  %v7013_v4 = vsel %vm6965_vm3, %v7012_v57, %v7011_v63  ;;  %v7020_v6 = vrot.slane %v6478_v54, 2  ;;  %v3640_v9 = vcombine.high %v9226_v40, %v9226_v40  ;;  %v9258_v12 = vld.sshfl [vmem:[%s9092_s7 + $0x10c] sm:$0x11 pattern:$0x75316420]  ;;  %v3662_v15 = vcombine.high %v9230_v47, %v9230_v47 }
  0x2a   : > { %v7018_v5 = vrot.slane %v6476_v49, 3  ;;  %v7015_v10 = vsel %vm6968_vm4, %v7014_v58, %v7013_v4  ;;  %v7022_v11 = vrot.slane %v6480_v61, 1  ;;  %v3684_v17 = vcombine.high %v9237_v53, %v9237_v53  ;;  %v9266_v23 = vld.sshfl [vmem:[%s9092_s7 + $0x10e] sm:$0x11 pattern:$0x75316420] }
  0x2b   : > { %v7017_v20 = vsel %vm6971_vm5, %v7016_v0, %v7015_v10  ;;  %v9269_v26 = vrot.slane %v3640_v9, %v9110_v19  ;;  %v3728_v27 = vcombine.high %v9246_v3, %v9246_v3  ;;  %v9277_v31 = vld.sshfl [vmem:[%s9092_s7 + $0x110] sm:$0x11 pattern:$0x75316420]  ;;  %v3794_v51 = vcombine.high %v9266_v23, %v9266_v23 }
  0x2c   : > { %8040 = vmatpush1.bf16.msra.mxu0 %v8990_v7  ;;  %8953 = vmatpush1.bf16.msra.mxu1 %v8990_v7  ;;  %v9250_v7 = vld.sshfl [vmem:[%s9092_s7 + $0x10a] sm:$0x11 pattern:$0x75316420]  ;;  %v7019_v29 = vsel %vm6974_vm6, %v7018_v5, %v7017_v20  ;;  %v3698_v35 = vrot.slane %v3684_v17, %v9110_v19  ;;  %v3816_v56 = vcombine.high %v9277_v31, %v9277_v31 }
  0x2d   : > { %8041 = vmatprep.subr.bf16.mxu0 %v9017_v1  ;;  %8944 = vmatprep.subr.bf16.mxu1 %v9017_v1  ;;  %v3750_v36 = vcombine.high %v9250_v7, %v9250_v7  ;;  %v7021_v37 = vsel %vm6977_vm7, %v7020_v6, %v7019_v29  ;;  %v9287_v38 = vld.sshfl [vmem:[%s9092_s7 + $0x112] sm:$0x11 pattern:$0x75316420]  ;;  %v3742_v42 = vrot.slane %v3728_v27, %v9110_v19  ;;  %v6706_v45 = vunpack.c.l.b16 %v9269_v26 }
  0x2e   : > { %v7023_v46 = vsel %vm6980_vm8, %v7022_v11, %v7021_v37  ;;  %v9294_v48 = vld.sshfl [vmem:[%s9092_s7 + $0x114] sm:$0x11 pattern:$0x75316420]  ;;  %v3838_v57 = vcombine.high %v9287_v38, %v9287_v38  ;;  %v3808_v0 = vrot.slane %v3794_v51, %v9110_v19  ;;  %v3830_v6 = vrot.slane %v3816_v56, %v9110_v19 }
  0x2f   : > { %v3764_v49 = vrot.slane %v3750_v36, %v9110_v19  ;;  %v7865_v52 = vpack.c.b16 %v7023_v46, %v6995_v62  ;;  %v9302_v54 = vld.sshfl [vmem:[%s9092_s7 + $0x116] sm:$0x11 pattern:$0x75316420]  ;;  %v3860_v58 = vcombine.high %v9294_v48, %v9294_v48  ;;  %v6710_v26 = vunpack.c.l.b16 %v3698_v35 }
  0x30   : > { %8042 = vmatpush1.bf16.msra.mxu0 %v8991_v32  ;;  %8954 = vmatpush1.bf16.msra.mxu1 %v8991_v32  ;;  %v3676_v32 = vrot.slane %v3662_v15, %v9110_v19  ;;  %v9311_v61 = vld.sshfl [vmem:[%s9092_s7 + $0x118] sm:$0x11 pattern:$0x75316420]  ;;  %v3882_v62 = vcombine.high %v9302_v54, %v9302_v54  ;;  %v3852_v9 = vrot.slane %v3838_v57, %v9110_v19  ;;  %v6714_v36 = vunpack.c.l.b16 %v3742_v42 }
  0x31   : > { %8043 = vmatprep.subr.bf16.mxu0 %v9017_v1  ;;  %8945 = vmatprep.subr.bf16.mxu1 %v9017_v1  ;;  %v3706_v1 = vcombine.high %v9241_v59, %v9241_v59  ;;  %v9319_v5 = vld.sshfl [vmem:[%s9092_s7 + $0x11a] sm:$0x11 pattern:$0x75316420]  ;;  %v3874_v10 = vrot.slane %v3860_v58, %v9110_v19  ;;  %v3904_v11 = vcombine.high %v9311_v61, %v9311_v61  ;;  %v6716_v37 = vunpack.c.l.b16 %v3764_v49 }
  0x32   : > { %v6708_v4 = vunpack.c.l.b16 %v3676_v32  ;;  %8852 = vmatprep.mubr.msk.bf16.mxu0 %vm7969_vm9, %v7865_v52  ;;  %11946 = vst [vmem:[#allocation2_spill] sm:$0xff] %v9319_v5  ;;  %v9327_v15 = vld.sshfl [vmem:[%s9092_s7 + $0x11c] sm:$0x11 pattern:$0x75316420]  ;;  %v3896_v17 = vrot.slane %v3882_v62, %v9110_v19  ;;  %v3926_v20 = vcombine.high %v9319_v5, %v9319_v5  ;;  %v6720_v52 = vunpack.c.l.b16 %v3808_v0 }
  0x33   : > { %v3720_v41 = vrot.slane %v3706_v1, %v9110_v19  ;;  %11947 = vst [vmem:[#allocation3_spill] sm:$0xff] %v9327_v15  ;;  %v9333_v27 = vld.sshfl [vmem:[%s9092_s7 + $0x11e] sm:$0x11 pattern:$0x75316420]  ;;  %v3918_v29 = vrot.slane %v3904_v11, %v9110_v19  ;;  %v3948_v32 = vcombine.high %v9327_v15, %v9327_v15  ;;  %v6722_v35 = vunpack.c.l.b16 %v3830_v6 }
  0x34   : > { %8044 = vmatpush1.bf16.msra.mxu0 %v9114_v21  ;;  %8955 = vmatpush1.bf16.msra.mxu1 %v9114_v21  ;;  %v3772_v21 = vcombine.high %v9258_v12, %v9258_v12  ;;  %11948 = vst [vmem:[#allocation4_spill] sm:$0xff] %v9333_v27  ;;  %v3940_v46 = vrot.slane %v3926_v20, %v9110_v19  ;;  %v6726_v57 = vunpack.c.l.b16 %v3874_v10  ;;  %v6728_v62 = vunpack.c.l.b16 %v3896_v17 }
  0x35   : > { %v6712_v1 = vunpack.c.l.b16 %v3720_v41  ;;  %v3962_v56 = vrot.slane %v3948_v32, %v9110_v19  ;;  %v6724_v41 = vunpack.c.l.b16 %v3852_v9  ;;  %v6730_v11 = vunpack.c.l.b16 %v3918_v29 }
  0x36   : > { %v3786_v63 = vrot.slane %v3772_v21, %v9110_v19  ;;  %v3970_v21 = vcombine.high %v9333_v27, %v9333_v27  ;;  %v6732_v43 = vunpack.c.l.b16 %v3940_v46  ;;  %v7430_v42 = vrot.slane %v6708_v4, 7 }
  0x37   : > { %v6734_v33 = vunpack.c.l.b16 %v3962_v56  ;;  %v7432_v49 = vrot.slane %v6710_v26, 6  ;;  %v7434_v28 = vrot.slane %v6712_v1, 5  ;;  %v7436_v15 = vrot.slane %v6714_v36, 4 }
  0x38   : > { %v6718_v51 = vunpack.c.l.b16 %v3786_v63  ;;  %v3984_v58 = vrot.slane %v3970_v21, %v9110_v19  ;;  %v7438_v5 = vrot.slane %v6716_v37, 3  ;;  %v7431_v63 = vsel %vm6962_vm2, %v7430_v42, %v6706_v45 }
  0x39   : > { %v7442_v0 = vrot.slane %v6720_v52, 1  ;;  %v7458_v32 = vrot.slane %v6724_v41, 7  ;;  %v7460_v6 = vrot.slane %v6726_v57, 6  ;;  %v7433_v9 = vsel %vm6965_vm3, %v7432_v49, %v7431_v63 }
  0x3a   : > { %v6736_v20 = vunpack.c.l.b16 %v3984_v58  ;;  %v7440_v27 = vrot.slane %v6718_v51, 2  ;;  %v7462_v10 = vrot.slane %v6728_v62, 5  ;;  %v7464_v21 = vrot.slane %v6730_v11, 4 }
  0x3b   : > { %v7466_v17 = vrot.slane %v6732_v43, 3  ;;  %v7435_v29 = vsel %vm6968_vm4, %v7434_v28, %v7433_v9  ;;  %v7459_v4 = vsel %vm6962_vm2, %v7458_v32, %v6722_v35  ;;  %v7468_v26 = vrot.slane %v6734_v33, 2 }
  0x3c   : > { %v7470_v1 = vrot.slane %v6736_v20, 1  ;;  %v7437_v36 = vsel %vm6971_vm5, %v7436_v15, %v7435_v29  ;;  %v7461_v37 = vsel %vm6965_vm3, %v7460_v6, %v7459_v4  ;;  %v897_v45 = vrot.slane %v9117_v22, %v9110_v19 }
  0x3d   : > { %v919_v46 = vrot.slane %v9122_v24, %v9110_v19  ;;  %v7439_v51 = vsel %vm6974_vm6, %v7438_v5, %v7437_v36  ;;  %v7463_v43 = vsel %vm6968_vm4, %v7462_v10, %v7461_v37  ;;  %v941_v28 = vrot.slane %v9134_v30, %v9110_v19 }
  0x3e   : > { %v963_v33 = vrot.slane %v9144_v34, %v9110_v19  ;;  %v7441_v15 = vsel %vm6977_vm7, %v7440_v27, %v7439_v51  ;;  %v7465_v52 = vsel %vm6971_vm5, %v7464_v21, %v7463_v43  ;;  %v985_v22 = vrot.slane %v9150_v39, %v9110_v19 }
  0x3f   : > { %v1007_v24 = vrot.slane %v9158_v44, %v9110_v19  ;;  %v7443_v5 = vsel %vm6980_vm8, %v7442_v0, %v7441_v15  ;;  %v7467_v56 = vsel %vm6974_vm6, %v7466_v17, %v7465_v52  ;;  %v1029_v30 = vrot.slane %v9167_v50, %v9110_v19 }
  0x40   : > { %v1051_v34 = vrot.slane %v9175_v55, %v9110_v19  ;;  %v7469_v27 = vsel %vm6977_vm7, %v7468_v26, %v7467_v56  ;;  %v1073_v35 = vrot.slane %v9182_v60, %v9110_v19  ;;  %v1095_v39 = vrot.slane %v9189_v2, %v9110_v19 }
  0x41   : > { %v1117_v44 = vrot.slane %v9198_v8, %v9110_v19  ;;  %v7471_v41 = vsel %vm6980_vm8, %v7470_v1, %v7469_v27  ;;  %v1139_v57 = vrot.slane %v9206_v14, %v9110_v19  ;;  %v1161_v50 = vrot.slane %v9213_v25, %v9110_v19 }
  0x42   : > { %v11949_v55 = vrot.slane %v9095_v13, %v9110_v19  ;;  %v7881_v62 = vpack.c.b16 %v7471_v41, %v7443_v5  ;;  %v11950_v60 = vrot.slane %v9101_v16, %v9110_v19  ;;  %v11951_v8 = vrot.slane %v9108_v18, %v9110_v19 }
  0x43   : > { %v6455_v42 = vunpack.c.l.b16 %v897_v45  ;;  %v6457_v49 = vunpack.c.l.b16 %v919_v46  ;;  %v6459_v20 = vunpack.c.l.b16 %v941_v28  ;;  %v6461_v14 = vunpack.c.l.b16 %v963_v33 }
  0x44   : > { %v6449_v58 = vunpack.c.l.b16 %v11949_v55  ;;  %v6451_v2 = vunpack.c.l.b16 %v11950_v60  ;;  %v6453_v11 = vunpack.c.l.b16 %v11951_v8  ;;  %v6463_v63 = vunpack.c.l.b16 %v985_v22  ;;  %8860 = vmatprep.mubr.msk.bf16.mxu1 %vm7969_vm9, %v7881_v62 }
  0x45   : > { %v6465_v25 = vunpack.c.l.b16 %v1007_v24  ;;  %v6467_v0 = vunpack.c.l.b16 %v1029_v30  ;;  %v6469_v13 = vunpack.c.l.b16 %v1051_v34  ;;  %v6471_v32 = vunpack.c.l.b16 %v1073_v35 }
  0x46   : > { %v6473_v6 = vunpack.c.l.b16 %v1095_v39  ;;  %v6475_v9 = vunpack.c.l.b16 %v1117_v44  ;;  %v6477_v10 = vunpack.c.l.b16 %v1139_v57  ;;  %v6479_v16 = vunpack.c.l.b16 %v1161_v50 }
  0x47   : > { %v6961_v21 = vrot.slane %v6451_v2, 7  ;;  %v6964_v17 = vrot.slane %v6453_v11, 6  ;;  %v6967_v29 = vrot.slane %v6455_v42, 5  ;;  %v6970_v18 = vrot.slane %v6457_v49, 4  ;;  %v11954_v42 = vld [vmem:[#allocation4_spill] sm:$0xff] }
  0x48   : > { %v6973_v4 = vrot.slane %v6459_v20, 3  ;;  %v6976_v26 = vrot.slane %v6461_v14, 2  ;;  %v6979_v1 = vrot.slane %v6463_v63, 1  ;;  %v6996_v36 = vrot.slane %v6467_v0, 7 }
  0x49   : > { %v6963_v37 = vsel %vm6962_vm2, %v6961_v21, %v6449_v58  ;;  %v6998_v45 = vrot.slane %v6469_v13, 6  ;;  %v7000_v46 = vrot.slane %v6471_v32, 5  ;;  %v7002_v51 = vrot.slane %v6473_v6, 4 }
  0x4a   : > { %v6966_v43 = vsel %vm6965_vm3, %v6964_v17, %v6963_v37  ;;  %v6997_v28 = vsel %vm6962_vm2, %v6996_v36, %v6465_v25  ;;  %v7004_v33 = vrot.slane %v6475_v9, 3  ;;  %v7006_v15 = vrot.slane %v6477_v10, 2  ;;  %v9440_v21 = vld.sshfl [vmem:[%s9092_s7 + $0x20] sm:$0x11 pattern:$0x75316420] }
  0x4b   : > { %v6969_v52 = vsel %vm6968_vm4, %v6967_v29, %v6966_v43  ;;  %v6999_v22 = vsel %vm6965_vm3, %v6998_v45, %v6997_v28  ;;  %v7008_v24 = vrot.slane %v6479_v16, 1  ;;  %v3647_v5 = vrot.slane %v9226_v40, %v9110_v19 }
  0x4c   : > { %v6972_v56 = vsel %vm6971_vm5, %v6970_v18, %v6969_v52  ;;  %v7001_v30 = vsel %vm6968_vm4, %v7000_v46, %v6999_v22  ;;  %v3669_v34 = vrot.slane %v9230_v47, %v9110_v19  ;;  %v3691_v27 = vrot.slane %v9237_v53, %v9110_v19 }
  0x4d   : > { %v6975_v35 = vsel %vm6974_vm6, %v6973_v4, %v6972_v56  ;;  %v7003_v39 = vsel %vm6971_vm5, %v7002_v51, %v7001_v30  ;;  %v3713_v44 = vrot.slane %v9241_v59, %v9110_v19  ;;  %v3735_v40 = vrot.slane %v9246_v3, %v9110_v19  ;;  %v9449_v51 = vld.sshfl [vmem:[%s9092_s7 + $0x26] sm:$0x11 pattern:$0x75316420] }
  0x4e   : > { %v6978_v41 = vsel %vm6977_vm7, %v6976_v26, %v6975_v35  ;;  %v7005_v57 = vsel %vm6974_vm6, %v7004_v33, %v7003_v39  ;;  %v3757_v47 = vrot.slane %v9250_v7, %v9110_v19  ;;  %v3779_v53 = vrot.slane %v9258_v12, %v9110_v19  ;;  %v9443_v26 = vld.sshfl [vmem:[%s9092_s7 + $0x22] sm:$0x11 pattern:$0x75316420] }
  0x4f   : > { %v6981_v50 = vsel %vm6980_vm8, %v6979_v1, %v6978_v41  ;;  %v7007_v55 = vsel %vm6977_vm7, %v7006_v15, %v7005_v57  ;;  %v3801_v59 = vrot.slane %v9266_v23, %v9110_v19  ;;  %v3823_v3 = vrot.slane %v9277_v31, %v9110_v19  ;;  %v11952_v23 = vld [vmem:[#allocation2_spill] sm:$0xff]  ;;  %v11953_v31 = vld [vmem:[#allocation3_spill] sm:$0xff] }
  0x50   : > { %v7009_v58 = vsel %vm6980_vm8, %v7008_v24, %v7007_v55  ;;  %v3845_v62 = vrot.slane %v9287_v38, %v9110_v19  ;;  %v3867_v7 = vrot.slane %v9294_v48, %v9110_v19  ;;  %v3889_v12 = vrot.slane %v9302_v54, %v9110_v19  ;;  %v9446_v1 = vld.sshfl [vmem:[%s9092_s7 + $0x24] sm:$0x11 pattern:$0x75316420] }
  0x51   : > { %v7864_v60 = vpack.c.b16 %v7009_v58, %v6981_v50  ;;  %v3911_v2 = vrot.slane %v9311_v61, %v9110_v19  ;;  %v3933_v8 = vrot.slane %v11952_v23, %v9110_v19  ;;  %v3955_v11 = vrot.slane %v11953_v31, %v9110_v19  ;;  %v9454_v56 = vld.sshfl [vmem:[%s9092_s7 + $0x28] sm:$0x11 pattern:$0x75316420] }
  0x52   : > { %v3977_v49 = vrot.slane %v11954_v42, %v9110_v19  ;;  %v6705_v38 = vunpack.c.l.b16 %v3647_v5  ;;  %v6707_v20 = vunpack.c.l.b16 %v3669_v34  ;;  %v6709_v48 = vunpack.c.l.b16 %v3691_v27  ;;  %v9459_v35 = vld.sshfl [vmem:[%s9092_s7 + $0x2a] sm:$0x11 pattern:$0x75316420] }
  0x53   : > { %8058 = vmatmul.mubr.bf16.vlgmr.msra.gmra.mrb[0].mxu0 %v7864_v60  ;;  %v6711_v14 = vunpack.c.l.b16 %v3713_v44  ;;  %v6713_v54 = vunpack.c.l.b16 %v3735_v40  ;;  %v6715_v63 = vunpack.c.l.b16 %v3757_v47  ;;  %v6717_v61 = vunpack.c.l.b16 %v3779_v53  ;;  %v9462_v39 = vld.sshfl [vmem:[%s9092_s7 + $0x2c] sm:$0x11 pattern:$0x75316420] }
  0x54   : > { %v6719_v25 = vunpack.c.l.b16 %v3801_v59  ;;  %v6721_v0 = vunpack.c.l.b16 %v3823_v3  ;;  %v6723_v13 = vunpack.c.l.b16 %v3845_v62  ;;  %v6725_v32 = vunpack.c.l.b16 %v3867_v7  ;;  %v9465_v44 = vld.sshfl [vmem:[%s9092_s7 + $0x2e] sm:$0x11 pattern:$0x75316420] }
  0x55   : > { %v6727_v6 = vunpack.c.l.b16 %v3889_v12  ;;  %v6729_v9 = vunpack.c.l.b16 %v3911_v2  ;;  %v6731_v10 = vunpack.c.l.b16 %v3933_v8  ;;  %v6733_v16 = vunpack.c.l.b16 %v3955_v11  ;;  %v9472_v47 = vld.sshfl [vmem:[%s9092_s7 + $0x30] sm:$0x11 pattern:$0x75316420] }
  0x56   : > { %v6735_v17 = vunpack.c.l.b16 %v3977_v49  ;;  %v7416_v29 = vrot.slane %v6707_v20, 7  ;;  %v7418_v18 = vrot.slane %v6709_v48, 6  ;;  %v7420_v4 = vrot.slane %v6711_v14, 5 }
  0x57   : > { %v7422_v36 = vrot.slane %v6713_v54, 4  ;;  %v7424_v37 = vrot.slane %v6715_v63, 3  ;;  %v7426_v45 = vrot.slane %v6717_v61, 2  ;;  %v7428_v46 = vrot.slane %v6719_v25, 1 }
  0x58   : > { %v7417_v43 = vsel %vm6962_vm2, %v7416_v29, %v6705_v38  ;;  %v7444_v28 = vrot.slane %v6723_v13, 7  ;;  %v7446_v33 = vrot.slane %v6725_v32, 6  ;;  %v7448_v15 = vrot.slane %v6727_v6, 5 }
  0x59   : > { %v7419_v52 = vsel %vm6965_vm3, %v7418_v18, %v7417_v43  ;;  %v7450_v22 = vrot.slane %v6729_v9, 4  ;;  %v7452_v24 = vrot.slane %v6731_v10, 3  ;;  %v7454_v5 = vrot.slane %v6733_v16, 2 }
  0x5a   : > { %v7421_v30 = vsel %vm6968_vm4, %v7420_v4, %v7419_v52  ;;  %v7445_v34 = vsel %vm6962_vm2, %v7444_v28, %v6721_v0  ;;  %v7456_v27 = vrot.slane %v6735_v17, 1  ;;  %v1176_v40 = vcombine.high %v9440_v21, %v9440_v21  ;;  %v9481_v3 = vld.sshfl [vmem:[%s9092_s7 + $0x32] sm:$0x11 pattern:$0x75316420] }
  0x5b   : > { %v7423_v41 = vsel %vm6971_vm5, %v7422_v36, %v7421_v30  ;;  %v7447_v57 = vsel %vm6965_vm3, %v7446_v33, %v7445_v34  ;;  %v1198_v53 = vcombine.high %v9443_v26, %v9443_v26  ;;  %v1220_v50 = vcombine.high %v9446_v1, %v9446_v1  ;;  %v9491_v60 = vld.sshfl [vmem:[%s9092_s7 + $0x34] sm:$0x11 pattern:$0x75316420] }
  0x5c   : > { %v7425_v55 = vsel %vm6974_vm6, %v7424_v37, %v7423_v41  ;;  %v7449_v59 = vsel %vm6968_vm4, %v7448_v15, %v7447_v57  ;;  %v9484_v58 = vrot.slane %v1176_v40, %v9110_v19  ;;  %v1242_v62 = vcombine.high %v9449_v51, %v9449_v51  ;;  %v9494_v2 = vld.sshfl [vmem:[%s9092_s7 + $0x36] sm:$0x11 pattern:$0x75316420] }
  0x5d   : > { %v7427_v7 = vsel %vm6977_vm7, %v7426_v45, %v7425_v55  ;;  %v7451_v12 = vsel %vm6971_vm5, %v7450_v22, %v7449_v59  ;;  %v1212_v23 = vrot.slane %v1198_v53, %v9110_v19  ;;  %v1234_v8 = vrot.slane %v1220_v50, %v9110_v19  ;;  %v9501_v42 = vld.sshfl [vmem:[%s9092_s7 + $0x38] sm:$0x11 pattern:$0x75316420] }
  0x5e   : > { %v7429_v31 = vsel %vm6980_vm8, %v7428_v46, %v7427_v7  ;;  %v7453_v11 = vsel %vm6974_vm6, %v7452_v24, %v7451_v12  ;;  %v9504_v49 = vld.sshfl [vmem:[%s9092_s7 + $0x3a] sm:$0x11 pattern:$0x75316420]  ;;  %v1256_v38 = vrot.slane %v1242_v62, %v9110_v19  ;;  %v1264_v20 = vcombine.high %v9454_v56, %v9454_v56 }
  0x5f   : > { %v7455_v48 = vsel %vm6977_vm7, %v7454_v5, %v7453_v11  ;;  %v9511_v14 = vld.sshfl [vmem:[%s9092_s7 + $0x3c] sm:$0x11 pattern:$0x75316420]  ;;  %v1286_v54 = vcombine.high %v9459_v35, %v9459_v35  ;;  %v1308_v63 = vcombine.high %v9462_v39, %v9462_v39  ;;  %v1330_v61 = vcombine.high %v9465_v44, %v9465_v44 }
  0x60   : > { %v7457_v25 = vsel %vm6980_vm8, %v7456_v27, %v7455_v48  ;;  %v9521_v0 = vld.sshfl [vmem:[%s9092_s7 + $0x3e] sm:$0x11 pattern:$0x75316420]  ;;  %v1278_v13 = vrot.slane %v1264_v20, %v9110_v19  ;;  %v1352_v32 = vcombine.high %v9472_v47, %v9472_v47  ;;  %v1374_v6 = vcombine.high %v9481_v3, %v9481_v3 }
  0x61   : > { %v7880_v9 = vpack.c.b16 %v7457_v25, %v7429_v31  ;;  %v1300_v10 = vrot.slane %v1286_v54, %v9110_v19  ;;  %v1322_v16 = vrot.slane %v1308_v63, %v9110_v19  ;;  %v1344_v17 = vrot.slane %v1330_v61, %v9110_v19  ;;  %v9559_v61 = vld.sshfl [vmem:[%s9092_s7 + $0x124] sm:$0x11 pattern:$0x75316420] }
  0x62   : > { %v1366_v29 = vrot.slane %v1352_v32, %v9110_v19  ;;  %v1388_v18 = vrot.slane %v1374_v6, %v9110_v19  ;;  %v1396_v4 = vcombine.high %v9491_v60, %v9491_v60  ;;  %v1418_v36 = vcombine.high %v9494_v2, %v9494_v2  ;;  %v9562_v25 = vld.sshfl [vmem:[%s9092_s7 + $0x126] sm:$0x11 pattern:$0x75316420] }
  0x63   : > { %8122 = vmatmul.mubr.bf16.vlgmr.msra.gmra.mrb[0].mxu1 %v7880_v9  ;;  %v1440_v37 = vcombine.high %v9501_v42, %v9501_v42  ;;  %v1462_v45 = vcombine.high %v9504_v49, %v9504_v49  ;;  %v1484_v46 = vcombine.high %v9511_v14, %v9511_v14  ;;  %v1506_v43 = vcombine.high %v9521_v0, %v9521_v0 }
  0x64   : > { %v1410_v28 = vrot.slane %v1396_v4, %v9110_v19  ;;  %v1432_v33 = vrot.slane %v1418_v36, %v9110_v19  ;;  %v6482_v15 = vunpack.c.l.b16 %v9484_v58  ;;  %v6484_v52 = vunpack.c.l.b16 %v1212_v23 }
  0x65   : > { %v1454_v22 = vrot.slane %v1440_v37, %v9110_v19  ;;  %v1476_v24 = vrot.slane %v1462_v45, %v9110_v19  ;;  %v1498_v5 = vrot.slane %v1484_v46, %v9110_v19  ;;  %v1520_v30 = vrot.slane %v1506_v43, %v9110_v19  ;;  %v9569_v45 = vld.sshfl [vmem:[%s9092_s7 + $0x128] sm:$0x11 pattern:$0x75316420] }
  0x66   : > { %v6486_v34 = vunpack.c.l.b16 %v1234_v8  ;;  %v6488_v27 = vunpack.c.l.b16 %v1256_v38  ;;  %v6490_v40 = vunpack.c.l.b16 %v1278_v13  ;;  %v6492_v41 = vunpack.c.l.b16 %v1300_v10  ;;  %v9553_v8 = vld.sshfl [vmem:[%s9092_s7 + $0x120] sm:$0x11 pattern:$0x75316420] }
  0x67   : > { %v6494_v57 = vunpack.c.l.b16 %v1322_v16  ;;  %v6496_v53 = vunpack.c.l.b16 %v1344_v17  ;;  %v6498_v50 = vunpack.c.l.b16 %v1366_v29  ;;  %v6500_v55 = vunpack.c.l.b16 %v1388_v18  ;;  %v9556_v38 = vld.sshfl [vmem:[%s9092_s7 + $0x122] sm:$0x11 pattern:$0x75316420] }
  0x68   : > { %v6502_v59 = vunpack.c.l.b16 %v1410_v28  ;;  %v6504_v58 = vunpack.c.l.b16 %v1432_v33  ;;  %v6506_v62 = vunpack.c.l.b16 %v1454_v22  ;;  %v6508_v7 = vunpack.c.l.b16 %v1476_v24  ;;  %v9572_v46 = vld.sshfl [vmem:[%s9092_s7 + $0x12a] sm:$0x11 pattern:$0x75316420] }
  0x69   : > { %v6510_v12 = vunpack.c.l.b16 %v1498_v5  ;;  %v6512_v23 = vunpack.c.l.b16 %v1520_v30  ;;  %v7038_v31 = vrot.slane %v6484_v52, 7  ;;  %v7040_v11 = vrot.slane %v6486_v34, 6  ;;  %v9575_v43 = vld.sshfl [vmem:[%s9092_s7 + $0x12c] sm:$0x11 pattern:$0x75316420] }
  0x6a   : > { %v7042_v20 = vrot.slane %v6488_v27, 5  ;;  %v7044_v48 = vrot.slane %v6490_v40, 4  ;;  %v7046_v54 = vrot.slane %v6492_v41, 3  ;;  %v7048_v63 = vrot.slane %v6494_v57, 2 }
  0x6b   : > { %v7039_v13 = vsel %vm6962_vm2, %v7038_v31, %v6482_v15  ;;  %v7050_v32 = vrot.slane %v6496_v53, 1  ;;  %v7066_v6 = vrot.slane %v6500_v55, 7  ;;  %v7068_v9 = vrot.slane %v6502_v59, 6 }
  0x6c   : > { %v7041_v10 = vsel %vm6965_vm3, %v7040_v11, %v7039_v13  ;;  %v7070_v16 = vrot.slane %v6504_v58, 5  ;;  %v7072_v17 = vrot.slane %v6506_v62, 4  ;;  %v7074_v29 = vrot.slane %v6508_v7, 3 }
  0x6d   : > { %v7043_v18 = vsel %vm6968_vm4, %v7042_v20, %v7041_v10  ;;  %v7067_v4 = vsel %vm6962_vm2, %v7066_v6, %v6498_v50  ;;  %v7076_v36 = vrot.slane %v6510_v12, 2  ;;  %v7078_v37 = vrot.slane %v6512_v23, 1  ;;  %v9580_v15 = vld.sshfl [vmem:[%s9092_s7 + $0x12e] sm:$0x11 pattern:$0x75316420] }
  0x6e   : > { %v7045_v28 = vsel %vm6971_vm5, %v7044_v48, %v7043_v18  ;;  %v7069_v33 = vsel %vm6965_vm3, %v7068_v9, %v7067_v4  ;;  %v9583_v52 = vld.sshfl [vmem:[%s9092_s7 + $0x130] sm:$0x11 pattern:$0x75316420]  ;;  %v3992_v22 = vcombine.high %v9553_v8, %v9553_v8  ;;  %v4014_v24 = vcombine.high %v9556_v38, %v9556_v38 }
  0x6f   : > { %v7047_v5 = vsel %vm6974_vm6, %v7046_v54, %v7045_v28  ;;  %v7071_v30 = vsel %vm6968_vm4, %v7070_v16, %v7069_v33  ;;  %v9592_v34 = vld.sshfl [vmem:[%s9092_s7 + $0x132] sm:$0x11 pattern:$0x75316420]  ;;  %v4036_v27 = vcombine.high %v9559_v61, %v9559_v61  ;;  %v4058_v40 = vcombine.high %v9562_v25, %v9562_v25 }
  0x70   : > { %v7049_v41 = vsel %vm6977_vm7, %v7048_v63, %v7047_v5  ;;  %v7073_v57 = vsel %vm6971_vm5, %v7072_v17, %v7071_v30  ;;  %v9601_v53 = vld.sshfl [vmem:[%s9092_s7 + $0x134] sm:$0x11 pattern:$0x75316420]  ;;  %v4006_v50 = vrot.slane %v3992_v22, %v9110_v19  ;;  %v4028_v55 = vrot.slane %v4014_v24, %v9110_v19 }
  0x71   : > { %v7051_v59 = vsel %vm6980_vm8, %v7050_v32, %v7049_v41  ;;  %v7075_v58 = vsel %vm6974_vm6, %v7074_v29, %v7073_v57  ;;  %v9608_v62 = vld.sshfl [vmem:[%s9092_s7 + $0x136] sm:$0x11 pattern:$0x75316420]  ;;  %v4050_v12 = vrot.slane %v4036_v27, %v9110_v19  ;;  %v4072_v23 = vrot.slane %v4058_v40, %v9110_v19 }
  0x72   : > { %11955 = vst [vmem:[#allocation2_spill] sm:$0xff] %v9608_v62  ;;  %v9611_v7 = vld.sshfl [vmem:[%s9092_s7 + $0x138] sm:$0x11 pattern:$0x75316420]  ;;  %v7077_v31 = vsel %vm6977_vm7, %v7076_v36, %v7075_v58  ;;  %v4080_v20 = vcombine.high %v9569_v45, %v9569_v45  ;;  %v4102_v48 = vcombine.high %v9572_v46, %v9572_v46  ;;  %v4124_v54 = vcombine.high %v9575_v43, %v9575_v43 }
  0x73   : > { %11956 = vst [vmem:[#allocation3_spill] sm:$0xff] %v9611_v7  ;;  %v9617_v11 = vld.sshfl [vmem:[%s9092_s7 + $0x13a] sm:$0x11 pattern:$0x75316420]  ;;  %v7079_v63 = vsel %vm6980_vm8, %v7078_v37, %v7077_v31  ;;  %v4146_v32 = vcombine.high %v9580_v15, %v9580_v15  ;;  %v4168_v6 = vcombine.high %v9583_v52, %v9583_v52  ;;  %v4190_v9 = vcombine.high %v9592_v34, %v9592_v34 }
  0x74   : > { %11957 = vst [vmem:[#allocation4_spill] sm:$0xff] %v9617_v11  ;;  %v9627_v13 = vld.sshfl [vmem:[%s9092_s7 + $0x13c] sm:$0x11 pattern:$0x75316420]  ;;  %v7867_v10 = vpack.c.b16 %v7079_v63, %v7051_v59  ;;  %v4094_v17 = vrot.slane %v4080_v20, %v9110_v19  ;;  %v4116_v29 = vrot.slane %v4102_v48, %v9110_v19  ;;  %v4138_v18 = vrot.slane %v4124_v54, %v9110_v19 }
  0x75   : > { %11958 = vst [vmem:[#allocation5_spill] sm:$0xff] %v9627_v13  ;;  %v9636_v16 = vld.sshfl [vmem:[%s9092_s7 + $0x13e] sm:$0x11 pattern:$0x75316420]  ;;  %v4160_v4 = vrot.slane %v4146_v32, %v9110_v19  ;;  %v4182_v36 = vrot.slane %v4168_v6, %v9110_v19  ;;  %v4204_v37 = vrot.slane %v4190_v9, %v9110_v19  ;;  %v4212_v28 = vcombine.high %v9601_v53, %v9601_v53 }
  0x76   : > { %11959 = vst [vmem:[#allocation6_spill] sm:$0xff] %v9636_v16  ;;  %8853 = vmatprep.mubr.msk.bf16.mxu0 %vm7969_vm9, %v7867_v10  ;;  %v4234_v33 = vcombine.high %v9608_v62, %v9608_v62  ;;  %v4256_v22 = vcombine.high %v9611_v7, %v9611_v7  ;;  %v4278_v24 = vcombine.high %v9617_v11, %v9617_v11  ;;  %v6738_v40 = vunpack.c.l.b16 %v4006_v50 }
  0x77   : > { %v4300_v5 = vcombine.high %v9627_v13, %v9627_v13  ;;  %v4226_v30 = vrot.slane %v4212_v28, %v9110_v19  ;;  %v4322_v27 = vcombine.high %v9636_v16, %v9636_v16  ;;  %v6740_v41 = vunpack.c.l.b16 %v4028_v55 }
  0x78   : > { %v4248_v57 = vrot.slane %v4234_v33, %v9110_v19  ;;  %v4270_v59 = vrot.slane %v4256_v22, %v9110_v19  ;;  %v4292_v58 = vrot.slane %v4278_v24, %v9110_v19  ;;  %v6742_v48 = vunpack.c.l.b16 %v4050_v12 }
  0x79   : > { %v4314_v31 = vrot.slane %v4300_v5, %v9110_v19  ;;  %v4336_v20 = vrot.slane %v4322_v27, %v9110_v19  ;;  %v6744_v54 = vunpack.c.l.b16 %v4072_v23  ;;  %v6746_v63 = vunpack.c.l.b16 %v4094_v17 }
  0x7a   : > { %v6748_v32 = vunpack.c.l.b16 %v4116_v29  ;;  %v6750_v6 = vunpack.c.l.b16 %v4138_v18  ;;  %v6752_v9 = vunpack.c.l.b16 %v4160_v4  ;;  %v6754_v10 = vunpack.c.l.b16 %v4182_v36 }
  0x7b   : > { %v6756_v28 = vunpack.c.l.b16 %v4204_v37  ;;  %v6758_v50 = vunpack.c.l.b16 %v4226_v30  ;;  %v6760_v55 = vunpack.c.l.b16 %v4248_v57  ;;  %v6762_v16 = vunpack.c.l.b16 %v4270_v59 }
  0x7c   : > { %v6764_v33 = vunpack.c.l.b16 %v4292_v58  ;;  %v6766_v13 = vunpack.c.l.b16 %v4314_v31  ;;  %v6768_v22 = vunpack.c.l.b16 %v4336_v20  ;;  %v7486_v11 = vrot.slane %v6740_v41, 7 }
  0x7d   : > { %v7488_v24 = vrot.slane %v6742_v48, 6  ;;  %v7490_v7 = vrot.slane %v6744_v54, 5  ;;  %v7492_v5 = vrot.slane %v6746_v63, 4  ;;  %v7494_v62 = vrot.slane %v6748_v32, 3 }
  0x7e   : > { %v7487_v12 = vsel %vm6962_vm2, %v7486_v11, %v6738_v40  ;;  %v7496_v23 = vrot.slane %v6750_v6, 2  ;;  %v7498_v17 = vrot.slane %v6752_v9, 1  ;;  %v7514_v29 = vrot.slane %v6756_v28, 7 }
  0x7f   : > { %v7489_v18 = vsel %vm6965_vm3, %v7488_v24, %v7487_v12  ;;  %v7516_v4 = vrot.slane %v6758_v50, 6  ;;  %v7518_v36 = vrot.slane %v6760_v55, 5  ;;  %v7520_v37 = vrot.slane %v6762_v16, 4 }
  0x80   : > { %v7491_v30 = vsel %vm6968_vm4, %v7490_v7, %v7489_v18  ;;  %v7515_v27 = vsel %vm6962_vm2, %v7514_v29, %v6754_v10  ;;  %v7522_v57 = vrot.slane %v6764_v33, 3  ;;  %v7524_v41 = vrot.slane %v6766_v13, 2 }
  0x81   : > { %v7493_v59 = vsel %vm6971_vm5, %v7492_v5, %v7491_v30  ;;  %v7517_v58 = vsel %vm6965_vm3, %v7516_v4, %v7515_v27  ;;  %v7526_v31 = vrot.slane %v6768_v22, 1  ;;  %v1183_v11 = vrot.slane %v9440_v21, %v9110_v19 }
  0x82   : > { %v7495_v40 = vsel %vm6974_vm6, %v7494_v62, %v7493_v59  ;;  %v7519_v20 = vsel %vm6968_vm4, %v7518_v36, %v7517_v58  ;;  %v1205_v16 = vrot.slane %v9443_v26, %v9110_v19  ;;  %v1227_v7 = vrot.slane %v9446_v1, %v9110_v19 }
  0x83   : > { %v7497_v13 = vsel %vm6977_vm7, %v7496_v23, %v7495_v40  ;;  %v7521_v48 = vsel %vm6971_vm5, %v7520_v37, %v7519_v20  ;;  %v1249_v54 = vrot.slane %v9449_v51, %v9110_v19  ;;  %v1271_v21 = vrot.slane %v9454_v56, %v9110_v19 }
  0x84   : > { %v7499_v62 = vsel %vm6980_vm8, %v7498_v17, %v7497_v13  ;;  %v7523_v63 = vsel %vm6974_vm6, %v7522_v57, %v7521_v48  ;;  %v1293_v26 = vrot.slane %v9459_v35, %v9110_v19  ;;  %v1315_v1 = vrot.slane %v9462_v39, %v9110_v19 }
  0x85   : > { %v7525_v32 = vsel %vm6977_vm7, %v7524_v41, %v7523_v63  ;;  %v1337_v6 = vrot.slane %v9465_v44, %v9110_v19  ;;  %v1359_v51 = vrot.slane %v9472_v47, %v9110_v19  ;;  %v1381_v56 = vrot.slane %v9481_v3, %v9110_v19 }
  0x86   : > { %v7527_v9 = vsel %vm6980_vm8, %v7526_v31, %v7525_v32  ;;  %v1403_v10 = vrot.slane %v9491_v60, %v9110_v19  ;;  %v1425_v35 = vrot.slane %v9494_v2, %v9110_v19  ;;  %v1447_v39 = vrot.slane %v9501_v42, %v9110_v19 }
  0x87   : > { %v7883_v28 = vpack.c.b16 %v7527_v9, %v7499_v62  ;;  %v1469_v44 = vrot.slane %v9504_v49, %v9110_v19  ;;  %v1491_v47 = vrot.slane %v9511_v14, %v9110_v19  ;;  %v1513_v3 = vrot.slane %v9521_v0, %v9110_v19 }
  0x88   : > { %v6481_v50 = vunpack.c.l.b16 %v1183_v11  ;;  %v6483_v55 = vunpack.c.l.b16 %v1205_v16  ;;  %v6485_v33 = vunpack.c.l.b16 %v1227_v7  ;;  %v6487_v60 = vunpack.c.l.b16 %v1249_v54 }
  0x89   : > { %8861 = vmatprep.mubr.msk.bf16.mxu1 %vm7969_vm9, %v7883_v28  ;;  %v6489_v2 = vunpack.c.l.b16 %v1271_v21  ;;  %v6491_v22 = vunpack.c.l.b16 %v1293_v26  ;;  %v6493_v24 = vunpack.c.l.b16 %v1315_v1  ;;  %v6495_v42 = vunpack.c.l.b16 %v1337_v6 }
  0x8a   : > { %v6497_v5 = vunpack.c.l.b16 %v1359_v51  ;;  %v6499_v12 = vunpack.c.l.b16 %v1381_v56  ;;  %v6501_v23 = vunpack.c.l.b16 %v1403_v10  ;;  %v6503_v49 = vunpack.c.l.b16 %v1425_v35 }
  0x8b   : > { %v6505_v17 = vunpack.c.l.b16 %v1447_v39  ;;  %v6507_v29 = vunpack.c.l.b16 %v1469_v44  ;;  %v6509_v14 = vunpack.c.l.b16 %v1491_v47  ;;  %v6511_v18 = vunpack.c.l.b16 %v1513_v3  ;;  %v11961_v3 = vld [vmem:[#allocation3_spill] sm:$0xff] }
  0x8c   : > { %v7024_v4 = vrot.slane %v6483_v55, 7  ;;  %v7026_v0 = vrot.slane %v6485_v33, 6  ;;  %v7028_v36 = vrot.slane %v6487_v60, 5  ;;  %v7030_v37 = vrot.slane %v6489_v2, 4  ;;  %v11964_v60 = vld [vmem:[#allocation6_spill] sm:$0xff] }
  0x8d   : > { %v7032_v30 = vrot.slane %v6491_v22, 3  ;;  %v7034_v27 = vrot.slane %v6493_v24, 2  ;;  %v7036_v57 = vrot.slane %v6495_v42, 1  ;;  %v7052_v41 = vrot.slane %v6499_v12, 7 }
  0x8e   : > { %v7025_v59 = vsel %vm6962_vm2, %v7024_v4, %v6481_v50  ;;  %v7054_v58 = vrot.slane %v6501_v23, 6  ;;  %v7056_v31 = vrot.slane %v6503_v49, 5  ;;  %v7058_v11 = vrot.slane %v6505_v17, 4 }
  0x8f   : > { %v7027_v40 = vsel %vm6965_vm3, %v7026_v0, %v7025_v59  ;;  %v7053_v20 = vsel %vm6962_vm2, %v7052_v41, %v6497_v5  ;;  %v7060_v16 = vrot.slane %v6507_v29, 3  ;;  %v7062_v7 = vrot.slane %v6509_v14, 2  ;;  %v9760_v41 = vld.sshfl [vmem:[%s9092_s7 + $0x42] sm:$0x11 pattern:$0x75316420] }
  0x90   : > { %v7029_v13 = vsel %vm6968_vm4, %v7028_v36, %v7027_v40  ;;  %v7055_v48 = vsel %vm6965_vm3, %v7054_v58, %v7053_v20  ;;  %v7064_v54 = vrot.slane %v6511_v18, 1  ;;  %v3999_v21 = vrot.slane %v9553_v8, %v9110_v19  ;;  %v9757_v36 = vld.sshfl [vmem:[%s9092_s7 + $0x40] sm:$0x11 pattern:$0x75316420] }
  0x91   : > { %v7031_v62 = vsel %vm6971_vm5, %v7030_v37, %v7029_v13  ;;  %v7057_v63 = vsel %vm6968_vm4, %v7056_v31, %v7055_v48  ;;  %v4021_v26 = vrot.slane %v9556_v38, %v9110_v19  ;;  %v4043_v1 = vrot.slane %v9559_v61, %v9110_v19  ;;  %v9763_v59 = vld.sshfl [vmem:[%s9092_s7 + $0x44] sm:$0x11 pattern:$0x75316420] }
  0x92   : > { %v7033_v32 = vsel %vm6974_vm6, %v7032_v30, %v7031_v62  ;;  %v7059_v6 = vsel %vm6971_vm5, %v7058_v11, %v7057_v63  ;;  %v4065_v51 = vrot.slane %v9562_v25, %v9110_v19  ;;  %v4087_v8 = vrot.slane %v9569_v45, %v9110_v19  ;;  %v9766_v20 = vld.sshfl [vmem:[%s9092_s7 + $0x46] sm:$0x11 pattern:$0x75316420] }
  0x93   : > { %v7035_v56 = vsel %vm6977_vm7, %v7034_v27, %v7033_v32  ;;  %v7061_v9 = vsel %vm6974_vm6, %v7060_v16, %v7059_v6  ;;  %v4109_v38 = vrot.slane %v9572_v46, %v9110_v19  ;;  %v4131_v61 = vrot.slane %v9575_v43, %v9110_v19  ;;  %v11960_v43 = vld [vmem:[#allocation2_spill] sm:$0xff] }
  0x94   : > { %v7037_v10 = vsel %vm6980_vm8, %v7036_v57, %v7035_v56  ;;  %v7063_v35 = vsel %vm6977_vm7, %v7062_v7, %v7061_v9  ;;  %v4153_v25 = vrot.slane %v9580_v15, %v9110_v19  ;;  %v4175_v45 = vrot.slane %v9583_v52, %v9110_v19  ;;  %v11962_v15 = vld [vmem:[#allocation4_spill] sm:$0xff]  ;;  %v11963_v52 = vld [vmem:[#allocation5_spill] sm:$0xff]  ;;  %v9782_v56 = vld.sshfl [vmem:[%s9092_s7 + $0x4e] sm:$0x11 pattern:$0x75316420] }
  0x95   : > { %v7065_v39 = vsel %vm6980_vm8, %v7064_v54, %v7063_v35  ;;  %v4197_v28 = vrot.slane %v9592_v34, %v9110_v19  ;;  %v4219_v46 = vrot.slane %v9601_v53, %v9110_v19  ;;  %v4241_v44 = vrot.slane %v11960_v43, %v9110_v19 }
  0x96   : > { %v7866_v47 = vpack.c.b16 %v7065_v39, %v7037_v10  ;;  %v4263_v50 = vrot.slane %v11961_v3, %v9110_v19  ;;  %v4285_v55 = vrot.slane %v11962_v15, %v9110_v19  ;;  %v4307_v33 = vrot.slane %v11963_v52, %v9110_v19  ;;  %v9789_v10 = vld.sshfl [vmem:[%s9092_s7 + $0x50] sm:$0x11 pattern:$0x75316420] }
  0x97   : > { %v4329_v2 = vrot.slane %v11964_v60, %v9110_v19  ;;  %v6737_v34 = vunpack.c.l.b16 %v3999_v21  ;;  %v6739_v22 = vunpack.c.l.b16 %v4021_v26  ;;  %v6741_v53 = vunpack.c.l.b16 %v4043_v1  ;;  %v9771_v26 = vld.sshfl [vmem:[%s9092_s7 + $0x48] sm:$0x11 pattern:$0x75316420] }
  0x98   : > { %8066 = vmatmul.mubr.bf16.gmra.mrb[4].mxu0 %v7866_v47  ;;  %v6743_v24 = vunpack.c.l.b16 %v4065_v51  ;;  %v6745_v42 = vunpack.c.l.b16 %v4087_v8  ;;  %v6747_v5 = vunpack.c.l.b16 %v4109_v38  ;;  %v6749_v12 = vunpack.c.l.b16 %v4131_v61  ;;  %v9776_v51 = vld.sshfl [vmem:[%s9092_s7 + $0x4a] sm:$0x11 pattern:$0x75316420] }
  0x99   : > { %v6751_v23 = vunpack.c.l.b16 %v4153_v25  ;;  %v6753_v49 = vunpack.c.l.b16 %v4175_v45  ;;  %v6755_v17 = vunpack.c.l.b16 %v4197_v28  ;;  %v6757_v29 = vunpack.c.l.b16 %v4219_v46  ;;  %v9779_v8 = vld.sshfl [vmem:[%s9092_s7 + $0x4c] sm:$0x11 pattern:$0x75316420] }
  0x9a   : > { %v6759_v14 = vunpack.c.l.b16 %v4241_v44  ;;  %v6761_v18 = vunpack.c.l.b16 %v4263_v50  ;;  %v6763_v4 = vunpack.c.l.b16 %v4285_v55  ;;  %v6765_v0 = vunpack.c.l.b16 %v4307_v33  ;;  %v9798_v28 = vld.sshfl [vmem:[%s9092_s7 + $0x52] sm:$0x11 pattern:$0x75316420] }
  0x9b   : > { %v6767_v37 = vunpack.c.l.b16 %v4329_v2  ;;  %v7472_v30 = vrot.slane %v6739_v22, 7  ;;  %v7474_v27 = vrot.slane %v6741_v53, 6  ;;  %v7476_v57 = vrot.slane %v6743_v24, 5 }
  0x9c   : > { %v7478_v58 = vrot.slane %v6745_v42, 4  ;;  %v7480_v31 = vrot.slane %v6747_v5, 3  ;;  %v7482_v11 = vrot.slane %v6749_v12, 2  ;;  %v7484_v40 = vrot.slane %v6751_v23, 1 }
  0x9d   : > { %v7473_v16 = vsel %vm6962_vm2, %v7472_v30, %v6737_v34  ;;  %v7500_v7 = vrot.slane %v6755_v17, 7  ;;  %v7502_v13 = vrot.slane %v6757_v29, 6  ;;  %v7504_v48 = vrot.slane %v6759_v14, 5 }
  0x9e   : > { %v7475_v54 = vsel %vm6965_vm3, %v7474_v27, %v7473_v16  ;;  %v7506_v21 = vrot.slane %v6761_v18, 4  ;;  %v7508_v62 = vrot.slane %v6763_v4, 3  ;;  %v7510_v63 = vrot.slane %v6765_v0, 2 }
  0x9f   : > { %v7477_v1 = vsel %vm6968_vm4, %v7476_v57, %v7475_v54  ;;  %v7501_v32 = vsel %vm6962_vm2, %v7500_v7, %v6753_v49  ;;  %v7512_v6 = vrot.slane %v6767_v37, 1  ;;  %v1528_v9 = vcombine.high %v9757_v36, %v9757_v36  ;;  %v9808_v3 = vld.sshfl [vmem:[%s9092_s7 + $0x54] sm:$0x11 pattern:$0x75316420] }
  0xa0   : > { %v7479_v38 = vsel %vm6971_vm5, %v7478_v58, %v7477_v1  ;;  %v7503_v61 = vsel %vm6965_vm3, %v7502_v13, %v7501_v32  ;;  %v1550_v35 = vcombine.high %v9760_v41, %v9760_v41  ;;  %v1572_v25 = vcombine.high %v9763_v59, %v9763_v59  ;;  %v9811_v50 = vld.sshfl [vmem:[%s9092_s7 + $0x56] sm:$0x11 pattern:$0x75316420] }
  0xa1   : > { %v7481_v45 = vsel %vm6974_vm6, %v7480_v31, %v7479_v38  ;;  %v7505_v39 = vsel %vm6968_vm4, %v7504_v48, %v7503_v61  ;;  %v9801_v46 = vrot.slane %v1528_v9, %v9110_v19  ;;  %v1594_v43 = vcombine.high %v9766_v20, %v9766_v20  ;;  %v9818_v60 = vld.sshfl [vmem:[%s9092_s7 + $0x58] sm:$0x11 pattern:$0x75316420] }
  0xa2   : > { %v7483_v44 = vsel %vm6977_vm7, %v7482_v11, %v7481_v45  ;;  %v7507_v47 = vsel %vm6971_vm5, %v7506_v21, %v7505_v39  ;;  %v1564_v15 = vrot.slane %v1550_v35, %v9110_v19  ;;  %v1586_v55 = vrot.slane %v1572_v25, %v9110_v19  ;;  %v9821_v2 = vld.sshfl [vmem:[%s9092_s7 + $0x5a] sm:$0x11 pattern:$0x75316420] }
  0xa3   : > { %v7485_v52 = vsel %vm6980_vm8, %v7484_v40, %v7483_v44  ;;  %v7509_v33 = vsel %vm6974_vm6, %v7508_v62, %v7507_v47  ;;  %v1608_v34 = vrot.slane %v1594_v43, %v9110_v19  ;;  %v1616_v22 = vcombine.high %v9771_v26, %v9771_v26  ;;  %v9828_v24 = vld.sshfl [vmem:[%s9092_s7 + $0x5c] sm:$0x11 pattern:$0x75316420] }
  0xa4   : > { %v7511_v53 = vsel %vm6977_vm7, %v7510_v63, %v7509_v33  ;;  %v1638_v42 = vcombine.high %v9776_v51, %v9776_v51  ;;  %v1660_v5 = vcombine.high %v9779_v8, %v9779_v8  ;;  %v1682_v12 = vcombine.high %v9782_v56, %v9782_v56  ;;  %v9838_v49 = vld.sshfl [vmem:[%s9092_s7 + $0x5e] sm:$0x11 pattern:$0x75316420] }
  0xa5   : > { %v7513_v23 = vsel %vm6980_vm8, %v7512_v6, %v7511_v53  ;;  %v1630_v17 = vrot.slane %v1616_v22, %v9110_v19  ;;  %v1704_v29 = vcombine.high %v9789_v10, %v9789_v10  ;;  %v1726_v14 = vcombine.high %v9798_v28, %v9798_v28 }
  0xa6   : > { %v7882_v18 = vpack.c.b16 %v7513_v23, %v7485_v52  ;;  %v1652_v4 = vrot.slane %v1638_v42, %v9110_v19  ;;  %v1674_v0 = vrot.slane %v1660_v5, %v9110_v19  ;;  %v1696_v37 = vrot.slane %v1682_v12, %v9110_v19  ;;  %v9876_v12 = vld.sshfl [vmem:[%s9092_s7 + $0x144] sm:$0x11 pattern:$0x75316420] }
  0xa7   : > { %v1718_v30 = vrot.slane %v1704_v29, %v9110_v19  ;;  %v1740_v27 = vrot.slane %v1726_v14, %v9110_v19  ;;  %v1748_v57 = vcombine.high %v9808_v3, %v9808_v3  ;;  %v1770_v58 = vcombine.high %v9811_v50, %v9811_v50  ;;  %v9879_v23 = vld.sshfl [vmem:[%s9092_s7 + $0x146] sm:$0x11 pattern:$0x75316420] }
  0xa8   : > { %8130 = vmatmul.mubr.bf16.gmra.mrb[4].mxu1 %v7882_v18  ;;  %v1792_v31 = vcombine.high %v9818_v60, %v9818_v60  ;;  %v1814_v11 = vcombine.high %v9821_v2, %v9821_v2  ;;  %v1836_v40 = vcombine.high %v9828_v24, %v9828_v24  ;;  %v1858_v16 = vcombine.high %v9838_v49, %v9838_v49 }
  0xa9   : > { %v1762_v7 = vrot.slane %v1748_v57, %v9110_v19  ;;  %v1784_v13 = vrot.slane %v1770_v58, %v9110_v19  ;;  %v6514_v48 = vunpack.c.l.b16 %v9801_v46  ;;  %v6516_v54 = vunpack.c.l.b16 %v1564_v15 }
  0xaa   : > { %v1806_v21 = vrot.slane %v1792_v31, %v9110_v19  ;;  %v1828_v62 = vrot.slane %v1814_v11, %v9110_v19  ;;  %v1850_v63 = vrot.slane %v1836_v40, %v9110_v19  ;;  %v1872_v1 = vrot.slane %v1858_v16, %v9110_v19  ;;  %v9886_v11 = vld.sshfl [vmem:[%s9092_s7 + $0x148] sm:$0x11 pattern:$0x75316420] }
  0xab   : > { %v6518_v32 = vunpack.c.l.b16 %v1586_v55  ;;  %v6520_v6 = vunpack.c.l.b16 %v1608_v34  ;;  %v6522_v9 = vunpack.c.l.b16 %v1630_v17  ;;  %v6524_v38 = vunpack.c.l.b16 %v1652_v4  ;;  %v9870_v55 = vld.sshfl [vmem:[%s9092_s7 + $0x140] sm:$0x11 pattern:$0x75316420] }
  0xac   : > { %v6526_v61 = vunpack.c.l.b16 %v1674_v0  ;;  %v6528_v35 = vunpack.c.l.b16 %v1696_v37  ;;  %v6530_v25 = vunpack.c.l.b16 %v1718_v30  ;;  %v6532_v45 = vunpack.c.l.b16 %v1740_v27  ;;  %v9873_v34 = vld.sshfl [vmem:[%s9092_s7 + $0x142] sm:$0x11 pattern:$0x75316420] }
  0xad   : > { %v6534_v39 = vunpack.c.l.b16 %v1762_v7  ;;  %v6536_v46 = vunpack.c.l.b16 %v1784_v13  ;;  %v6538_v43 = vunpack.c.l.b16 %v1806_v21  ;;  %v6540_v44 = vunpack.c.l.b16 %v1828_v62  ;;  %v9889_v40 = vld.sshfl [vmem:[%s9092_s7 + $0x14a] sm:$0x11 pattern:$0x75316420] }
  0xae   : > { %v6542_v47 = vunpack.c.l.b16 %v1850_v63  ;;  %v6544_v15 = vunpack.c.l.b16 %v1872_v1  ;;  %v7094_v52 = vrot.slane %v6516_v54, 7  ;;  %v7096_v33 = vrot.slane %v6518_v32, 6  ;;  %v9892_v16 = vld.sshfl [vmem:[%s9092_s7 + $0x14c] sm:$0x11 pattern:$0x75316420] }
  0xaf   : > { %v7098_v22 = vrot.slane %v6520_v6, 5  ;;  %v7100_v53 = vrot.slane %v6522_v9, 4  ;;  %v7102_v42 = vrot.slane %v6524_v38, 3  ;;  %v7104_v5 = vrot.slane %v6526_v61, 2 }
  0xb0   : > { %v7095_v17 = vsel %vm6962_vm2, %v7094_v52, %v6514_v48  ;;  %v7106_v29 = vrot.slane %v6528_v35, 1  ;;  %v7122_v14 = vrot.slane %v6532_v45, 7  ;;  %v7124_v18 = vrot.slane %v6534_v39, 6 }
  0xb1   : > { %v7097_v4 = vsel %vm6965_vm3, %v7096_v33, %v7095_v17  ;;  %v7126_v0 = vrot.slane %v6536_v46, 5  ;;  %v7128_v37 = vrot.slane %v6538_v43, 4  ;;  %v7130_v30 = vrot.slane %v6540_v44, 3 }
  0xb2   : > { %v7099_v27 = vsel %vm6968_vm4, %v7098_v22, %v7097_v4  ;;  %v7123_v57 = vsel %vm6962_vm2, %v7122_v14, %v6530_v25  ;;  %v7132_v58 = vrot.slane %v6542_v47, 2  ;;  %v7134_v31 = vrot.slane %v6544_v15, 1  ;;  %v9897_v48 = vld.sshfl [vmem:[%s9092_s7 + $0x14e] sm:$0x11 pattern:$0x75316420] }
  0xb3   : > { %v7101_v7 = vsel %vm6971_vm5, %v7100_v53, %v7099_v27  ;;  %v7125_v13 = vsel %vm6965_vm3, %v7124_v18, %v7123_v57  ;;  %v9900_v54 = vld.sshfl [vmem:[%s9092_s7 + $0x150] sm:$0x11 pattern:$0x75316420]  ;;  %v4344_v21 = vcombine.high %v9870_v55, %v9870_v55  ;;  %v4366_v62 = vcombine.high %v9873_v34, %v9873_v34 }
  0xb4   : > { %v7103_v63 = vsel %vm6974_vm6, %v7102_v42, %v7101_v7  ;;  %v7127_v1 = vsel %vm6968_vm4, %v7126_v0, %v7125_v13  ;;  %v9909_v32 = vld.sshfl [vmem:[%s9092_s7 + $0x152] sm:$0x11 pattern:$0x75316420]  ;;  %v4388_v6 = vcombine.high %v9876_v12, %v9876_v12  ;;  %v4410_v9 = vcombine.high %v9879_v23, %v9879_v23 }
  0xb5   : > { %v7105_v38 = vsel %vm6977_vm7, %v7104_v5, %v7103_v63  ;;  %v7129_v61 = vsel %vm6971_vm5, %v7128_v37, %v7127_v1  ;;  %v9918_v35 = vld.sshfl [vmem:[%s9092_s7 + $0x154] sm:$0x11 pattern:$0x75316420]  ;;  %v4358_v25 = vrot.slane %v4344_v21, %v9110_v19  ;;  %v4380_v45 = vrot.slane %v4366_v62, %v9110_v19 }
  0xb6   : > { %v7107_v39 = vsel %vm6980_vm8, %v7106_v29, %v7105_v38  ;;  %v7131_v46 = vsel %vm6974_vm6, %v7130_v30, %v7129_v61  ;;  %v9925_v43 = vld.sshfl [vmem:[%s9092_s7 + $0x156] sm:$0x11 pattern:$0x75316420]  ;;  %v4402_v47 = vrot.slane %v4388_v6, %v9110_v19  ;;  %v4424_v15 = vrot.slane %v4410_v9, %v9110_v19 }
  0xb7   : > { %11965 = vst [vmem:[#allocation2_spill] sm:$0xff] %v9925_v43  ;;  %v9928_v44 = vld.sshfl [vmem:[%s9092_s7 + $0x158] sm:$0x11 pattern:$0x75316420]  ;;  %v7133_v52 = vsel %vm6977_vm7, %v7132_v58, %v7131_v46  ;;  %v4432_v22 = vcombine.high %v9886_v11, %v9886_v11  ;;  %v4454_v53 = vcombine.high %v9889_v40, %v9889_v40  ;;  %v4476_v42 = vcombine.high %v9892_v16, %v9892_v16 }
  0xb8   : > { %11966 = vst [vmem:[#allocation3_spill] sm:$0xff] %v9928_v44  ;;  %v9934_v33 = vld.sshfl [vmem:[%s9092_s7 + $0x15a] sm:$0x11 pattern:$0x75316420]  ;;  %v7135_v5 = vsel %vm6980_vm8, %v7134_v31, %v7133_v52  ;;  %v4498_v29 = vcombine.high %v9897_v48, %v9897_v48  ;;  %v4520_v14 = vcombine.high %v9900_v54, %v9900_v54  ;;  %v4542_v18 = vcombine.high %v9909_v32, %v9909_v32 }
  0xb9   : > { %11967 = vst [vmem:[#allocation4_spill] sm:$0xff] %v9934_v33  ;;  %v9944_v17 = vld.sshfl [vmem:[%s9092_s7 + $0x15c] sm:$0x11 pattern:$0x75316420]  ;;  %v7869_v4 = vpack.c.b16 %v7135_v5, %v7107_v39  ;;  %v4446_v37 = vrot.slane %v4432_v22, %v9110_v19  ;;  %v4468_v30 = vrot.slane %v4454_v53, %v9110_v19  ;;  %v4490_v27 = vrot.slane %v4476_v42, %v9110_v19 }
  0xba   : > { %11968 = vst [vmem:[#allocation5_spill] sm:$0xff] %v9944_v17  ;;  %v9953_v0 = vld.sshfl [vmem:[%s9092_s7 + $0x15e] sm:$0x11 pattern:$0x75316420]  ;;  %v4512_v57 = vrot.slane %v4498_v29, %v9110_v19  ;;  %v4534_v58 = vrot.slane %v4520_v14, %v9110_v19  ;;  %v4556_v31 = vrot.slane %v4542_v18, %v9110_v19  ;;  %v4564_v7 = vcombine.high %v9918_v35, %v9918_v35 }
  0xbb   : > { %11969 = vst [vmem:[#allocation6_spill] sm:$0xff] %v9953_v0  ;;  %8854 = vmatprep.mubr.msk.bf16.mxu0 %vm7969_vm9, %v7869_v4  ;;  %v4586_v13 = vcombine.high %v9925_v43, %v9925_v43  ;;  %v4608_v21 = vcombine.high %v9928_v44, %v9928_v44  ;;  %v4630_v62 = vcombine.high %v9934_v33, %v9934_v33  ;;  %v6770_v9 = vunpack.c.l.b16 %v4358_v25 }
  0xbc   : > { %v4652_v63 = vcombine.high %v9944_v17, %v9944_v17  ;;  %v4578_v1 = vrot.slane %v4564_v7, %v9110_v19  ;;  %v4674_v6 = vcombine.high %v9953_v0, %v9953_v0  ;;  %v6772_v38 = vunpack.c.l.b16 %v4380_v45 }
  0xbd   : > { %v4600_v61 = vrot.slane %v4586_v13, %v9110_v19  ;;  %v4622_v39 = vrot.slane %v4608_v21, %v9110_v19  ;;  %v4644_v46 = vrot.slane %v4630_v62, %v9110_v19  ;;  %v6774_v53 = vunpack.c.l.b16 %v4402_v47 }
  0xbe   : > { %v4666_v52 = vrot.slane %v4652_v63, %v9110_v19  ;;  %v4688_v22 = vrot.slane %v4674_v6, %v9110_v19  ;;  %v6776_v42 = vunpack.c.l.b16 %v4424_v15  ;;  %v6778_v5 = vunpack.c.l.b16 %v4446_v37 }
  0xbf   : > { %v6780_v29 = vunpack.c.l.b16 %v4468_v30  ;;  %v6782_v14 = vunpack.c.l.b16 %v4490_v27  ;;  %v6784_v18 = vunpack.c.l.b16 %v4512_v57  ;;  %v6786_v4 = vunpack.c.l.b16 %v4534_v58 }
  0xc0   : > { %v6788_v7 = vunpack.c.l.b16 %v4556_v31  ;;  %v6790_v25 = vunpack.c.l.b16 %v4578_v1  ;;  %v6792_v45 = vunpack.c.l.b16 %v4600_v61  ;;  %v6794_v0 = vunpack.c.l.b16 %v4622_v39 }
  0xc1   : > { %v6796_v13 = vunpack.c.l.b16 %v4644_v46  ;;  %v6798_v17 = vunpack.c.l.b16 %v4666_v52  ;;  %v6800_v21 = vunpack.c.l.b16 %v4688_v22  ;;  %v7542_v33 = vrot.slane %v6772_v38, 7 }
  0xc2   : > { %v7544_v62 = vrot.slane %v6774_v53, 6  ;;  %v7546_v44 = vrot.slane %v6776_v42, 5  ;;  %v7548_v63 = vrot.slane %v6778_v5, 4  ;;  %v7550_v43 = vrot.slane %v6780_v29, 3 }
  0xc3   : > { %v7543_v47 = vsel %vm6962_vm2, %v7542_v33, %v6770_v9  ;;  %v7552_v15 = vrot.slane %v6782_v14, 2  ;;  %v7554_v37 = vrot.slane %v6784_v18, 1  ;;  %v7570_v30 = vrot.slane %v6788_v7, 7 }
  0xc4   : > { %v7545_v27 = vsel %vm6965_vm3, %v7544_v62, %v7543_v47  ;;  %v7572_v57 = vrot.slane %v6790_v25, 6  ;;  %v7574_v58 = vrot.slane %v6792_v45, 5  ;;  %v7576_v31 = vrot.slane %v6794_v0, 4 }
  0xc5   : > { %v7547_v1 = vsel %vm6968_vm4, %v7546_v44, %v7545_v27  ;;  %v7571_v6 = vsel %vm6962_vm2, %v7570_v30, %v6786_v4  ;;  %v7578_v61 = vrot.slane %v6796_v13, 3  ;;  %v7580_v38 = vrot.slane %v6798_v17, 2 }
  0xc6   : > { %v7549_v39 = vsel %vm6971_vm5, %v7548_v63, %v7547_v1  ;;  %v7573_v46 = vsel %vm6965_vm3, %v7572_v57, %v7571_v6  ;;  %v7582_v52 = vrot.slane %v6800_v21, 1  ;;  %v1535_v33 = vrot.slane %v9757_v36, %v9110_v19 }
  0xc7   : > { %v7551_v9 = vsel %vm6974_vm6, %v7550_v43, %v7549_v39  ;;  %v7575_v22 = vsel %vm6968_vm4, %v7574_v58, %v7573_v46  ;;  %v1557_v0 = vrot.slane %v9760_v41, %v9110_v19  ;;  %v1579_v44 = vrot.slane %v9763_v59, %v9110_v19 }
  0xc8   : > { %v7553_v17 = vsel %vm6977_vm7, %v7552_v15, %v7551_v9  ;;  %v7577_v53 = vsel %vm6971_vm5, %v7576_v31, %v7575_v22  ;;  %v1601_v42 = vrot.slane %v9766_v20, %v9110_v19  ;;  %v1623_v36 = vrot.slane %v9771_v26, %v9110_v19 }
  0xc9   : > { %v7555_v43 = vsel %vm6980_vm8, %v7554_v37, %v7553_v17  ;;  %v7579_v5 = vsel %vm6974_vm6, %v7578_v61, %v7577_v53  ;;  %v1645_v41 = vrot.slane %v9776_v51, %v9110_v19  ;;  %v1667_v59 = vrot.slane %v9779_v8, %v9110_v19 }
  0xca   : > { %v7581_v29 = vsel %vm6977_vm7, %v7580_v38, %v7579_v5  ;;  %v1689_v14 = vrot.slane %v9782_v56, %v9110_v19  ;;  %v1711_v20 = vrot.slane %v9789_v10, %v9110_v19  ;;  %v1733_v26 = vrot.slane %v9798_v28, %v9110_v19 }
  0xcb   : > { %v7583_v18 = vsel %vm6980_vm8, %v7582_v52, %v7581_v29  ;;  %v1755_v4 = vrot.slane %v9808_v3, %v9110_v19  ;;  %v1777_v51 = vrot.slane %v9811_v50, %v9110_v19  ;;  %v1799_v8 = vrot.slane %v9818_v60, %v9110_v19 }
  0xcc   : > { %v7885_v7 = vpack.c.b16 %v7583_v18, %v7555_v43  ;;  %v1821_v56 = vrot.slane %v9821_v2, %v9110_v19  ;;  %v1843_v10 = vrot.slane %v9828_v24, %v9110_v19  ;;  %v1865_v28 = vrot.slane %v9838_v49, %v9110_v19 }
  0xcd   : > { %v6513_v25 = vunpack.c.l.b16 %v1535_v33  ;;  %v6515_v45 = vunpack.c.l.b16 %v1557_v0  ;;  %v6517_v13 = vunpack.c.l.b16 %v1579_v44  ;;  %v6519_v3 = vunpack.c.l.b16 %v1601_v42 }
  0xce   : > { %8862 = vmatprep.mubr.msk.bf16.mxu1 %vm7969_vm9, %v7885_v7  ;;  %v6521_v50 = vunpack.c.l.b16 %v1623_v36  ;;  %v6523_v21 = vunpack.c.l.b16 %v1645_v41  ;;  %v6525_v62 = vunpack.c.l.b16 %v1667_v59  ;;  %v6527_v60 = vunpack.c.l.b16 %v1689_v14 }
  0xcf   : > { %v6529_v63 = vunpack.c.l.b16 %v1711_v20  ;;  %v6531_v47 = vunpack.c.l.b16 %v1733_v26  ;;  %v6533_v15 = vunpack.c.l.b16 %v1755_v4  ;;  %v6535_v2 = vunpack.c.l.b16 %v1777_v51 }
  0xd0   : > { %v6537_v37 = vunpack.c.l.b16 %v1799_v8  ;;  %v6539_v30 = vunpack.c.l.b16 %v1821_v56  ;;  %v6541_v24 = vunpack.c.l.b16 %v1843_v10  ;;  %v6543_v27 = vunpack.c.l.b16 %v1865_v28  ;;  %v11971_v28 = vld [vmem:[#allocation3_spill] sm:$0xff] }
  0xd1   : > { %v7080_v57 = vrot.slane %v6515_v45, 7  ;;  %v7082_v49 = vrot.slane %v6517_v13, 6  ;;  %v7084_v58 = vrot.slane %v6519_v3, 5  ;;  %v7086_v31 = vrot.slane %v6521_v50, 4  ;;  %v11974_v3 = vld [vmem:[#allocation6_spill] sm:$0xff] }
  0xd2   : > { %v7088_v1 = vrot.slane %v6523_v21, 3  ;;  %v7090_v6 = vrot.slane %v6525_v62, 2  ;;  %v7092_v61 = vrot.slane %v6527_v60, 1  ;;  %v7108_v38 = vrot.slane %v6531_v47, 7 }
  0xd3   : > { %v7081_v39 = vsel %vm6962_vm2, %v7080_v57, %v6513_v25  ;;  %v7110_v46 = vrot.slane %v6533_v15, 6  ;;  %v7112_v52 = vrot.slane %v6535_v2, 5  ;;  %v7114_v33 = vrot.slane %v6537_v37, 4 }
  0xd4   : > { %v7083_v9 = vsel %vm6965_vm3, %v7082_v49, %v7081_v39  ;;  %v7109_v22 = vsel %vm6962_vm2, %v7108_v38, %v6529_v63  ;;  %v7116_v0 = vrot.slane %v6539_v30, 3  ;;  %v7118_v44 = vrot.slane %v6541_v24, 2  ;;  %v10077_v38 = vld.sshfl [vmem:[%s9092_s7 + $0x62] sm:$0x11 pattern:$0x75316420] }
  0xd5   : > { %v7085_v17 = vsel %vm6968_vm4, %v7084_v58, %v7083_v9  ;;  %v7111_v53 = vsel %vm6965_vm3, %v7110_v46, %v7109_v22  ;;  %v7120_v42 = vrot.slane %v6543_v27, 1  ;;  %v4351_v36 = vrot.slane %v9870_v55, %v9110_v19  ;;  %v10074_v58 = vld.sshfl [vmem:[%s9092_s7 + $0x60] sm:$0x11 pattern:$0x75316420] }
  0xd6   : > { %v7087_v43 = vsel %vm6971_vm5, %v7086_v31, %v7085_v17  ;;  %v7113_v5 = vsel %vm6968_vm4, %v7112_v52, %v7111_v53  ;;  %v4373_v41 = vrot.slane %v9873_v34, %v9110_v19  ;;  %v4395_v59 = vrot.slane %v9876_v12, %v9110_v19  ;;  %v10080_v39 = vld.sshfl [vmem:[%s9092_s7 + $0x64] sm:$0x11 pattern:$0x75316420] }
  0xd7   : > { %v7089_v29 = vsel %vm6974_vm6, %v7088_v1, %v7087_v43  ;;  %v7115_v14 = vsel %vm6971_vm5, %v7114_v33, %v7113_v5  ;;  %v4417_v20 = vrot.slane %v9879_v23, %v9110_v19  ;;  %v4439_v55 = vrot.slane %v9886_v11, %v9110_v19  ;;  %v10083_v22 = vld.sshfl [vmem:[%s9092_s7 + $0x66] sm:$0x11 pattern:$0x75316420] }
  0xd8   : > { %v7091_v26 = vsel %vm6977_vm7, %v7090_v6, %v7089_v29  ;;  %v7117_v18 = vsel %vm6974_vm6, %v7116_v0, %v7115_v14  ;;  %v4461_v34 = vrot.slane %v9889_v40, %v9110_v19  ;;  %v4483_v12 = vrot.slane %v9892_v16, %v9110_v19  ;;  %v11970_v16 = vld [vmem:[#allocation2_spill] sm:$0xff] }
  0xd9   : > { %v7093_v4 = vsel %vm6980_vm8, %v7092_v61, %v7091_v26  ;;  %v7119_v51 = vsel %vm6977_vm7, %v7118_v44, %v7117_v18  ;;  %v4505_v23 = vrot.slane %v9897_v48, %v9110_v19  ;;  %v4527_v11 = vrot.slane %v9900_v54, %v9110_v19  ;;  %v11972_v48 = vld [vmem:[#allocation4_spill] sm:$0xff]  ;;  %v11973_v54 = vld [vmem:[#allocation5_spill] sm:$0xff]  ;;  %v10099_v26 = vld.sshfl [vmem:[%s9092_s7 + $0x6e] sm:$0x11 pattern:$0x75316420] }
  0xda   : > { %v7121_v8 = vsel %vm6980_vm8, %v7120_v42, %v7119_v51  ;;  %v4549_v7 = vrot.slane %v9909_v32, %v9110_v19  ;;  %v4571_v40 = vrot.slane %v9918_v35, %v9110_v19  ;;  %v4593_v56 = vrot.slane %v11970_v16, %v9110_v19 }
  0xdb   : > { %v7868_v10 = vpack.c.b16 %v7121_v8, %v7093_v4  ;;  %v4615_v25 = vrot.slane %v11971_v28, %v9110_v19  ;;  %v4637_v45 = vrot.slane %v11972_v48, %v9110_v19  ;;  %v4659_v13 = vrot.slane %v11973_v54, %v9110_v19  ;;  %v10106_v4 = vld.sshfl [vmem:[%s9092_s7 + $0x70] sm:$0x11 pattern:$0x75316420] }
  0xdc   : > { %v4681_v50 = vrot.slane %v11974_v3, %v9110_v19  ;;  %v6769_v32 = vunpack.c.l.b16 %v4351_v36  ;;  %v6771_v21 = vunpack.c.l.b16 %v4373_v41  ;;  %v6773_v35 = vunpack.c.l.b16 %v4395_v59  ;;  %v10088_v41 = vld.sshfl [vmem:[%s9092_s7 + $0x68] sm:$0x11 pattern:$0x75316420] }
  0xdd   : > { %8074 = vmatmul.mubr.bf16.gmra.mrb[8].mxu0 %v7868_v10  ;;  %v6775_v62 = vunpack.c.l.b16 %v4417_v20  ;;  %v6777_v60 = vunpack.c.l.b16 %v4439_v55  ;;  %v6779_v63 = vunpack.c.l.b16 %v4461_v34  ;;  %v6781_v47 = vunpack.c.l.b16 %v4483_v12  ;;  %v10093_v20 = vld.sshfl [vmem:[%s9092_s7 + $0x6a] sm:$0x11 pattern:$0x75316420] }
  0xde   : > { %v6783_v15 = vunpack.c.l.b16 %v4505_v23  ;;  %v6785_v2 = vunpack.c.l.b16 %v4527_v11  ;;  %v6787_v37 = vunpack.c.l.b16 %v4549_v7  ;;  %v6789_v30 = vunpack.c.l.b16 %v4571_v40  ;;  %v10096_v55 = vld.sshfl [vmem:[%s9092_s7 + $0x6c] sm:$0x11 pattern:$0x75316420] }
  0xdf   : > { %v6791_v24 = vunpack.c.l.b16 %v4593_v56  ;;  %v6793_v27 = vunpack.c.l.b16 %v4615_v25  ;;  %v6795_v57 = vunpack.c.l.b16 %v4637_v45  ;;  %v6797_v49 = vunpack.c.l.b16 %v4659_v13  ;;  %v10115_v7 = vld.sshfl [vmem:[%s9092_s7 + $0x72] sm:$0x11 pattern:$0x75316420] }
  0xe0   : > { %v6799_v31 = vunpack.c.l.b16 %v4681_v50  ;;  %v7528_v1 = vrot.slane %v6771_v21, 7  ;;  %v7530_v6 = vrot.slane %v6773_v35, 6  ;;  %v7532_v61 = vrot.slane %v6775_v62, 5 }
  0xe1   : > { %v7534_v46 = vrot.slane %v6777_v60, 4  ;;  %v7536_v52 = vrot.slane %v6779_v63, 3  ;;  %v7538_v33 = vrot.slane %v6781_v47, 2  ;;  %v7540_v9 = vrot.slane %v6783_v15, 1 }
  0xe2   : > { %v7529_v0 = vsel %vm6962_vm2, %v7528_v1, %v6769_v32  ;;  %v7556_v44 = vrot.slane %v6787_v37, 7  ;;  %v7558_v17 = vrot.slane %v6789_v30, 6  ;;  %v7560_v53 = vrot.slane %v6791_v24, 5 }
  0xe3   : > { %v7531_v42 = vsel %vm6965_vm3, %v7530_v6, %v7529_v0  ;;  %v7562_v36 = vrot.slane %v6793_v27, 4  ;;  %v7564_v43 = vrot.slane %v6795_v57, 3  ;;  %v7566_v5 = vrot.slane %v6797_v49, 2 }
  0xe4   : > { %v7533_v59 = vsel %vm6968_vm4, %v7532_v61, %v7531_v42  ;;  %v7557_v29 = vsel %vm6962_vm2, %v7556_v44, %v6785_v2  ;;  %v7568_v14 = vrot.slane %v6799_v31, 1  ;;  %v1880_v18 = vcombine.high %v10074_v58, %v10074_v58  ;;  %v10125_v28 = vld.sshfl [vmem:[%s9092_s7 + $0x74] sm:$0x11 pattern:$0x75316420] }
  0xe5   : > { %v7535_v34 = vsel %vm6971_vm5, %v7534_v46, %v7533_v59  ;;  %v7559_v12 = vsel %vm6965_vm3, %v7558_v17, %v7557_v29  ;;  %v1902_v51 = vcombine.high %v10077_v38, %v10077_v38  ;;  %v1924_v23 = vcombine.high %v10080_v39, %v10080_v39  ;;  %v10128_v25 = vld.sshfl [vmem:[%s9092_s7 + $0x76] sm:$0x11 pattern:$0x75316420] }
  0xe6   : > { %v7537_v11 = vsel %vm6974_vm6, %v7536_v52, %v7535_v34  ;;  %v7561_v8 = vsel %vm6968_vm4, %v7560_v53, %v7559_v12  ;;  %v10118_v40 = vrot.slane %v1880_v18, %v9110_v19  ;;  %v1946_v16 = vcombine.high %v10083_v22, %v10083_v22  ;;  %v10135_v3 = vld.sshfl [vmem:[%s9092_s7 + $0x78] sm:$0x11 pattern:$0x75316420] }
  0xe7   : > { %v7539_v56 = vsel %vm6977_vm7, %v7538_v33, %v7537_v11  ;;  %v7563_v10 = vsel %vm6971_vm5, %v7562_v36, %v7561_v8  ;;  %v1916_v48 = vrot.slane %v1902_v51, %v9110_v19  ;;  %v1938_v45 = vrot.slane %v1924_v23, %v9110_v19  ;;  %v10138_v50 = vld.sshfl [vmem:[%s9092_s7 + $0x7a] sm:$0x11 pattern:$0x75316420] }
  0xe8   : > { %v7541_v54 = vsel %vm6980_vm8, %v7540_v9, %v7539_v56  ;;  %v7565_v13 = vsel %vm6974_vm6, %v7564_v43, %v7563_v10  ;;  %v1960_v32 = vrot.slane %v1946_v16, %v9110_v19  ;;  %v1968_v21 = vcombine.high %v10088_v41, %v10088_v41  ;;  %v10145_v62 = vld.sshfl [vmem:[%s9092_s7 + $0x7c] sm:$0x11 pattern:$0x75316420] }
  0xe9   : > { %v7567_v35 = vsel %vm6977_vm7, %v7566_v5, %v7565_v13  ;;  %v1990_v60 = vcombine.high %v10093_v20, %v10093_v20  ;;  %v2012_v63 = vcombine.high %v10096_v55, %v10096_v55  ;;  %v2034_v47 = vcombine.high %v10099_v26, %v10099_v26  ;;  %v10155_v2 = vld.sshfl [vmem:[%s9092_s7 + $0x7e] sm:$0x11 pattern:$0x75316420] }
  0xea   : > { %v7569_v15 = vsel %vm6980_vm8, %v7568_v14, %v7567_v35  ;;  %v1982_v37 = vrot.slane %v1968_v21, %v9110_v19  ;;  %v2056_v30 = vcombine.high %v10106_v4, %v10106_v4  ;;  %v2078_v24 = vcombine.high %v10115_v7, %v10115_v7 }
  0xeb   : > { %v7884_v27 = vpack.c.b16 %v7569_v15, %v7541_v54  ;;  %v2004_v57 = vrot.slane %v1990_v60, %v9110_v19  ;;  %v2026_v49 = vrot.slane %v2012_v63, %v9110_v19  ;;  %v2048_v31 = vrot.slane %v2034_v47, %v9110_v19  ;;  %v10193_v47 = vld.sshfl [vmem:[%s9092_s7 + $0x164] sm:$0x11 pattern:$0x75316420] }
  0xec   : > { %v2070_v1 = vrot.slane %v2056_v30, %v9110_v19  ;;  %v2092_v6 = vrot.slane %v2078_v24, %v9110_v19  ;;  %v2100_v61 = vcombine.high %v10125_v28, %v10125_v28  ;;  %v2122_v46 = vcombine.high %v10128_v25, %v10128_v25  ;;  %v10196_v15 = vld.sshfl [vmem:[%s9092_s7 + $0x166] sm:$0x11 pattern:$0x75316420] }
  0xed   : > { %8138 = vmatmul.mubr.bf16.gmra.mrb[8].mxu1 %v7884_v27  ;;  %v2144_v52 = vcombine.high %v10135_v3, %v10135_v3  ;;  %v2166_v33 = vcombine.high %v10138_v50, %v10138_v50  ;;  %v2188_v9 = vcombine.high %v10145_v62, %v10145_v62  ;;  %v2210_v0 = vcombine.high %v10155_v2, %v10155_v2 }
  0xee   : > { %v2114_v44 = vrot.slane %v2100_v61, %v9110_v19  ;;  %v2136_v17 = vrot.slane %v2122_v46, %v9110_v19  ;;  %v6546_v53 = vunpack.c.l.b16 %v10118_v40  ;;  %v6548_v42 = vunpack.c.l.b16 %v1916_v48 }
  0xef   : > { %v2158_v36 = vrot.slane %v2144_v52, %v9110_v19  ;;  %v2180_v43 = vrot.slane %v2166_v33, %v9110_v19  ;;  %v2202_v5 = vrot.slane %v2188_v9, %v9110_v19  ;;  %v2224_v59 = vrot.slane %v2210_v0, %v9110_v19  ;;  %v10203_v33 = vld.sshfl [vmem:[%s9092_s7 + $0x168] sm:$0x11 pattern:$0x75316420] }
  0xf0   : > { %v6550_v29 = vunpack.c.l.b16 %v1938_v45  ;;  %v6552_v14 = vunpack.c.l.b16 %v1960_v32  ;;  %v6554_v18 = vunpack.c.l.b16 %v1982_v37  ;;  %v6556_v34 = vunpack.c.l.b16 %v2004_v57  ;;  %v10187_v45 = vld.sshfl [vmem:[%s9092_s7 + $0x160] sm:$0x11 pattern:$0x75316420] }
  0xf1   : > { %v6558_v12 = vunpack.c.l.b16 %v2026_v49  ;;  %v6560_v51 = vunpack.c.l.b16 %v2048_v31  ;;  %v6562_v23 = vunpack.c.l.b16 %v2070_v1  ;;  %v6564_v11 = vunpack.c.l.b16 %v2092_v6  ;;  %v10190_v32 = vld.sshfl [vmem:[%s9092_s7 + $0x162] sm:$0x11 pattern:$0x75316420] }
  0xf2   : > { %v6566_v8 = vunpack.c.l.b16 %v2114_v44  ;;  %v6568_v40 = vunpack.c.l.b16 %v2136_v17  ;;  %v6570_v16 = vunpack.c.l.b16 %v2158_v36  ;;  %v6572_v56 = vunpack.c.l.b16 %v2180_v43  ;;  %v10206_v9 = vld.sshfl [vmem:[%s9092_s7 + $0x16a] sm:$0x11 pattern:$0x75316420] }
  0xf3   : > { %v6574_v10 = vunpack.c.l.b16 %v2202_v5  ;;  %v6576_v48 = vunpack.c.l.b16 %v2224_v59  ;;  %v7150_v54 = vrot.slane %v6548_v42, 7  ;;  %v7152_v13 = vrot.slane %v6550_v29, 6  ;;  %v10209_v0 = vld.sshfl [vmem:[%s9092_s7 + $0x16c] sm:$0x11 pattern:$0x75316420] }
  0xf4   : > { %v7154_v21 = vrot.slane %v6552_v14, 5  ;;  %v7156_v35 = vrot.slane %v6554_v18, 4  ;;  %v7158_v60 = vrot.slane %v6556_v34, 3  ;;  %v7160_v63 = vrot.slane %v6558_v12, 2 }
  0xf5   : > { %v7151_v37 = vsel %vm6962_vm2, %v7150_v54, %v6546_v53  ;;  %v7162_v30 = vrot.slane %v6560_v51, 1  ;;  %v7178_v24 = vrot.slane %v6564_v11, 7  ;;  %v7180_v27 = vrot.slane %v6566_v8, 6 }
  0xf6   : > { %v7153_v57 = vsel %vm6965_vm3, %v7152_v13, %v7151_v37  ;;  %v7182_v49 = vrot.slane %v6568_v40, 5  ;;  %v7184_v31 = vrot.slane %v6570_v16, 4  ;;  %v7186_v1 = vrot.slane %v6572_v56, 3 }
  0xf7   : > { %v7155_v6 = vsel %vm6968_vm4, %v7154_v21, %v7153_v57  ;;  %v7179_v61 = vsel %vm6962_vm2, %v7178_v24, %v6562_v23  ;;  %v7188_v46 = vrot.slane %v6574_v10, 2  ;;  %v7190_v52 = vrot.slane %v6576_v48, 1  ;;  %v10214_v53 = vld.sshfl [vmem:[%s9092_s7 + $0x16e] sm:$0x11 pattern:$0x75316420] }
  0xf8   : > { %v7157_v44 = vsel %vm6971_vm5, %v7156_v35, %v7155_v6  ;;  %v7181_v17 = vsel %vm6965_vm3, %v7180_v27, %v7179_v61  ;;  %v10217_v42 = vld.sshfl [vmem:[%s9092_s7 + $0x170] sm:$0x11 pattern:$0x75316420]  ;;  %v4696_v36 = vcombine.high %v10187_v45, %v10187_v45  ;;  %v4718_v43 = vcombine.high %v10190_v32, %v10190_v32 }
  0xf9   : > { %v7159_v5 = vsel %vm6974_vm6, %v7158_v60, %v7157_v44  ;;  %v7183_v59 = vsel %vm6968_vm4, %v7182_v49, %v7181_v17  ;;  %v10226_v29 = vld.sshfl [vmem:[%s9092_s7 + $0x172] sm:$0x11 pattern:$0x75316420]  ;;  %v4740_v14 = vcombine.high %v10193_v47, %v10193_v47  ;;  %v4762_v18 = vcombine.high %v10196_v15, %v10196_v15 }
  0xfa   : > { %v7161_v34 = vsel %vm6977_vm7, %v7160_v63, %v7159_v5  ;;  %v7185_v12 = vsel %vm6971_vm5, %v7184_v31, %v7183_v59  ;;  %v10235_v51 = vld.sshfl [vmem:[%s9092_s7 + $0x174] sm:$0x11 pattern:$0x75316420]  ;;  %v4710_v23 = vrot.slane %v4696_v36, %v9110_v19  ;;  %v4732_v11 = vrot.slane %v4718_v43, %v9110_v19 }
  0xfb   : > { %v7163_v8 = vsel %vm6980_vm8, %v7162_v30, %v7161_v34  ;;  %v7187_v40 = vsel %vm6974_vm6, %v7186_v1, %v7185_v12  ;;  %v10242_v16 = vld.sshfl [vmem:[%s9092_s7 + $0x176] sm:$0x11 pattern:$0x75316420]  ;;  %v4754_v10 = vrot.slane %v4740_v14, %v9110_v19  ;;  %v4776_v48 = vrot.slane %v4762_v18, %v9110_v19 }
  0xfc   : > { %11975 = vst [vmem:[#allocation2_spill] sm:$0xff] %v10242_v16  ;;  %v10245_v56 = vld.sshfl [vmem:[%s9092_s7 + $0x178] sm:$0x11 pattern:$0x75316420]  ;;  %v7189_v54 = vsel %vm6977_vm7, %v7188_v46, %v7187_v40  ;;  %v4784_v21 = vcombine.high %v10203_v33, %v10203_v33  ;;  %v4806_v35 = vcombine.high %v10206_v9, %v10206_v9  ;;  %v4828_v60 = vcombine.high %v10209_v0, %v10209_v0 }
  0xfd   : > { %11976 = vst [vmem:[#allocation3_spill] sm:$0xff] %v10245_v56  ;;  %v10251_v13 = vld.sshfl [vmem:[%s9092_s7 + $0x17a] sm:$0x11 pattern:$0x75316420]  ;;  %v7191_v63 = vsel %vm6980_vm8, %v7190_v52, %v7189_v54  ;;  %v4850_v30 = vcombine.high %v10214_v53, %v10214_v53  ;;  %v4872_v24 = vcombine.high %v10217_v42, %v10217_v42  ;;  %v4894_v27 = vcombine.high %v10226_v29, %v10226_v29 }
  0xfe   : > { %11977 = vst [vmem:[#allocation4_spill] sm:$0xff] %v10251_v13  ;;  %v10261_v37 = vld.sshfl [vmem:[%s9092_s7 + $0x17c] sm:$0x11 pattern:$0x75316420]  ;;  %v7871_v57 = vpack.c.b16 %v7191_v63, %v7163_v8  ;;  %v4798_v31 = vrot.slane %v4784_v21, %v9110_v19  ;;  %v4820_v1 = vrot.slane %v4806_v35, %v9110_v19  ;;  %v4842_v6 = vrot.slane %v4828_v60, %v9110_v19 }
  0xff   : > { %11978 = vst [vmem:[#allocation5_spill] sm:$0xff] %v10261_v37  ;;  %v10270_v49 = vld.sshfl [vmem:[%s9092_s7 + $0x17e] sm:$0x11 pattern:$0x75316420]  ;;  %v4864_v61 = vrot.slane %v4850_v30, %v9110_v19  ;;  %v4886_v46 = vrot.slane %v4872_v24, %v9110_v19  ;;  %v4908_v52 = vrot.slane %v4894_v27, %v9110_v19  ;;  %v4916_v44 = vcombine.high %v10235_v51, %v10235_v51 }
 0x100   : > { %11979 = vst [vmem:[#allocation6_spill] sm:$0xff] %v10270_v49  ;;  %8855 = vmatprep.mubr.msk.bf16.mxu0 %vm7969_vm9, %v7871_v57  ;;  %v4938_v17 = vcombine.high %v10242_v16, %v10242_v16  ;;  %v4960_v36 = vcombine.high %v10245_v56, %v10245_v56  ;;  %v4982_v43 = vcombine.high %v10251_v13, %v10251_v13  ;;  %v6802_v18 = vunpack.c.l.b16 %v4710_v23 }
 0x101   : > { %v5004_v5 = vcombine.high %v10261_v37, %v10261_v37  ;;  %v4930_v59 = vrot.slane %v4916_v44, %v9110_v19  ;;  %v5026_v14 = vcombine.high %v10270_v49, %v10270_v49  ;;  %v6804_v34 = vunpack.c.l.b16 %v4732_v11 }
 0x102   : > { %v4952_v12 = vrot.slane %v4938_v17, %v9110_v19  ;;  %v4974_v8 = vrot.slane %v4960_v36, %v9110_v19  ;;  %v4996_v40 = vrot.slane %v4982_v43, %v9110_v19  ;;  %v6806_v35 = vunpack.c.l.b16 %v4754_v10 }
 0x103   : > { %v5018_v54 = vrot.slane %v5004_v5, %v9110_v19  ;;  %v5040_v21 = vrot.slane %v5026_v14, %v9110_v19  ;;  %v6808_v60 = vunpack.c.l.b16 %v4776_v48  ;;  %v6810_v63 = vunpack.c.l.b16 %v4798_v31 }
 0x104   : > { %v6812_v30 = vunpack.c.l.b16 %v4820_v1  ;;  %v6814_v24 = vunpack.c.l.b16 %v4842_v6  ;;  %v6816_v27 = vunpack.c.l.b16 %v4864_v61  ;;  %v6818_v57 = vunpack.c.l.b16 %v4886_v46 }
 0x105   : > { %v6820_v44 = vunpack.c.l.b16 %v4908_v52  ;;  %v6822_v23 = vunpack.c.l.b16 %v4930_v59  ;;  %v6824_v11 = vunpack.c.l.b16 %v4952_v12  ;;  %v6826_v49 = vunpack.c.l.b16 %v4974_v8 }
 0x106   : > { %v6828_v17 = vunpack.c.l.b16 %v4996_v40  ;;  %v6830_v37 = vunpack.c.l.b16 %v5018_v54  ;;  %v6832_v36 = vunpack.c.l.b16 %v5040_v21  ;;  %v7598_v13 = vrot.slane %v6804_v34, 7 }
 0x107   : > { %v7600_v43 = vrot.slane %v6806_v35, 6  ;;  %v7602_v56 = vrot.slane %v6808_v60, 5  ;;  %v7604_v5 = vrot.slane %v6810_v63, 4  ;;  %v7606_v16 = vrot.slane %v6812_v30, 3 }
 0x108   : > { %v7599_v10 = vsel %vm6962_vm2, %v7598_v13, %v6802_v18  ;;  %v7608_v48 = vrot.slane %v6814_v24, 2  ;;  %v7610_v31 = vrot.slane %v6816_v27, 1  ;;  %v7626_v1 = vrot.slane %v6820_v44, 7 }
 0x109   : > { %v7601_v6 = vsel %vm6965_vm3, %v7600_v43, %v7599_v10  ;;  %v7628_v61 = vrot.slane %v6822_v23, 6  ;;  %v7630_v46 = vrot.slane %v6824_v11, 5  ;;  %v7632_v52 = vrot.slane %v6826_v49, 4 }
 0x10a   : > { %v7603_v59 = vsel %vm6968_vm4, %v7602_v56, %v7601_v6  ;;  %v7627_v14 = vsel %vm6962_vm2, %v7626_v1, %v6818_v57  ;;  %v7634_v12 = vrot.slane %v6828_v17, 3  ;;  %v7636_v34 = vrot.slane %v6830_v37, 2 }
 0x10b   : > { %v7605_v8 = vsel %vm6971_vm5, %v7604_v5, %v7603_v59  ;;  %v7629_v40 = vsel %vm6965_vm3, %v7628_v61, %v7627_v14  ;;  %v7638_v54 = vrot.slane %v6832_v36, 1  ;;  %v1887_v13 = vrot.slane %v10074_v58, %v9110_v19 }
 0x10c   : > { %v7607_v18 = vsel %vm6974_vm6, %v7606_v16, %v7605_v8  ;;  %v7631_v21 = vsel %vm6968_vm4, %v7630_v46, %v7629_v40  ;;  %v1909_v49 = vrot.slane %v10077_v38, %v9110_v19  ;;  %v1931_v56 = vrot.slane %v10080_v39, %v9110_v19 }
 0x10d   : > { %v7609_v37 = vsel %vm6977_vm7, %v7608_v48, %v7607_v18  ;;  %v7633_v35 = vsel %vm6971_vm5, %v7632_v52, %v7631_v21  ;;  %v1953_v60 = vrot.slane %v10083_v22, %v9110_v19  ;;  %v1975_v58 = vrot.slane %v10088_v41, %v9110_v19 }
 0x10e   : > { %v7611_v16 = vsel %vm6980_vm8, %v7610_v31, %v7609_v37  ;;  %v7635_v63 = vsel %vm6974_vm6, %v7634_v12, %v7633_v35  ;;  %v1997_v38 = vrot.slane %v10093_v20, %v9110_v19  ;;  %v2019_v39 = vrot.slane %v10096_v55, %v9110_v19 }
 0x10f   : > { %v7637_v30 = vsel %vm6977_vm7, %v7636_v34, %v7635_v63  ;;  %v2041_v24 = vrot.slane %v10099_v26, %v9110_v19  ;;  %v2063_v22 = vrot.slane %v10106_v4, %v9110_v19  ;;  %v2085_v41 = vrot.slane %v10115_v7, %v9110_v19 }
 0x110   : > { %v7639_v27 = vsel %vm6980_vm8, %v7638_v54, %v7637_v30  ;;  %v2107_v57 = vrot.slane %v10125_v28, %v9110_v19  ;;  %v2129_v20 = vrot.slane %v10128_v25, %v9110_v19  ;;  %v2151_v55 = vrot.slane %v10135_v3, %v9110_v19 }
 0x111   : > { %v7887_v44 = vpack.c.b16 %v7639_v27, %v7611_v16  ;;  %v2173_v26 = vrot.slane %v10138_v50, %v9110_v19  ;;  %v2195_v4 = vrot.slane %v10145_v62, %v9110_v19  ;;  %v2217_v7 = vrot.slane %v10155_v2, %v9110_v19 }
 0x112   : > { %v6545_v23 = vunpack.c.l.b16 %v1887_v13  ;;  %v6547_v11 = vunpack.c.l.b16 %v1909_v49  ;;  %v6549_v17 = vunpack.c.l.b16 %v1931_v56  ;;  %v6551_v28 = vunpack.c.l.b16 %v1953_v60 }
 0x113   : > { %8863 = vmatprep.mubr.msk.bf16.mxu1 %vm7969_vm9, %v7887_v44  ;;  %v6553_v25 = vunpack.c.l.b16 %v1975_v58  ;;  %v6555_v36 = vunpack.c.l.b16 %v1997_v38  ;;  %v6557_v43 = vunpack.c.l.b16 %v2019_v39  ;;  %v6559_v3 = vunpack.c.l.b16 %v2041_v24 }
 0x114   : > { %v6561_v5 = vunpack.c.l.b16 %v2063_v22  ;;  %v6563_v10 = vunpack.c.l.b16 %v2085_v41  ;;  %v6565_v48 = vunpack.c.l.b16 %v2107_v57  ;;  %v6567_v50 = vunpack.c.l.b16 %v2129_v20 }
 0x115   : > { %v6569_v31 = vunpack.c.l.b16 %v2151_v55  ;;  %v6571_v1 = vunpack.c.l.b16 %v2173_v26  ;;  %v6573_v62 = vunpack.c.l.b16 %v2195_v4  ;;  %v6575_v6 = vunpack.c.l.b16 %v2217_v7  ;;  %v11981_v7 = vld [vmem:[#allocation3_spill] sm:$0xff] }
 0x116   : > { %v7136_v61 = vrot.slane %v6547_v11, 7  ;;  %v7138_v2 = vrot.slane %v6549_v17, 6  ;;  %v7140_v46 = vrot.slane %v6551_v28, 5  ;;  %v7142_v52 = vrot.slane %v6553_v25, 4  ;;  %v11984_v28 = vld [vmem:[#allocation6_spill] sm:$0xff] }
 0x117   : > { %v7144_v59 = vrot.slane %v6555_v36, 3  ;;  %v7146_v14 = vrot.slane %v6557_v43, 2  ;;  %v7148_v12 = vrot.slane %v6559_v3, 1  ;;  %v7164_v34 = vrot.slane %v6563_v10, 7 }
 0x118   : > { %v7137_v8 = vsel %vm6962_vm2, %v7136_v61, %v6545_v23  ;;  %v7166_v40 = vrot.slane %v6565_v48, 6  ;;  %v7168_v54 = vrot.slane %v6567_v50, 5  ;;  %v7170_v13 = vrot.slane %v6569_v31, 4 }
 0x119   : > { %v7139_v18 = vsel %vm6965_vm3, %v7138_v2, %v7137_v8  ;;  %v7165_v21 = vsel %vm6962_vm2, %v7164_v34, %v6561_v5  ;;  %v7172_v49 = vrot.slane %v6571_v1, 3  ;;  %v7174_v56 = vrot.slane %v6573_v62, 2  ;;  %v10394_v34 = vld.sshfl [vmem:[%s9092_s7 + $0x82] sm:$0x11 pattern:$0x75316420] }
 0x11a   : > { %v7141_v37 = vsel %vm6968_vm4, %v7140_v46, %v7139_v18  ;;  %v7167_v35 = vsel %vm6965_vm3, %v7166_v40, %v7165_v21  ;;  %v7176_v60 = vrot.slane %v6575_v6, 1  ;;  %v4703_v58 = vrot.slane %v10187_v45, %v9110_v19  ;;  %v10391_v46 = vld.sshfl [vmem:[%s9092_s7 + $0x80] sm:$0x11 pattern:$0x75316420] }
 0x11b   : > { %v7143_v16 = vsel %vm6971_vm5, %v7142_v52, %v7141_v37  ;;  %v7169_v63 = vsel %vm6968_vm4, %v7168_v54, %v7167_v35  ;;  %v4725_v38 = vrot.slane %v10190_v32, %v9110_v19  ;;  %v4747_v39 = vrot.slane %v10193_v47, %v9110_v19  ;;  %v10397_v8 = vld.sshfl [vmem:[%s9092_s7 + $0x84] sm:$0x11 pattern:$0x75316420] }
 0x11c   : > { %v7145_v30 = vsel %vm6974_vm6, %v7144_v59, %v7143_v16  ;;  %v7171_v24 = vsel %vm6971_vm5, %v7170_v13, %v7169_v63  ;;  %v4769_v22 = vrot.slane %v10196_v15, %v9110_v19  ;;  %v4791_v45 = vrot.slane %v10203_v33, %v9110_v19  ;;  %v10400_v21 = vld.sshfl [vmem:[%s9092_s7 + $0x86] sm:$0x11 pattern:$0x75316420] }
 0x11d   : > { %v7147_v41 = vsel %vm6977_vm7, %v7146_v14, %v7145_v30  ;;  %v7173_v27 = vsel %vm6974_vm6, %v7172_v49, %v7171_v24  ;;  %v4813_v32 = vrot.slane %v10206_v9, %v9110_v19  ;;  %v4835_v47 = vrot.slane %v10209_v0, %v9110_v19  ;;  %v11980_v0 = vld [vmem:[#allocation2_spill] sm:$0xff] }
 0x11e   : > { %v7149_v57 = vsel %vm6980_vm8, %v7148_v12, %v7147_v41  ;;  %v7175_v20 = vsel %vm6977_vm7, %v7174_v56, %v7173_v27  ;;  %v4857_v15 = vrot.slane %v10214_v53, %v9110_v19  ;;  %v4879_v33 = vrot.slane %v10217_v42, %v9110_v19  ;;  %v11982_v53 = vld [vmem:[#allocation4_spill] sm:$0xff]  ;;  %v11983_v42 = vld [vmem:[#allocation5_spill] sm:$0xff]  ;;  %v10416_v41 = vld.sshfl [vmem:[%s9092_s7 + $0x8e] sm:$0x11 pattern:$0x75316420] }
 0x11f   : > { %v7177_v55 = vsel %vm6980_vm8, %v7176_v60, %v7175_v20  ;;  %v4901_v44 = vrot.slane %v10226_v29, %v9110_v19  ;;  %v4923_v9 = vrot.slane %v10235_v51, %v9110_v19  ;;  %v4945_v26 = vrot.slane %v11980_v0, %v9110_v19 }
 0x120   : > { %v7870_v4 = vpack.c.b16 %v7177_v55, %v7149_v57  ;;  %v4967_v23 = vrot.slane %v11981_v7, %v9110_v19  ;;  %v4989_v11 = vrot.slane %v11982_v53, %v9110_v19  ;;  %v5011_v17 = vrot.slane %v11983_v42, %v9110_v19  ;;  %v10423_v57 = vld.sshfl [vmem:[%s9092_s7 + $0x90] sm:$0x11 pattern:$0x75316420] }
 0x121   : > { %v5033_v25 = vrot.slane %v11984_v28, %v9110_v19  ;;  %v6801_v29 = vunpack.c.l.b16 %v4703_v58  ;;  %v6803_v36 = vunpack.c.l.b16 %v4725_v38  ;;  %v6805_v51 = vunpack.c.l.b16 %v4747_v39  ;;  %v10405_v38 = vld.sshfl [vmem:[%s9092_s7 + $0x88] sm:$0x11 pattern:$0x75316420] }
 0x122   : > { %8082 = vmatmul.mubr.bf16.gmra.mrb[12].mxu0 %v7870_v4  ;;  %v6807_v43 = vunpack.c.l.b16 %v4769_v22  ;;  %v6809_v3 = vunpack.c.l.b16 %v4791_v45  ;;  %v6811_v5 = vunpack.c.l.b16 %v4813_v32  ;;  %v6813_v10 = vunpack.c.l.b16 %v4835_v47  ;;  %v10410_v22 = vld.sshfl [vmem:[%s9092_s7 + $0x8a] sm:$0x11 pattern:$0x75316420] }
 0x123   : > { %v6815_v48 = vunpack.c.l.b16 %v4857_v15  ;;  %v6817_v50 = vunpack.c.l.b16 %v4879_v33  ;;  %v6819_v31 = vunpack.c.l.b16 %v4901_v44  ;;  %v6821_v1 = vunpack.c.l.b16 %v4923_v9  ;;  %v10413_v45 = vld.sshfl [vmem:[%s9092_s7 + $0x8c] sm:$0x11 pattern:$0x75316420] }
 0x124   : > { %v6823_v62 = vunpack.c.l.b16 %v4945_v26  ;;  %v6825_v6 = vunpack.c.l.b16 %v4967_v23  ;;  %v6827_v61 = vunpack.c.l.b16 %v4989_v11  ;;  %v6829_v2 = vunpack.c.l.b16 %v5011_v17  ;;  %v10432_v44 = vld.sshfl [vmem:[%s9092_s7 + $0x92] sm:$0x11 pattern:$0x75316420] }
 0x125   : > { %v6831_v52 = vunpack.c.l.b16 %v5033_v25  ;;  %v7584_v59 = vrot.slane %v6803_v36, 7  ;;  %v7586_v14 = vrot.slane %v6805_v51, 6  ;;  %v7588_v12 = vrot.slane %v6807_v43, 5 }
 0x126   : > { %v7590_v40 = vrot.slane %v6809_v3, 4  ;;  %v7592_v54 = vrot.slane %v6811_v5, 3  ;;  %v7594_v13 = vrot.slane %v6813_v10, 2  ;;  %v7596_v18 = vrot.slane %v6815_v48, 1 }
 0x127   : > { %v7585_v49 = vsel %vm6962_vm2, %v7584_v59, %v6801_v29  ;;  %v7612_v56 = vrot.slane %v6819_v31, 7  ;;  %v7614_v37 = vrot.slane %v6821_v1, 6  ;;  %v7616_v35 = vrot.slane %v6823_v62, 5 }
 0x128   : > { %v7587_v60 = vsel %vm6965_vm3, %v7586_v14, %v7585_v49  ;;  %v7618_v58 = vrot.slane %v6825_v6, 4  ;;  %v7620_v16 = vrot.slane %v6827_v61, 3  ;;  %v7622_v63 = vrot.slane %v6829_v2, 2 }
 0x129   : > { %v7589_v39 = vsel %vm6968_vm4, %v7588_v12, %v7587_v60  ;;  %v7613_v30 = vsel %vm6962_vm2, %v7612_v56, %v6817_v50  ;;  %v7624_v24 = vrot.slane %v6831_v52, 1  ;;  %v2232_v27 = vcombine.high %v10391_v46, %v10391_v46  ;;  %v10442_v7 = vld.sshfl [vmem:[%s9092_s7 + $0x94] sm:$0x11 pattern:$0x75316420] }
 0x12a   : > { %v7591_v32 = vsel %vm6971_vm5, %v7590_v40, %v7589_v39  ;;  %v7615_v47 = vsel %vm6965_vm3, %v7614_v37, %v7613_v30  ;;  %v2254_v20 = vcombine.high %v10394_v34, %v10394_v34  ;;  %v2276_v15 = vcombine.high %v10397_v8, %v10397_v8  ;;  %v10445_v23 = vld.sshfl [vmem:[%s9092_s7 + $0x96] sm:$0x11 pattern:$0x75316420] }
 0x12b   : > { %v7593_v33 = vsel %vm6974_vm6, %v7592_v54, %v7591_v32  ;;  %v7617_v55 = vsel %vm6968_vm4, %v7616_v35, %v7615_v47  ;;  %v10435_v9 = vrot.slane %v2232_v27, %v9110_v19  ;;  %v2298_v0 = vcombine.high %v10400_v21, %v10400_v21  ;;  %v10452_v28 = vld.sshfl [vmem:[%s9092_s7 + $0x98] sm:$0x11 pattern:$0x75316420] }
 0x12c   : > { %v7595_v26 = vsel %vm6977_vm7, %v7594_v13, %v7593_v33  ;;  %v7619_v4 = vsel %vm6971_vm5, %v7618_v58, %v7617_v55  ;;  %v2268_v53 = vrot.slane %v2254_v20, %v9110_v19  ;;  %v2290_v11 = vrot.slane %v2276_v15, %v9110_v19  ;;  %v10455_v25 = vld.sshfl [vmem:[%s9092_s7 + $0x9a] sm:$0x11 pattern:$0x75316420] }
 0x12d   : > { %v7597_v42 = vsel %vm6980_vm8, %v7596_v18, %v7595_v26  ;;  %v7621_v17 = vsel %vm6974_vm6, %v7620_v16, %v7619_v4  ;;  %v2312_v29 = vrot.slane %v2298_v0, %v9110_v19  ;;  %v2320_v36 = vcombine.high %v10405_v38, %v10405_v38  ;;  %v10462_v43 = vld.sshfl [vmem:[%s9092_s7 + $0x9c] sm:$0x11 pattern:$0x75316420] }
 0x12e   : > { %v7623_v51 = vsel %vm6977_vm7, %v7622_v63, %v7621_v17  ;;  %v2342_v3 = vcombine.high %v10410_v22, %v10410_v22  ;;  %v2364_v5 = vcombine.high %v10413_v45, %v10413_v45  ;;  %v2386_v10 = vcombine.high %v10416_v41, %v10416_v41  ;;  %v10472_v50 = vld.sshfl [vmem:[%s9092_s7 + $0x9e] sm:$0x11 pattern:$0x75316420] }
 0x12f   : > { %v7625_v48 = vsel %vm6980_vm8, %v7624_v24, %v7623_v51  ;;  %v2334_v31 = vrot.slane %v2320_v36, %v9110_v19  ;;  %v2408_v1 = vcombine.high %v10423_v57, %v10423_v57  ;;  %v2430_v62 = vcombine.high %v10432_v44, %v10432_v44 }
 0x130   : > { %v7886_v6 = vpack.c.b16 %v7625_v48, %v7597_v42  ;;  %v2356_v61 = vrot.slane %v2342_v3, %v9110_v19  ;;  %v2378_v2 = vrot.slane %v2364_v5, %v9110_v19  ;;  %v2400_v52 = vrot.slane %v2386_v10, %v9110_v19  ;;  %v10510_v10 = vld.sshfl [vmem:[%s9092_s7 + $0x184] sm:$0x11 pattern:$0x75316420] }
 0x131   : > { %v2422_v59 = vrot.slane %v2408_v1, %v9110_v19  ;;  %v2444_v14 = vrot.slane %v2430_v62, %v9110_v19  ;;  %v2452_v12 = vcombine.high %v10442_v7, %v10442_v7  ;;  %v2474_v40 = vcombine.high %v10445_v23, %v10445_v23  ;;  %v10513_v48 = vld.sshfl [vmem:[%s9092_s7 + $0x186] sm:$0x11 pattern:$0x75316420] }
 0x132   : > { %8146 = vmatmul.mubr.bf16.gmra.mrb[12].mxu1 %v7886_v6  ;;  %v2496_v54 = vcombine.high %v10452_v28, %v10452_v28  ;;  %v2518_v13 = vcombine.high %v10455_v25, %v10455_v25  ;;  %v2540_v18 = vcombine.high %v10462_v43, %v10462_v43  ;;  %v2562_v49 = vcombine.high %v10472_v50, %v10472_v50 }
 0x133   : > { %v2466_v56 = vrot.slane %v2452_v12, %v9110_v19  ;;  %v2488_v37 = vrot.slane %v2474_v40, %v9110_v19  ;;  %v6578_v35 = vunpack.c.l.b16 %v10435_v9  ;;  %v6580_v60 = vunpack.c.l.b16 %v2268_v53 }
 0x134   : > { %v2510_v58 = vrot.slane %v2496_v54, %v9110_v19  ;;  %v2532_v16 = vrot.slane %v2518_v13, %v9110_v19  ;;  %v2554_v63 = vrot.slane %v2540_v18, %v9110_v19  ;;  %v2576_v39 = vrot.slane %v2562_v49, %v9110_v19  ;;  %v10520_v13 = vld.sshfl [vmem:[%s9092_s7 + $0x188] sm:$0x11 pattern:$0x75316420] }
 0x135   : > { %v6582_v30 = vunpack.c.l.b16 %v2290_v11  ;;  %v6584_v24 = vunpack.c.l.b16 %v2312_v29  ;;  %v6586_v27 = vunpack.c.l.b16 %v2334_v31  ;;  %v6588_v32 = vunpack.c.l.b16 %v2356_v61  ;;  %v10504_v11 = vld.sshfl [vmem:[%s9092_s7 + $0x180] sm:$0x11 pattern:$0x75316420] }
 0x136   : > { %v6590_v47 = vunpack.c.l.b16 %v2378_v2  ;;  %v6592_v20 = vunpack.c.l.b16 %v2400_v52  ;;  %v6594_v15 = vunpack.c.l.b16 %v2422_v59  ;;  %v6596_v33 = vunpack.c.l.b16 %v2444_v14  ;;  %v10507_v29 = vld.sshfl [vmem:[%s9092_s7 + $0x182] sm:$0x11 pattern:$0x75316420] }
 0x137   : > { %v6598_v55 = vunpack.c.l.b16 %v2466_v56  ;;  %v6600_v9 = vunpack.c.l.b16 %v2488_v37  ;;  %v6602_v0 = vunpack.c.l.b16 %v2510_v58  ;;  %v6604_v26 = vunpack.c.l.b16 %v2532_v16  ;;  %v10523_v18 = vld.sshfl [vmem:[%s9092_s7 + $0x18a] sm:$0x11 pattern:$0x75316420] }
 0x138   : > { %v6606_v4 = vunpack.c.l.b16 %v2554_v63  ;;  %v6608_v53 = vunpack.c.l.b16 %v2576_v39  ;;  %v7206_v42 = vrot.slane %v6580_v60, 7  ;;  %v7208_v17 = vrot.slane %v6582_v30, 6  ;;  %v10526_v49 = vld.sshfl [vmem:[%s9092_s7 + $0x18c] sm:$0x11 pattern:$0x75316420] }
 0x139   : > { %v7210_v36 = vrot.slane %v6584_v24, 5  ;;  %v7212_v51 = vrot.slane %v6586_v27, 4  ;;  %v7214_v3 = vrot.slane %v6588_v32, 3  ;;  %v7216_v5 = vrot.slane %v6590_v47, 2 }
 0x13a   : > { %v7207_v31 = vsel %vm6962_vm2, %v7206_v42, %v6578_v35  ;;  %v7218_v1 = vrot.slane %v6592_v20, 1  ;;  %v7234_v62 = vrot.slane %v6596_v33, 7  ;;  %v7236_v6 = vrot.slane %v6598_v55, 6 }
 0x13b   : > { %v7209_v61 = vsel %vm6965_vm3, %v7208_v17, %v7207_v31  ;;  %v7238_v2 = vrot.slane %v6600_v9, 5  ;;  %v7240_v52 = vrot.slane %v6602_v0, 4  ;;  %v7242_v59 = vrot.slane %v6604_v26, 3 }
 0x13c   : > { %v7211_v14 = vsel %vm6968_vm4, %v7210_v36, %v7209_v61  ;;  %v7235_v12 = vsel %vm6962_vm2, %v7234_v62, %v6594_v15  ;;  %v7244_v40 = vrot.slane %v6606_v4, 2  ;;  %v7246_v54 = vrot.slane %v6608_v53, 1  ;;  %v10531_v35 = vld.sshfl [vmem:[%s9092_s7 + $0x18e] sm:$0x11 pattern:$0x75316420] }
 0x13d   : > { %v7213_v56 = vsel %vm6971_vm5, %v7212_v51, %v7211_v14  ;;  %v7237_v37 = vsel %vm6965_vm3, %v7236_v6, %v7235_v12  ;;  %v10534_v60 = vld.sshfl [vmem:[%s9092_s7 + $0x190] sm:$0x11 pattern:$0x75316420]  ;;  %v5048_v58 = vcombine.high %v10504_v11, %v10504_v11  ;;  %v5070_v16 = vcombine.high %v10507_v29, %v10507_v29 }
 0x13e   : > { %v7215_v63 = vsel %vm6974_vm6, %v7214_v3, %v7213_v56  ;;  %v7239_v39 = vsel %vm6968_vm4, %v7238_v2, %v7237_v37  ;;  %v10543_v30 = vld.sshfl [vmem:[%s9092_s7 + $0x192] sm:$0x11 pattern:$0x75316420]  ;;  %v5092_v24 = vcombine.high %v10510_v10, %v10510_v10  ;;  %v5114_v27 = vcombine.high %v10513_v48, %v10513_v48 }
 0x13f   : > { %v7217_v32 = vsel %vm6977_vm7, %v7216_v5, %v7215_v63  ;;  %v7241_v47 = vsel %vm6971_vm5, %v7240_v52, %v7239_v39  ;;  %v10552_v20 = vld.sshfl [vmem:[%s9092_s7 + $0x194] sm:$0x11 pattern:$0x75316420]  ;;  %v5062_v15 = vrot.slane %v5048_v58, %v9110_v19  ;;  %v5084_v33 = vrot.slane %v5070_v16, %v9110_v19 }
 0x140   : > { %v7219_v55 = vsel %vm6980_vm8, %v7218_v1, %v7217_v32  ;;  %v7243_v9 = vsel %vm6974_vm6, %v7242_v59, %v7241_v47  ;;  %v10559_v0 = vld.sshfl [vmem:[%s9092_s7 + $0x196] sm:$0x11 pattern:$0x75316420]  ;;  %v5106_v4 = vrot.slane %v5092_v24, %v9110_v19  ;;  %v5128_v53 = vrot.slane %v5114_v27, %v9110_v19 }
 0x141   : > { %11985 = vst [vmem:[#allocation2_spill] sm:$0xff] %v10559_v0  ;;  %v10562_v26 = vld.sshfl [vmem:[%s9092_s7 + $0x198] sm:$0x11 pattern:$0x75316420]  ;;  %v7245_v42 = vsel %vm6977_vm7, %v7244_v40, %v7243_v9  ;;  %v5136_v36 = vcombine.high %v10520_v13, %v10520_v13  ;;  %v5158_v51 = vcombine.high %v10523_v18, %v10523_v18  ;;  %v5180_v3 = vcombine.high %v10526_v49, %v10526_v49 }
 0x142   : > { %11986 = vst [vmem:[#allocation3_spill] sm:$0xff] %v10562_v26  ;;  %v10568_v17 = vld.sshfl [vmem:[%s9092_s7 + $0x19a] sm:$0x11 pattern:$0x75316420]  ;;  %v7247_v5 = vsel %vm6980_vm8, %v7246_v54, %v7245_v42  ;;  %v5202_v1 = vcombine.high %v10531_v35, %v10531_v35  ;;  %v5224_v62 = vcombine.high %v10534_v60, %v10534_v60  ;;  %v5246_v6 = vcombine.high %v10543_v30, %v10543_v30 }
 0x143   : > { %11987 = vst [vmem:[#allocation4_spill] sm:$0xff] %v10568_v17  ;;  %v10578_v31 = vld.sshfl [vmem:[%s9092_s7 + $0x19c] sm:$0x11 pattern:$0x75316420]  ;;  %v7873_v61 = vpack.c.b16 %v7247_v5, %v7219_v55  ;;  %v5150_v52 = vrot.slane %v5136_v36, %v9110_v19  ;;  %v5172_v59 = vrot.slane %v5158_v51, %v9110_v19  ;;  %v5194_v14 = vrot.slane %v5180_v3, %v9110_v19 }
 0x144   : > { %11988 = vst [vmem:[#allocation5_spill] sm:$0xff] %v10578_v31  ;;  %v10587_v2 = vld.sshfl [vmem:[%s9092_s7 + $0x19e] sm:$0x11 pattern:$0x75316420]  ;;  %v5216_v12 = vrot.slane %v5202_v1, %v9110_v19  ;;  %v5238_v40 = vrot.slane %v5224_v62, %v9110_v19  ;;  %v5260_v54 = vrot.slane %v5246_v6, %v9110_v19  ;;  %v5268_v56 = vcombine.high %v10552_v20, %v10552_v20 }
 0x145   : > { %11989 = vst [vmem:[#allocation6_spill] sm:$0xff] %v10587_v2  ;;  %8856 = vmatprep.mubr.msk.bf16.mxu0 %vm7969_vm9, %v7873_v61  ;;  %v5290_v37 = vcombine.high %v10559_v0, %v10559_v0  ;;  %v5312_v58 = vcombine.high %v10562_v26, %v10562_v26  ;;  %v5334_v16 = vcombine.high %v10568_v17, %v10568_v17  ;;  %v6834_v27 = vunpack.c.l.b16 %v5062_v15 }
 0x146   : > { %v5356_v63 = vcombine.high %v10578_v31, %v10578_v31  ;;  %v5282_v39 = vrot.slane %v5268_v56, %v9110_v19  ;;  %v5378_v24 = vcombine.high %v10587_v2, %v10587_v2  ;;  %v6836_v32 = vunpack.c.l.b16 %v5084_v33 }
 0x147   : > { %v5304_v47 = vrot.slane %v5290_v37, %v9110_v19  ;;  %v5326_v55 = vrot.slane %v5312_v58, %v9110_v19  ;;  %v5348_v9 = vrot.slane %v5334_v16, %v9110_v19  ;;  %v6838_v51 = vunpack.c.l.b16 %v5106_v4 }
 0x148   : > { %v5370_v42 = vrot.slane %v5356_v63, %v9110_v19  ;;  %v5392_v36 = vrot.slane %v5378_v24, %v9110_v19  ;;  %v6840_v3 = vunpack.c.l.b16 %v5128_v53  ;;  %v6842_v5 = vunpack.c.l.b16 %v5150_v52 }
 0x149   : > { %v6844_v1 = vunpack.c.l.b16 %v5172_v59  ;;  %v6846_v62 = vunpack.c.l.b16 %v5194_v14  ;;  %v6848_v6 = vunpack.c.l.b16 %v5216_v12  ;;  %v6850_v61 = vunpack.c.l.b16 %v5238_v40 }
 0x14a   : > { %v6852_v56 = vunpack.c.l.b16 %v5260_v54  ;;  %v6854_v15 = vunpack.c.l.b16 %v5282_v39  ;;  %v6856_v33 = vunpack.c.l.b16 %v5304_v47  ;;  %v6858_v2 = vunpack.c.l.b16 %v5326_v55 }
 0x14b   : > { %v6860_v37 = vunpack.c.l.b16 %v5348_v9  ;;  %v6862_v31 = vunpack.c.l.b16 %v5370_v42  ;;  %v6864_v58 = vunpack.c.l.b16 %v5392_v36  ;;  %v7654_v17 = vrot.slane %v6836_v32, 7 }
 0x14c   : > { %v7656_v16 = vrot.slane %v6838_v51, 6  ;;  %v7658_v26 = vrot.slane %v6840_v3, 5  ;;  %v7660_v63 = vrot.slane %v6842_v5, 4  ;;  %v7662_v0 = vrot.slane %v6844_v1, 3 }
 0x14d   : > { %v7655_v4 = vsel %vm6962_vm2, %v7654_v17, %v6834_v27  ;;  %v7664_v53 = vrot.slane %v6846_v62, 2  ;;  %v7666_v52 = vrot.slane %v6848_v6, 1  ;;  %v7682_v59 = vrot.slane %v6852_v56, 7 }
 0x14e   : > { %v7657_v14 = vsel %vm6965_vm3, %v7656_v16, %v7655_v4  ;;  %v7684_v12 = vrot.slane %v6854_v15, 6  ;;  %v7686_v40 = vrot.slane %v6856_v33, 5  ;;  %v7688_v54 = vrot.slane %v6858_v2, 4 }
 0x14f   : > { %v7659_v39 = vsel %vm6968_vm4, %v7658_v26, %v7657_v14  ;;  %v7683_v24 = vsel %vm6962_vm2, %v7682_v59, %v6850_v61  ;;  %v7690_v47 = vrot.slane %v6860_v37, 3  ;;  %v7692_v32 = vrot.slane %v6862_v31, 2 }
 0x150   : > { %v7661_v55 = vsel %vm6971_vm5, %v7660_v63, %v7659_v39  ;;  %v7685_v9 = vsel %vm6965_vm3, %v7684_v12, %v7683_v24  ;;  %v7694_v42 = vrot.slane %v6864_v58, 1  ;;  %v2239_v17 = vrot.slane %v10391_v46, %v9110_v19 }
 0x151   : > { %v7663_v27 = vsel %vm6974_vm6, %v7662_v0, %v7661_v55  ;;  %v7687_v36 = vsel %vm6968_vm4, %v7686_v40, %v7685_v9  ;;  %v2261_v2 = vrot.slane %v10394_v34, %v9110_v19  ;;  %v2283_v26 = vrot.slane %v10397_v8, %v9110_v19 }
 0x152   : > { %v7665_v31 = vsel %vm6977_vm7, %v7664_v53, %v7663_v27  ;;  %v7689_v51 = vsel %vm6971_vm5, %v7688_v54, %v7687_v36  ;;  %v2305_v3 = vrot.slane %v10400_v21, %v9110_v19  ;;  %v2327_v46 = vrot.slane %v10405_v38, %v9110_v19 }
 0x153   : > { %v7667_v0 = vsel %vm6980_vm8, %v7666_v52, %v7665_v31  ;;  %v7691_v5 = vsel %vm6974_vm6, %v7690_v47, %v7689_v51  ;;  %v2349_v34 = vrot.slane %v10410_v22, %v9110_v19  ;;  %v2371_v8 = vrot.slane %v10413_v45, %v9110_v19 }
 0x154   : > { %v7693_v1 = vsel %vm6977_vm7, %v7692_v32, %v7691_v5  ;;  %v2393_v62 = vrot.slane %v10416_v41, %v9110_v19  ;;  %v2415_v21 = vrot.slane %v10423_v57, %v9110_v19  ;;  %v2437_v38 = vrot.slane %v10432_v44, %v9110_v19 }
 0x155   : > { %v7695_v6 = vsel %vm6980_vm8, %v7694_v42, %v7693_v1  ;;  %v2459_v61 = vrot.slane %v10442_v7, %v9110_v19  ;;  %v2481_v22 = vrot.slane %v10445_v23, %v9110_v19  ;;  %v2503_v45 = vrot.slane %v10452_v28, %v9110_v19 }
 0x156   : > { %v7889_v56 = vpack.c.b16 %v7695_v6, %v7667_v0  ;;  %v2525_v41 = vrot.slane %v10455_v25, %v9110_v19  ;;  %v2547_v57 = vrot.slane %v10462_v43, %v9110_v19  ;;  %v2569_v44 = vrot.slane %v10472_v50, %v9110_v19 }
 0x157   : > { %v6577_v15 = vunpack.c.l.b16 %v2239_v17  ;;  %v6579_v33 = vunpack.c.l.b16 %v2261_v2  ;;  %v6581_v37 = vunpack.c.l.b16 %v2283_v26  ;;  %v6583_v7 = vunpack.c.l.b16 %v2305_v3 }
 0x158   : > { %8864 = vmatprep.mubr.msk.bf16.mxu1 %vm7969_vm9, %v7889_v56  ;;  %v6585_v23 = vunpack.c.l.b16 %v2327_v46  ;;  %v6587_v58 = vunpack.c.l.b16 %v2349_v34  ;;  %v6589_v16 = vunpack.c.l.b16 %v2371_v8  ;;  %v6591_v28 = vunpack.c.l.b16 %v2393_v62 }
 0x159   : > { %v6593_v63 = vunpack.c.l.b16 %v2415_v21  ;;  %v6595_v4 = vunpack.c.l.b16 %v2437_v38  ;;  %v6597_v53 = vunpack.c.l.b16 %v2459_v61  ;;  %v6599_v25 = vunpack.c.l.b16 %v2481_v22 }
 0x15a   : > { %v6601_v52 = vunpack.c.l.b16 %v2503_v45  ;;  %v6603_v59 = vunpack.c.l.b16 %v2525_v41  ;;  %v6605_v43 = vunpack.c.l.b16 %v2547_v57  ;;  %v6607_v14 = vunpack.c.l.b16 %v2569_v44  ;;  %v11991_v44 = vld [vmem:[#allocation3_spill] sm:$0xff] }
 0x15b   : > { %v7192_v12 = vrot.slane %v6579_v33, 7  ;;  %v7194_v50 = vrot.slane %v6581_v37, 6  ;;  %v7196_v40 = vrot.slane %v6583_v7, 5  ;;  %v7198_v54 = vrot.slane %v6585_v23, 4  ;;  %v11994_v7 = vld [vmem:[#allocation6_spill] sm:$0xff] }
 0x15c   : > { %v7200_v39 = vrot.slane %v6587_v58, 3  ;;  %v7202_v24 = vrot.slane %v6589_v16, 2  ;;  %v7204_v47 = vrot.slane %v6591_v28, 1  ;;  %v7220_v32 = vrot.slane %v6595_v4, 7 }
 0x15d   : > { %v7193_v55 = vsel %vm6962_vm2, %v7192_v12, %v6577_v15  ;;  %v7222_v9 = vrot.slane %v6597_v53, 6  ;;  %v7224_v42 = vrot.slane %v6599_v25, 5  ;;  %v7226_v17 = vrot.slane %v6601_v52, 4 }
 0x15e   : > { %v7195_v27 = vsel %vm6965_vm3, %v7194_v50, %v7193_v55  ;;  %v7221_v36 = vsel %vm6962_vm2, %v7220_v32, %v6593_v63  ;;  %v7228_v2 = vrot.slane %v6603_v59, 3  ;;  %v7230_v26 = vrot.slane %v6605_v43, 2  ;;  %v10711_v32 = vld.sshfl [vmem:[%s9092_s7 + $0xa2] sm:$0x11 pattern:$0x75316420] }
 0x15f   : > { %v7197_v31 = vsel %vm6968_vm4, %v7196_v40, %v7195_v27  ;;  %v7223_v51 = vsel %vm6965_vm3, %v7222_v9, %v7221_v36  ;;  %v7232_v3 = vrot.slane %v6607_v14, 1  ;;  %v5055_v46 = vrot.slane %v10504_v11, %v9110_v19  ;;  %v10708_v40 = vld.sshfl [vmem:[%s9092_s7 + $0xa0] sm:$0x11 pattern:$0x75316420] }
 0x160   : > { %v7199_v0 = vsel %vm6971_vm5, %v7198_v54, %v7197_v31  ;;  %v7225_v5 = vsel %vm6968_vm4, %v7224_v42, %v7223_v51  ;;  %v5077_v34 = vrot.slane %v10507_v29, %v9110_v19  ;;  %v5099_v8 = vrot.slane %v10510_v10, %v9110_v19  ;;  %v10714_v55 = vld.sshfl [vmem:[%s9092_s7 + $0xa4] sm:$0x11 pattern:$0x75316420] }
 0x161   : > { %v7201_v1 = vsel %vm6974_vm6, %v7200_v39, %v7199_v0  ;;  %v7227_v62 = vsel %vm6971_vm5, %v7226_v17, %v7225_v5  ;;  %v5121_v21 = vrot.slane %v10513_v48, %v9110_v19  ;;  %v5143_v11 = vrot.slane %v10520_v13, %v9110_v19  ;;  %v10717_v36 = vld.sshfl [vmem:[%s9092_s7 + $0xa6] sm:$0x11 pattern:$0x75316420] }
 0x162   : > { %v7203_v38 = vsel %vm6977_vm7, %v7202_v24, %v7201_v1  ;;  %v7229_v6 = vsel %vm6974_vm6, %v7228_v2, %v7227_v62  ;;  %v5165_v29 = vrot.slane %v10523_v18, %v9110_v19  ;;  %v5187_v10 = vrot.slane %v10526_v49, %v9110_v19  ;;  %v11990_v49 = vld [vmem:[#allocation2_spill] sm:$0xff] }
 0x163   : > { %v7205_v61 = vsel %vm6980_vm8, %v7204_v47, %v7203_v38  ;;  %v7231_v22 = vsel %vm6977_vm7, %v7230_v26, %v7229_v6  ;;  %v5209_v48 = vrot.slane %v10531_v35, %v9110_v19  ;;  %v5231_v13 = vrot.slane %v10534_v60, %v9110_v19  ;;  %v11992_v35 = vld [vmem:[#allocation4_spill] sm:$0xff]  ;;  %v11993_v60 = vld [vmem:[#allocation5_spill] sm:$0xff]  ;;  %v10733_v38 = vld.sshfl [vmem:[%s9092_s7 + $0xae] sm:$0x11 pattern:$0x75316420] }
 0x164   : > { %v7233_v45 = vsel %vm6980_vm8, %v7232_v3, %v7231_v22  ;;  %v5253_v56 = vrot.slane %v10543_v30, %v9110_v19  ;;  %v5275_v18 = vrot.slane %v10552_v20, %v9110_v19  ;;  %v5297_v41 = vrot.slane %v11990_v49, %v9110_v19 }
 0x165   : > { %v7872_v57 = vpack.c.b16 %v7233_v45, %v7205_v61  ;;  %v5319_v15 = vrot.slane %v11991_v44, %v9110_v19  ;;  %v5341_v33 = vrot.slane %v11992_v35, %v9110_v19  ;;  %v5363_v37 = vrot.slane %v11993_v60, %v9110_v19  ;;  %v10740_v61 = vld.sshfl [vmem:[%s9092_s7 + $0xb0] sm:$0x11 pattern:$0x75316420] }
 0x166   : > { %v5385_v23 = vrot.slane %v11994_v7, %v9110_v19  ;;  %v6833_v30 = vunpack.c.l.b16 %v5055_v46  ;;  %v6835_v58 = vunpack.c.l.b16 %v5077_v34  ;;  %v6837_v20 = vunpack.c.l.b16 %v5099_v8  ;;  %v10722_v34 = vld.sshfl [vmem:[%s9092_s7 + $0xa8] sm:$0x11 pattern:$0x75316420] }
 0x167   : > { %8090 = vmatmul.mubr.bf16.gmra.mrb[16].mxu0 %v7872_v57  ;;  %v6839_v16 = vunpack.c.l.b16 %v5121_v21  ;;  %v6841_v28 = vunpack.c.l.b16 %v5143_v11  ;;  %v6843_v63 = vunpack.c.l.b16 %v5165_v29  ;;  %v6845_v4 = vunpack.c.l.b16 %v5187_v10  ;;  %v10727_v21 = vld.sshfl [vmem:[%s9092_s7 + $0xaa] sm:$0x11 pattern:$0x75316420] }
 0x168   : > { %v6847_v53 = vunpack.c.l.b16 %v5209_v48  ;;  %v6849_v25 = vunpack.c.l.b16 %v5231_v13  ;;  %v6851_v52 = vunpack.c.l.b16 %v5253_v56  ;;  %v6853_v59 = vunpack.c.l.b16 %v5275_v18  ;;  %v10730_v11 = vld.sshfl [vmem:[%s9092_s7 + $0xac] sm:$0x11 pattern:$0x75316420] }
 0x169   : > { %v6855_v43 = vunpack.c.l.b16 %v5297_v41  ;;  %v6857_v14 = vunpack.c.l.b16 %v5319_v15  ;;  %v6859_v12 = vunpack.c.l.b16 %v5341_v33  ;;  %v6861_v50 = vunpack.c.l.b16 %v5363_v37  ;;  %v10749_v56 = vld.sshfl [vmem:[%s9092_s7 + $0xb2] sm:$0x11 pattern:$0x75316420] }
 0x16a   : > { %v6863_v54 = vunpack.c.l.b16 %v5385_v23  ;;  %v7640_v39 = vrot.slane %v6835_v58, 7  ;;  %v7642_v24 = vrot.slane %v6837_v20, 6  ;;  %v7644_v47 = vrot.slane %v6839_v16, 5 }
 0x16b   : > { %v7646_v9 = vrot.slane %v6841_v28, 4  ;;  %v7648_v42 = vrot.slane %v6843_v63, 3  ;;  %v7650_v17 = vrot.slane %v6845_v4, 2  ;;  %v7652_v27 = vrot.slane %v6847_v53, 1 }
 0x16c   : > { %v7641_v2 = vsel %vm6962_vm2, %v7640_v39, %v6833_v30  ;;  %v7668_v26 = vrot.slane %v6851_v52, 7  ;;  %v7670_v31 = vrot.slane %v6853_v59, 6  ;;  %v7672_v51 = vrot.slane %v6855_v43, 5 }
 0x16d   : > { %v7643_v3 = vsel %vm6965_vm3, %v7642_v24, %v7641_v2  ;;  %v7674_v46 = vrot.slane %v6857_v14, 4  ;;  %v7676_v0 = vrot.slane %v6859_v12, 3  ;;  %v7678_v5 = vrot.slane %v6861_v50, 2 }
 0x16e   : > { %v7645_v8 = vsel %vm6968_vm4, %v7644_v47, %v7643_v3  ;;  %v7669_v1 = vsel %vm6962_vm2, %v7668_v26, %v6849_v25  ;;  %v7680_v62 = vrot.slane %v6863_v54, 1  ;;  %v2584_v6 = vcombine.high %v10708_v40, %v10708_v40  ;;  %v10759_v44 = vld.sshfl [vmem:[%s9092_s7 + $0xb4] sm:$0x11 pattern:$0x75316420] }
 0x16f   : > { %v7647_v29 = vsel %vm6971_vm5, %v7646_v9, %v7645_v8  ;;  %v7671_v10 = vsel %vm6965_vm3, %v7670_v31, %v7669_v1  ;;  %v2606_v22 = vcombine.high %v10711_v32, %v10711_v32  ;;  %v2628_v48 = vcombine.high %v10714_v55, %v10714_v55  ;;  %v10762_v15 = vld.sshfl [vmem:[%s9092_s7 + $0xb6] sm:$0x11 pattern:$0x75316420] }
 0x170   : > { %v7649_v13 = vsel %vm6974_vm6, %v7648_v42, %v7647_v29  ;;  %v7673_v45 = vsel %vm6968_vm4, %v7672_v51, %v7671_v10  ;;  %v10752_v18 = vrot.slane %v2584_v6, %v9110_v19  ;;  %v2650_v49 = vcombine.high %v10717_v36, %v10717_v36  ;;  %v10769_v7 = vld.sshfl [vmem:[%s9092_s7 + $0xb8] sm:$0x11 pattern:$0x75316420] }
 0x171   : > { %v7651_v41 = vsel %vm6977_vm7, %v7650_v17, %v7649_v13  ;;  %v7675_v57 = vsel %vm6971_vm5, %v7674_v46, %v7673_v45  ;;  %v2620_v35 = vrot.slane %v2606_v22, %v9110_v19  ;;  %v2642_v33 = vrot.slane %v2628_v48, %v9110_v19  ;;  %v10772_v23 = vld.sshfl [vmem:[%s9092_s7 + $0xba] sm:$0x11 pattern:$0x75316420] }
 0x172   : > { %v7653_v60 = vsel %vm6980_vm8, %v7652_v27, %v7651_v41  ;;  %v7677_v37 = vsel %vm6974_vm6, %v7676_v0, %v7675_v57  ;;  %v2664_v30 = vrot.slane %v2650_v49, %v9110_v19  ;;  %v2672_v58 = vcombine.high %v10722_v34, %v10722_v34  ;;  %v10779_v16 = vld.sshfl [vmem:[%s9092_s7 + $0xbc] sm:$0x11 pattern:$0x75316420] }
 0x173   : > { %v7679_v20 = vsel %vm6977_vm7, %v7678_v5, %v7677_v37  ;;  %v2694_v28 = vcombine.high %v10727_v21, %v10727_v21  ;;  %v2716_v63 = vcombine.high %v10730_v11, %v10730_v11  ;;  %v2738_v4 = vcombine.high %v10733_v38, %v10733_v38  ;;  %v10789_v25 = vld.sshfl [vmem:[%s9092_s7 + $0xbe] sm:$0x11 pattern:$0x75316420] }
 0x174   : > { %v7681_v53 = vsel %vm6980_vm8, %v7680_v62, %v7679_v20  ;;  %v2686_v52 = vrot.slane %v2672_v58, %v9110_v19  ;;  %v2760_v59 = vcombine.high %v10740_v61, %v10740_v61  ;;  %v2782_v43 = vcombine.high %v10749_v56, %v10749_v56 }
 0x175   : > { %v7888_v14 = vpack.c.b16 %v7681_v53, %v7653_v60  ;;  %v2708_v12 = vrot.slane %v2694_v28, %v9110_v19  ;;  %v2730_v50 = vrot.slane %v2716_v63, %v9110_v19  ;;  %v2752_v54 = vrot.slane %v2738_v4, %v9110_v19  ;;  %v10827_v4 = vld.sshfl [vmem:[%s9092_s7 + $0x1a4] sm:$0x11 pattern:$0x75316420] }
 0x176   : > { %v2774_v39 = vrot.slane %v2760_v59, %v9110_v19  ;;  %v2796_v24 = vrot.slane %v2782_v43, %v9110_v19  ;;  %v2804_v47 = vcombine.high %v10759_v44, %v10759_v44  ;;  %v2826_v9 = vcombine.high %v10762_v15, %v10762_v15  ;;  %v10830_v53 = vld.sshfl [vmem:[%s9092_s7 + $0x1a6] sm:$0x11 pattern:$0x75316420] }
 0x177   : > { %8154 = vmatmul.mubr.bf16.gmra.mrb[16].mxu1 %v7888_v14  ;;  %v2848_v42 = vcombine.high %v10769_v7, %v10769_v7  ;;  %v2870_v17 = vcombine.high %v10772_v23, %v10772_v23  ;;  %v2892_v27 = vcombine.high %v10779_v16, %v10779_v16  ;;  %v2914_v2 = vcombine.high %v10789_v25, %v10789_v25 }
 0x178   : > { %v2818_v26 = vrot.slane %v2804_v47, %v9110_v19  ;;  %v2840_v31 = vrot.slane %v2826_v9, %v9110_v19  ;;  %v6610_v51 = vunpack.c.l.b16 %v10752_v18  ;;  %v6612_v3 = vunpack.c.l.b16 %v2620_v35 }
 0x179   : > { %v2862_v46 = vrot.slane %v2848_v42, %v9110_v19  ;;  %v2884_v0 = vrot.slane %v2870_v17, %v9110_v19  ;;  %v2906_v5 = vrot.slane %v2892_v27, %v9110_v19  ;;  %v2928_v8 = vrot.slane %v2914_v2, %v9110_v19  ;;  %v10837_v17 = vld.sshfl [vmem:[%s9092_s7 + $0x1a8] sm:$0x11 pattern:$0x75316420] }
 0x17a   : > { %v6614_v1 = vunpack.c.l.b16 %v2642_v33  ;;  %v6616_v62 = vunpack.c.l.b16 %v2664_v30  ;;  %v6618_v6 = vunpack.c.l.b16 %v2686_v52  ;;  %v6620_v29 = vunpack.c.l.b16 %v2708_v12  ;;  %v10821_v33 = vld.sshfl [vmem:[%s9092_s7 + $0x1a0] sm:$0x11 pattern:$0x75316420] }
 0x17b   : > { %v6622_v10 = vunpack.c.l.b16 %v2730_v50  ;;  %v6624_v22 = vunpack.c.l.b16 %v2752_v54  ;;  %v6626_v48 = vunpack.c.l.b16 %v2774_v39  ;;  %v6628_v13 = vunpack.c.l.b16 %v2796_v24  ;;  %v10824_v30 = vld.sshfl [vmem:[%s9092_s7 + $0x1a2] sm:$0x11 pattern:$0x75316420] }
 0x17c   : > { %v6630_v45 = vunpack.c.l.b16 %v2818_v26  ;;  %v6632_v18 = vunpack.c.l.b16 %v2840_v31  ;;  %v6634_v49 = vunpack.c.l.b16 %v2862_v46  ;;  %v6636_v41 = vunpack.c.l.b16 %v2884_v0  ;;  %v10840_v27 = vld.sshfl [vmem:[%s9092_s7 + $0x1aa] sm:$0x11 pattern:$0x75316420] }
 0x17d   : > { %v6638_v57 = vunpack.c.l.b16 %v2906_v5  ;;  %v6640_v35 = vunpack.c.l.b16 %v2928_v8  ;;  %v7262_v60 = vrot.slane %v6612_v3, 7  ;;  %v7264_v37 = vrot.slane %v6614_v1, 6  ;;  %v10843_v2 = vld.sshfl [vmem:[%s9092_s7 + $0x1ac] sm:$0x11 pattern:$0x75316420] }
 0x17e   : > { %v7266_v58 = vrot.slane %v6616_v62, 5  ;;  %v7268_v20 = vrot.slane %v6618_v6, 4  ;;  %v7270_v28 = vrot.slane %v6620_v29, 3  ;;  %v7272_v63 = vrot.slane %v6622_v10, 2 }
 0x17f   : > { %v7263_v52 = vsel %vm6962_vm2, %v7262_v60, %v6610_v51  ;;  %v7274_v59 = vrot.slane %v6624_v22, 1  ;;  %v7290_v43 = vrot.slane %v6628_v13, 7  ;;  %v7292_v14 = vrot.slane %v6630_v45, 6 }
 0x180   : > { %v7265_v12 = vsel %vm6965_vm3, %v7264_v37, %v7263_v52  ;;  %v7294_v50 = vrot.slane %v6632_v18, 5  ;;  %v7296_v54 = vrot.slane %v6634_v49, 4  ;;  %v7298_v39 = vrot.slane %v6636_v41, 3 }
 0x181   : > { %v7267_v24 = vsel %vm6968_vm4, %v7266_v58, %v7265_v12  ;;  %v7291_v47 = vsel %vm6962_vm2, %v7290_v43, %v6626_v48  ;;  %v7300_v9 = vrot.slane %v6638_v57, 2  ;;  %v7302_v42 = vrot.slane %v6640_v35, 1  ;;  %v10848_v51 = vld.sshfl [vmem:[%s9092_s7 + $0x1ae] sm:$0x11 pattern:$0x75316420] }
 0x182   : > { %v7269_v26 = vsel %vm6971_vm5, %v7268_v20, %v7267_v24  ;;  %v7293_v31 = vsel %vm6965_vm3, %v7292_v14, %v7291_v47  ;;  %v10851_v3 = vld.sshfl [vmem:[%s9092_s7 + $0x1b0] sm:$0x11 pattern:$0x75316420]  ;;  %v5400_v46 = vcombine.high %v10821_v33, %v10821_v33  ;;  %v5422_v0 = vcombine.high %v10824_v30, %v10824_v30 }
 0x183   : > { %v7271_v5 = vsel %vm6974_vm6, %v7270_v28, %v7269_v26  ;;  %v7295_v8 = vsel %vm6968_vm4, %v7294_v50, %v7293_v31  ;;  %v10860_v1 = vld.sshfl [vmem:[%s9092_s7 + $0x1b2] sm:$0x11 pattern:$0x75316420]  ;;  %v5444_v62 = vcombine.high %v10827_v4, %v10827_v4  ;;  %v5466_v6 = vcombine.high %v10830_v53, %v10830_v53 }
 0x184   : > { %v7273_v29 = vsel %vm6977_vm7, %v7272_v63, %v7271_v5  ;;  %v7297_v10 = vsel %vm6971_vm5, %v7296_v54, %v7295_v8  ;;  %v10869_v22 = vld.sshfl [vmem:[%s9092_s7 + $0x1b4] sm:$0x11 pattern:$0x75316420]  ;;  %v5414_v48 = vrot.slane %v5400_v46, %v9110_v19  ;;  %v5436_v13 = vrot.slane %v5422_v0, %v9110_v19 }
 0x185   : > { %v7275_v45 = vsel %vm6980_vm8, %v7274_v59, %v7273_v29  ;;  %v7299_v18 = vsel %vm6974_vm6, %v7298_v39, %v7297_v10  ;;  %v10876_v49 = vld.sshfl [vmem:[%s9092_s7 + $0x1b6] sm:$0x11 pattern:$0x75316420]  ;;  %v5458_v57 = vrot.slane %v5444_v62, %v9110_v19  ;;  %v5480_v35 = vrot.slane %v5466_v6, %v9110_v19 }
 0x186   : > { %11995 = vst [vmem:[#allocation2_spill] sm:$0xff] %v10876_v49  ;;  %v10879_v41 = vld.sshfl [vmem:[%s9092_s7 + $0x1b8] sm:$0x11 pattern:$0x75316420]  ;;  %v7301_v60 = vsel %vm6977_vm7, %v7300_v9, %v7299_v18  ;;  %v5488_v58 = vcombine.high %v10837_v17, %v10837_v17  ;;  %v5510_v20 = vcombine.high %v10840_v27, %v10840_v27  ;;  %v5532_v28 = vcombine.high %v10843_v2, %v10843_v2 }
 0x187   : > { %11996 = vst [vmem:[#allocation3_spill] sm:$0xff] %v10879_v41  ;;  %v10885_v37 = vld.sshfl [vmem:[%s9092_s7 + $0x1ba] sm:$0x11 pattern:$0x75316420]  ;;  %v7303_v63 = vsel %vm6980_vm8, %v7302_v42, %v7301_v60  ;;  %v5554_v59 = vcombine.high %v10848_v51, %v10848_v51  ;;  %v5576_v43 = vcombine.high %v10851_v3, %v10851_v3  ;;  %v5598_v14 = vcombine.high %v10860_v1, %v10860_v1 }
 0x188   : > { %11997 = vst [vmem:[#allocation4_spill] sm:$0xff] %v10885_v37  ;;  %v10895_v52 = vld.sshfl [vmem:[%s9092_s7 + $0x1bc] sm:$0x11 pattern:$0x75316420]  ;;  %v7875_v12 = vpack.c.b16 %v7303_v63, %v7275_v45  ;;  %v5502_v54 = vrot.slane %v5488_v58, %v9110_v19  ;;  %v5524_v39 = vrot.slane %v5510_v20, %v9110_v19  ;;  %v5546_v24 = vrot.slane %v5532_v28, %v9110_v19 }
 0x189   : > { %11998 = vst [vmem:[#allocation5_spill] sm:$0xff] %v10895_v52  ;;  %v10904_v50 = vld.sshfl [vmem:[%s9092_s7 + $0x1be] sm:$0x11 pattern:$0x75316420]  ;;  %v5568_v47 = vrot.slane %v5554_v59, %v9110_v19  ;;  %v5590_v9 = vrot.slane %v5576_v43, %v9110_v19  ;;  %v5612_v42 = vrot.slane %v5598_v14, %v9110_v19  ;;  %v5620_v26 = vcombine.high %v10869_v22, %v10869_v22 }
 0x18a   : > { %11999 = vst [vmem:[#allocation6_spill] sm:$0xff] %v10904_v50  ;;  %8857 = vmatprep.mubr.msk.bf16.mxu0 %vm7969_vm9, %v7875_v12  ;;  %v5642_v31 = vcombine.high %v10876_v49, %v10876_v49  ;;  %v5664_v46 = vcombine.high %v10879_v41, %v10879_v41  ;;  %v5686_v0 = vcombine.high %v10885_v37, %v10885_v37  ;;  %v6866_v6 = vunpack.c.l.b16 %v5414_v48 }
 0x18b   : > { %v5708_v5 = vcombine.high %v10895_v52, %v10895_v52  ;;  %v5634_v8 = vrot.slane %v5620_v26, %v9110_v19  ;;  %v5730_v62 = vcombine.high %v10904_v50, %v10904_v50  ;;  %v6868_v29 = vunpack.c.l.b16 %v5436_v13 }
 0x18c   : > { %v5656_v10 = vrot.slane %v5642_v31, %v9110_v19  ;;  %v5678_v45 = vrot.slane %v5664_v46, %v9110_v19  ;;  %v5700_v18 = vrot.slane %v5686_v0, %v9110_v19  ;;  %v6870_v20 = vunpack.c.l.b16 %v5458_v57 }
 0x18d   : > { %v5722_v60 = vrot.slane %v5708_v5, %v9110_v19  ;;  %v5744_v58 = vrot.slane %v5730_v62, %v9110_v19  ;;  %v6872_v28 = vunpack.c.l.b16 %v5480_v35  ;;  %v6874_v63 = vunpack.c.l.b16 %v5502_v54 }
 0x18e   : > { %v6876_v59 = vunpack.c.l.b16 %v5524_v39  ;;  %v6878_v43 = vunpack.c.l.b16 %v5546_v24  ;;  %v6880_v14 = vunpack.c.l.b16 %v5568_v47  ;;  %v6882_v12 = vunpack.c.l.b16 %v5590_v9 }
 0x18f   : > { %v6884_v26 = vunpack.c.l.b16 %v5612_v42  ;;  %v6886_v48 = vunpack.c.l.b16 %v5634_v8  ;;  %v6888_v13 = vunpack.c.l.b16 %v5656_v10  ;;  %v6890_v50 = vunpack.c.l.b16 %v5678_v45 }
 0x190   : > { %v6892_v31 = vunpack.c.l.b16 %v5700_v18  ;;  %v6894_v52 = vunpack.c.l.b16 %v5722_v60  ;;  %v6896_v46 = vunpack.c.l.b16 %v5744_v58  ;;  %v7710_v37 = vrot.slane %v6868_v29, 7 }
 0x191   : > { %v7712_v0 = vrot.slane %v6870_v20, 6  ;;  %v7714_v41 = vrot.slane %v6872_v28, 5  ;;  %v7716_v5 = vrot.slane %v6874_v63, 4  ;;  %v7718_v49 = vrot.slane %v6876_v59, 3 }
 0x192   : > { %v7711_v57 = vsel %vm6962_vm2, %v7710_v37, %v6866_v6  ;;  %v7720_v35 = vrot.slane %v6878_v43, 2  ;;  %v7722_v54 = vrot.slane %v6880_v14, 1  ;;  %v7738_v39 = vrot.slane %v6884_v26, 7 }
 0x193   : > { %v7713_v24 = vsel %vm6965_vm3, %v7712_v0, %v7711_v57  ;;  %v7740_v47 = vrot.slane %v6886_v48, 6  ;;  %v7742_v9 = vrot.slane %v6888_v13, 5  ;;  %v7744_v42 = vrot.slane %v6890_v50, 4 }
 0x194   : > { %v7715_v8 = vsel %vm6968_vm4, %v7714_v41, %v7713_v24  ;;  %v7739_v62 = vsel %vm6962_vm2, %v7738_v39, %v6882_v12  ;;  %v7746_v10 = vrot.slane %v6892_v31, 3  ;;  %v7748_v29 = vrot.slane %v6894_v52, 2 }
 0x195   : > { %v7717_v45 = vsel %vm6971_vm5, %v7716_v5, %v7715_v8  ;;  %v7741_v18 = vsel %vm6965_vm3, %v7740_v47, %v7739_v62  ;;  %v7750_v60 = vrot.slane %v6896_v46, 1  ;;  %v2591_v37 = vrot.slane %v10708_v40, %v9110_v19 }
 0x196   : > { %v7719_v6 = vsel %vm6974_vm6, %v7718_v49, %v7717_v45  ;;  %v7743_v58 = vsel %vm6968_vm4, %v7742_v9, %v7741_v18  ;;  %v2613_v50 = vrot.slane %v10711_v32, %v9110_v19  ;;  %v2635_v41 = vrot.slane %v10714_v55, %v9110_v19 }
 0x197   : > { %v7721_v52 = vsel %vm6977_vm7, %v7720_v35, %v7719_v6  ;;  %v7745_v20 = vsel %vm6971_vm5, %v7744_v42, %v7743_v58  ;;  %v2657_v28 = vrot.slane %v10717_v36, %v9110_v19  ;;  %v2679_v40 = vrot.slane %v10722_v34, %v9110_v19 }
 0x198   : > { %v7723_v49 = vsel %vm6980_vm8, %v7722_v54, %v7721_v52  ;;  %v7747_v63 = vsel %vm6974_vm6, %v7746_v10, %v7745_v20  ;;  %v2701_v32 = vrot.slane %v10727_v21, %v9110_v19  ;;  %v2723_v55 = vrot.slane %v10730_v11, %v9110_v19 }
 0x199   : > { %v7749_v59 = vsel %vm6977_vm7, %v7748_v29, %v7747_v63  ;;  %v2745_v43 = vrot.slane %v10733_v38, %v9110_v19  ;;  %v2767_v36 = vrot.slane %v10740_v61, %v9110_v19  ;;  %v2789_v34 = vrot.slane %v10749_v56, %v9110_v19 }
 0x19a   : > { %v7751_v14 = vsel %vm6980_vm8, %v7750_v60, %v7749_v59  ;;  %v2811_v12 = vrot.slane %v10759_v44, %v9110_v19  ;;  %v2833_v21 = vrot.slane %v10762_v15, %v9110_v19  ;;  %v2855_v11 = vrot.slane %v10769_v7, %v9110_v19 }
 0x19b   : > { %v7891_v26 = vpack.c.b16 %v7751_v14, %v7723_v49  ;;  %v2877_v38 = vrot.slane %v10772_v23, %v9110_v19  ;;  %v2899_v61 = vrot.slane %v10779_v16, %v9110_v19  ;;  %v2921_v56 = vrot.slane %v10789_v25, %v9110_v19 }
 0x19c   : > { %v6609_v48 = vunpack.c.l.b16 %v2591_v37  ;;  %v6611_v13 = vunpack.c.l.b16 %v2613_v50  ;;  %v6613_v31 = vunpack.c.l.b16 %v2635_v41  ;;  %v6615_v44 = vunpack.c.l.b16 %v2657_v28 }
 0x19d   : > { %8865 = vmatprep.mubr.msk.bf16.mxu1 %vm7969_vm9, %v7891_v26  ;;  %v6617_v15 = vunpack.c.l.b16 %v2679_v40  ;;  %v6619_v46 = vunpack.c.l.b16 %v2701_v32  ;;  %v6621_v0 = vunpack.c.l.b16 %v2723_v55  ;;  %v6623_v7 = vunpack.c.l.b16 %v2745_v43 }
 0x19e   : > { %v6625_v5 = vunpack.c.l.b16 %v2767_v36  ;;  %v6627_v57 = vunpack.c.l.b16 %v2789_v34  ;;  %v6629_v35 = vunpack.c.l.b16 %v2811_v12  ;;  %v6631_v23 = vunpack.c.l.b16 %v2833_v21 }
 0x19f   : > { %v6633_v54 = vunpack.c.l.b16 %v2855_v11  ;;  %v6635_v39 = vunpack.c.l.b16 %v2877_v38  ;;  %v6637_v16 = vunpack.c.l.b16 %v2899_v61  ;;  %v6639_v24 = vunpack.c.l.b16 %v2921_v56  ;;  %v12001_v56 = vld [vmem:[#allocation3_spill] sm:$0xff] }
 0x1a0   : > { %v7248_v47 = vrot.slane %v6611_v13, 7  ;;  %v7250_v25 = vrot.slane %v6613_v31, 6  ;;  %v7252_v9 = vrot.slane %v6615_v44, 5  ;;  %v7254_v42 = vrot.slane %v6617_v15, 4  ;;  %v12004_v44 = vld [vmem:[#allocation6_spill] sm:$0xff] }
 0x1a1   : > { %v7256_v8 = vrot.slane %v6619_v46, 3  ;;  %v7258_v62 = vrot.slane %v6621_v0, 2  ;;  %v7260_v10 = vrot.slane %v6623_v7, 1  ;;  %v7276_v29 = vrot.slane %v6627_v57, 7 }
 0x1a2   : > { %v7249_v45 = vsel %vm6962_vm2, %v7248_v47, %v6609_v48  ;;  %v7278_v18 = vrot.slane %v6629_v35, 6  ;;  %v7280_v60 = vrot.slane %v6631_v23, 5  ;;  %v7282_v37 = vrot.slane %v6633_v54, 4 }
 0x1a3   : > { %v7251_v6 = vsel %vm6965_vm3, %v7250_v25, %v7249_v45  ;;  %v7277_v58 = vsel %vm6962_vm2, %v7276_v29, %v6625_v5  ;;  %v7284_v50 = vrot.slane %v6635_v39, 3  ;;  %v7286_v41 = vrot.slane %v6637_v16, 2  ;;  %v11028_v29 = vld.sshfl [vmem:[%s9092_s7 + $0xc2] sm:$0x11 pattern:$0x75316420] }
 0x1a4   : > { %v7253_v52 = vsel %vm6968_vm4, %v7252_v9, %v7251_v6  ;;  %v7279_v20 = vsel %vm6965_vm3, %v7278_v18, %v7277_v58  ;;  %v7288_v28 = vrot.slane %v6639_v24, 1  ;;  %v5407_v40 = vrot.slane %v10821_v33, %v9110_v19  ;;  %v11025_v9 = vld.sshfl [vmem:[%s9092_s7 + $0xc0] sm:$0x11 pattern:$0x75316420] }
 0x1a5   : > { %v7255_v49 = vsel %vm6971_vm5, %v7254_v42, %v7253_v52  ;;  %v7281_v63 = vsel %vm6968_vm4, %v7280_v60, %v7279_v20  ;;  %v5429_v32 = vrot.slane %v10824_v30, %v9110_v19  ;;  %v5451_v55 = vrot.slane %v10827_v4, %v9110_v19  ;;  %v11031_v45 = vld.sshfl [vmem:[%s9092_s7 + $0xc4] sm:$0x11 pattern:$0x75316420] }
 0x1a6   : > { %v7257_v59 = vsel %vm6974_vm6, %v7256_v8, %v7255_v49  ;;  %v7283_v43 = vsel %vm6971_vm5, %v7282_v37, %v7281_v63  ;;  %v5473_v36 = vrot.slane %v10830_v53, %v9110_v19  ;;  %v5495_v33 = vrot.slane %v10837_v17, %v9110_v19  ;;  %v11034_v58 = vld.sshfl [vmem:[%s9092_s7 + $0xc6] sm:$0x11 pattern:$0x75316420] }
 0x1a7   : > { %v7259_v34 = vsel %vm6977_vm7, %v7258_v62, %v7257_v59  ;;  %v7285_v14 = vsel %vm6974_vm6, %v7284_v50, %v7283_v43  ;;  %v5517_v30 = vrot.slane %v10840_v27, %v9110_v19  ;;  %v5539_v4 = vrot.slane %v10843_v2, %v9110_v19  ;;  %v12000_v2 = vld [vmem:[#allocation2_spill] sm:$0xff] }
 0x1a8   : > { %v7261_v12 = vsel %vm6980_vm8, %v7260_v10, %v7259_v34  ;;  %v7287_v21 = vsel %vm6977_vm7, %v7286_v41, %v7285_v14  ;;  %v5561_v53 = vrot.slane %v10848_v51, %v9110_v19  ;;  %v5583_v17 = vrot.slane %v10851_v3, %v9110_v19  ;;  %v12002_v51 = vld [vmem:[#allocation4_spill] sm:$0xff]  ;;  %v12003_v3 = vld [vmem:[#allocation5_spill] sm:$0xff]  ;;  %v11050_v34 = vld.sshfl [vmem:[%s9092_s7 + $0xce] sm:$0x11 pattern:$0x75316420] }
 0x1a9   : > { %v7289_v11 = vsel %vm6980_vm8, %v7288_v28, %v7287_v21  ;;  %v5605_v26 = vrot.slane %v10860_v1, %v9110_v19  ;;  %v5627_v27 = vrot.slane %v10869_v22, %v9110_v19  ;;  %v5649_v38 = vrot.slane %v12000_v2, %v9110_v19 }
 0x1aa   : > { %v7874_v61 = vpack.c.b16 %v7289_v11, %v7261_v12  ;;  %v5671_v48 = vrot.slane %v12001_v56, %v9110_v19  ;;  %v5693_v13 = vrot.slane %v12002_v51, %v9110_v19  ;;  %v5715_v31 = vrot.slane %v12003_v3, %v9110_v19  ;;  %v11057_v12 = vld.sshfl [vmem:[%s9092_s7 + $0xd0] sm:$0x11 pattern:$0x75316420] }
 0x1ab   : > { %v5737_v15 = vrot.slane %v12004_v44, %v9110_v19  ;;  %v6865_v1 = vunpack.c.l.b16 %v5407_v40  ;;  %v6867_v46 = vunpack.c.l.b16 %v5429_v32  ;;  %v6869_v22 = vunpack.c.l.b16 %v5451_v55  ;;  %v11039_v32 = vld.sshfl [vmem:[%s9092_s7 + $0xc8] sm:$0x11 pattern:$0x75316420] }
 0x1ac   : > { %8098 = vmatmul.mubr.bf16.gmra.mrb[20].mxu0 %v7874_v61  ;;  %v6871_v0 = vunpack.c.l.b16 %v5473_v36  ;;  %v6873_v7 = vunpack.c.l.b16 %v5495_v33  ;;  %v6875_v5 = vunpack.c.l.b16 %v5517_v30  ;;  %v6877_v57 = vunpack.c.l.b16 %v5539_v4  ;;  %v11044_v36 = vld.sshfl [vmem:[%s9092_s7 + $0xca] sm:$0x11 pattern:$0x75316420] }
 0x1ad   : > { %v6879_v35 = vunpack.c.l.b16 %v5561_v53  ;;  %v6881_v23 = vunpack.c.l.b16 %v5583_v17  ;;  %v6883_v54 = vunpack.c.l.b16 %v5605_v26  ;;  %v6885_v39 = vunpack.c.l.b16 %v5627_v27  ;;  %v11047_v33 = vld.sshfl [vmem:[%s9092_s7 + $0xcc] sm:$0x11 pattern:$0x75316420] }
 0x1ae   : > { %v6887_v16 = vunpack.c.l.b16 %v5649_v38  ;;  %v6889_v24 = vunpack.c.l.b16 %v5671_v48  ;;  %v6891_v47 = vunpack.c.l.b16 %v5693_v13  ;;  %v6893_v25 = vunpack.c.l.b16 %v5715_v31  ;;  %v11066_v26 = vld.sshfl [vmem:[%s9092_s7 + $0xd2] sm:$0x11 pattern:$0x75316420] }
 0x1af   : > { %v6895_v42 = vunpack.c.l.b16 %v5737_v15  ;;  %v7696_v8 = vrot.slane %v6867_v46, 7  ;;  %v7698_v62 = vrot.slane %v6869_v22, 6  ;;  %v7700_v10 = vrot.slane %v6871_v0, 5 }
 0x1b0   : > { %v7702_v18 = vrot.slane %v6873_v7, 4  ;;  %v7704_v60 = vrot.slane %v6875_v5, 3  ;;  %v7706_v37 = vrot.slane %v6877_v57, 2  ;;  %v7708_v6 = vrot.slane %v6879_v35, 1 }
 0x1b1   : > { %v7697_v50 = vsel %vm6962_vm2, %v7696_v8, %v6865_v1  ;;  %v7724_v41 = vrot.slane %v6883_v54, 7  ;;  %v7726_v52 = vrot.slane %v6885_v39, 6  ;;  %v7728_v20 = vrot.slane %v6887_v16, 5 }
 0x1b2   : > { %v7699_v28 = vsel %vm6965_vm3, %v7698_v62, %v7697_v50  ;;  %v7730_v40 = vrot.slane %v6889_v24, 4  ;;  %v7732_v49 = vrot.slane %v6891_v47, 3  ;;  %v7734_v63 = vrot.slane %v6893_v25, 2 }
 0x1b3   : > { %v7701_v55 = vsel %vm6968_vm4, %v7700_v10, %v7699_v28  ;;  %v7725_v59 = vsel %vm6962_vm2, %v7724_v41, %v6881_v23  ;;  %v7736_v43 = vrot.slane %v6895_v42, 1  ;;  %v2936_v14 = vcombine.high %v11025_v9, %v11025_v9  ;;  %v11076_v56 = vld.sshfl [vmem:[%s9092_s7 + $0xd4] sm:$0x11 pattern:$0x75316420] }
 0x1b4   : > { %v7703_v30 = vsel %vm6971_vm5, %v7702_v18, %v7701_v55  ;;  %v7727_v4 = vsel %vm6965_vm3, %v7726_v52, %v7725_v59  ;;  %v2958_v21 = vcombine.high %v11028_v29, %v11028_v29  ;;  %v2980_v53 = vcombine.high %v11031_v45, %v11031_v45  ;;  %v11079_v48 = vld.sshfl [vmem:[%s9092_s7 + $0xd6] sm:$0x11 pattern:$0x75316420] }
 0x1b5   : > { %v7705_v17 = vsel %vm6974_vm6, %v7704_v60, %v7703_v30  ;;  %v7729_v11 = vsel %vm6968_vm4, %v7728_v20, %v7727_v4  ;;  %v11069_v27 = vrot.slane %v2936_v14, %v9110_v19  ;;  %v3002_v2 = vcombine.high %v11034_v58, %v11034_v58  ;;  %v11086_v44 = vld.sshfl [vmem:[%s9092_s7 + $0xd8] sm:$0x11 pattern:$0x75316420] }
 0x1b6   : > { %v7707_v38 = vsel %vm6977_vm7, %v7706_v37, %v7705_v17  ;;  %v7731_v61 = vsel %vm6971_vm5, %v7730_v40, %v7729_v11  ;;  %v2972_v51 = vrot.slane %v2958_v21, %v9110_v19  ;;  %v2994_v13 = vrot.slane %v2980_v53, %v9110_v19  ;;  %v11089_v15 = vld.sshfl [vmem:[%s9092_s7 + $0xda] sm:$0x11 pattern:$0x75316420] }
 0x1b7   : > { %v7709_v3 = vsel %vm6980_vm8, %v7708_v6, %v7707_v38  ;;  %v7733_v31 = vsel %vm6974_vm6, %v7732_v49, %v7731_v61  ;;  %v3016_v1 = vrot.slane %v3002_v2, %v9110_v19  ;;  %v3024_v46 = vcombine.high %v11039_v32, %v11039_v32  ;;  %v11096_v0 = vld.sshfl [vmem:[%s9092_s7 + $0xdc] sm:$0x11 pattern:$0x75316420] }
 0x1b8   : > { %v7735_v22 = vsel %vm6977_vm7, %v7734_v63, %v7733_v31  ;;  %v3046_v7 = vcombine.high %v11044_v36, %v11044_v36  ;;  %v3068_v5 = vcombine.high %v11047_v33, %v11047_v33  ;;  %v3090_v57 = vcombine.high %v11050_v34, %v11050_v34  ;;  %v11106_v23 = vld.sshfl [vmem:[%s9092_s7 + $0xde] sm:$0x11 pattern:$0x75316420] }
 0x1b9   : > { %v7737_v35 = vsel %vm6980_vm8, %v7736_v43, %v7735_v22  ;;  %v3038_v54 = vrot.slane %v3024_v46, %v9110_v19  ;;  %v3112_v39 = vcombine.high %v11057_v12, %v11057_v12  ;;  %v3134_v16 = vcombine.high %v11066_v26, %v11066_v26 }
 0x1ba   : > { %v7890_v24 = vpack.c.b16 %v7737_v35, %v7709_v3  ;;  %v3060_v47 = vrot.slane %v3046_v7, %v9110_v19  ;;  %v3082_v25 = vrot.slane %v3068_v5, %v9110_v19  ;;  %v3104_v42 = vrot.slane %v3090_v57, %v9110_v19  ;;  %v11144_v57 = vld.sshfl [vmem:[%s9092_s7 + $0x1c4] sm:$0x11 pattern:$0x75316420] }
 0x1bb   : > { %v3126_v8 = vrot.slane %v3112_v39, %v9110_v19  ;;  %v3148_v62 = vrot.slane %v3134_v16, %v9110_v19  ;;  %v3156_v10 = vcombine.high %v11076_v56, %v11076_v56  ;;  %v3178_v18 = vcombine.high %v11079_v48, %v11079_v48  ;;  %v11147_v35 = vld.sshfl [vmem:[%s9092_s7 + $0x1c6] sm:$0x11 pattern:$0x75316420] }
 0x1bc   : > { %8162 = vmatmul.mubr.bf16.gmra.mrb[20].mxu1 %v7890_v24  ;;  %v3200_v60 = vcombine.high %v11086_v44, %v11086_v44  ;;  %v3222_v37 = vcombine.high %v11089_v15, %v11089_v15  ;;  %v3244_v6 = vcombine.high %v11096_v0, %v11096_v0  ;;  %v3266_v50 = vcombine.high %v11106_v23, %v11106_v23 }
 0x1bd   : > { %v3170_v41 = vrot.slane %v3156_v10, %v9110_v19  ;;  %v3192_v52 = vrot.slane %v3178_v18, %v9110_v19  ;;  %v6642_v20 = vunpack.c.l.b16 %v11069_v27  ;;  %v6644_v28 = vunpack.c.l.b16 %v2972_v51 }
 0x1be   : > { %v3214_v40 = vrot.slane %v3200_v60, %v9110_v19  ;;  %v3236_v49 = vrot.slane %v3222_v37, %v9110_v19  ;;  %v3258_v63 = vrot.slane %v3244_v6, %v9110_v19  ;;  %v3280_v55 = vrot.slane %v3266_v50, %v9110_v19  ;;  %v11154_v37 = vld.sshfl [vmem:[%s9092_s7 + $0x1c8] sm:$0x11 pattern:$0x75316420] }
 0x1bf   : > { %v6646_v59 = vunpack.c.l.b16 %v2994_v13  ;;  %v6648_v43 = vunpack.c.l.b16 %v3016_v1  ;;  %v6650_v14 = vunpack.c.l.b16 %v3038_v54  ;;  %v6652_v30 = vunpack.c.l.b16 %v3060_v47  ;;  %v11138_v13 = vld.sshfl [vmem:[%s9092_s7 + $0x1c0] sm:$0x11 pattern:$0x75316420] }
 0x1c0   : > { %v6654_v4 = vunpack.c.l.b16 %v3082_v25  ;;  %v6656_v21 = vunpack.c.l.b16 %v3104_v42  ;;  %v6658_v53 = vunpack.c.l.b16 %v3126_v8  ;;  %v6660_v17 = vunpack.c.l.b16 %v3148_v62  ;;  %v11141_v1 = vld.sshfl [vmem:[%s9092_s7 + $0x1c2] sm:$0x11 pattern:$0x75316420] }
 0x1c1   : > { %v6662_v11 = vunpack.c.l.b16 %v3170_v41  ;;  %v6664_v27 = vunpack.c.l.b16 %v3192_v52  ;;  %v6666_v2 = vunpack.c.l.b16 %v3214_v40  ;;  %v6668_v38 = vunpack.c.l.b16 %v3236_v49  ;;  %v11157_v6 = vld.sshfl [vmem:[%s9092_s7 + $0x1ca] sm:$0x11 pattern:$0x75316420]  ;;  %v11162_v41 = vpop.f32.mrb[0].mxu0 }
 0x1c2   : > { %v6670_v61 = vunpack.c.l.b16 %v3258_v63  ;;  %v6672_v51 = vunpack.c.l.b16 %v3280_v55  ;;  %v7318_v3 = vrot.slane %v6644_v28, 7  ;;  %v7320_v31 = vrot.slane %v6646_v59, 6  ;;  %v11160_v50 = vld.sshfl [vmem:[%s9092_s7 + $0x1cc] sm:$0x11 pattern:$0x75316420] }
 0x1c3   : > { %v7322_v46 = vrot.slane %v6648_v43, 5  ;;  %v7324_v22 = vrot.slane %v6650_v14, 4  ;;  %v7326_v7 = vrot.slane %v6652_v30, 3  ;;  %v7328_v5 = vrot.slane %v6654_v4, 2  ;;  %12005 = vst [vmem:[#allocation2_spill] sm:$0xff] %v11162_v41  ;;  %v11176_v55 = vpop.f32.mrb[0].mxu1 }
 0x1c4   : > { %v7319_v54 = vsel %vm6962_vm2, %v7318_v3, %v6642_v20  ;;  %v7330_v39 = vrot.slane %v6656_v21, 1  ;;  %v7346_v16 = vrot.slane %v6660_v17, 7  ;;  %v7348_v24 = vrot.slane %v6662_v11, 6  ;;  %12006 = vst [vmem:[#allocation3_spill] sm:$0xff] %v11176_v55  ;;  %v8061_v59 = vpop.f32.mrb[1].mxu0 }
 0x1c5   : > { %v7321_v47 = vsel %vm6965_vm3, %v7320_v31, %v7319_v54  ;;  %v7350_v25 = vrot.slane %v6664_v27, 5  ;;  %v7352_v42 = vrot.slane %v6666_v2, 4  ;;  %v7354_v8 = vrot.slane %v6668_v38, 3  ;;  %v11187_v17 = vpop.f32.mrb[2].mxu0 }
 0x1c6   : > { %v7323_v62 = vsel %vm6968_vm4, %v7322_v46, %v7321_v47  ;;  %v7347_v10 = vsel %vm6962_vm2, %v7346_v16, %v6658_v53  ;;  %v7356_v18 = vrot.slane %v6670_v61, 2  ;;  %v7358_v60 = vrot.slane %v6672_v51, 1  ;;  %v11167_v28 = vld.sshfl [vmem:[%s9092_s7 + $0x1ce] sm:$0x11 pattern:$0x75316420] }
 0x1c7   : > { %v7325_v52 = vsel %vm6971_vm5, %v7324_v22, %v7323_v62  ;;  %v7349_v20 = vsel %vm6965_vm3, %v7348_v24, %v7347_v10  ;;  %v11170_v40 = vld.sshfl [vmem:[%s9092_s7 + $0x1d0] sm:$0x11 pattern:$0x75316420]  ;;  %v5752_v49 = vcombine.high %v11138_v13, %v11138_v13  ;;  %v5774_v63 = vcombine.high %v11141_v1, %v11141_v1  ;;  %v8125_v53 = vpop.f32.mrb[1].mxu1  ;;  %12007 = vst [vmem:[#allocation4_spill] sm:$0xff] %v11187_v17 }
 0x1c8   : > { %v7327_v43 = vsel %vm6974_vm6, %v7326_v7, %v7325_v52  ;;  %v7351_v14 = vsel %vm6968_vm4, %v7350_v25, %v7349_v20  ;;  %v11181_v30 = vld.sshfl [vmem:[%s9092_s7 + $0x1d2] sm:$0x11 pattern:$0x75316420]  ;;  %v5796_v4 = vcombine.high %v11144_v57, %v11144_v57  ;;  %v5818_v21 = vcombine.high %v11147_v35, %v11147_v35  ;;  %v11200_v51 = vpop.f32.mrb[2].mxu1  ;;  %v8064_v3 = vpop.f32.mrb[3].mxu0 }
 0x1c9   : > { %v7329_v11 = vsel %vm6977_vm7, %v7328_v5, %v7327_v43  ;;  %v7353_v27 = vsel %vm6971_vm5, %v7352_v42, %v7351_v14  ;;  %v11192_v2 = vld.sshfl [vmem:[%s9092_s7 + $0x1d4] sm:$0x11 pattern:$0x75316420]  ;;  %v11195_v38 = vrot.slane %v5752_v49, %v9110_v19  ;;  %v11198_v61 = vrot.slane %v5774_v63, %v9110_v19  ;;  %12008 = vst [vmem:[#allocation5_spill] sm:$0xff] %v11200_v51  ;;  %v8128_v16 = vpop.f32.mrb[3].mxu1 }
 0x1ca   : > { %v7331_v31 = vsel %vm6980_vm8, %v7330_v39, %v7329_v11  ;;  %v7355_v46 = vsel %vm6974_vm6, %v7354_v8, %v7353_v27  ;;  %v11205_v22 = vld.sshfl [vmem:[%s9092_s7 + $0x1d6] sm:$0x11 pattern:$0x75316420]  ;;  %v11211_v5 = vrot.slane %v5796_v4, %v9110_v19  ;;  %v11214_v54 = vrot.slane %v5818_v21, %v9110_v19  ;;  %v11216_v24 = vpop.f32.mrb[4].mxu0  ;;  %v11228_v62 = vpop.f32.mrb[4].mxu1 }
 0x1cb   : > { %v11208_v7 = vld.sshfl [vmem:[%s9092_s7 + $0x1d8] sm:$0x11 pattern:$0x75316420]  ;;  %12010 = vst [vmem:[#allocation7_spill] sm:$0xff] %v11216_v24  ;;  %v7357_v47 = vsel %vm6977_vm7, %v7356_v18, %v7355_v46  ;;  %v5840_v25 = vcombine.high %v11154_v37, %v11154_v37  ;;  %v5862_v42 = vcombine.high %v11157_v6, %v11157_v6  ;;  %v5884_v8 = vcombine.high %v11160_v50, %v11160_v50  ;;  %v8069_v10 = vpop.f32.mrb[5].mxu0 }
 0x1cc   : > { %12009 = vst [vmem:[#allocation6_spill] sm:$0xff] %v11208_v7  ;;  %v11220_v39 = vld.sshfl [vmem:[%s9092_s7 + $0x1da] sm:$0x11 pattern:$0x75316420]  ;;  %12012 = vst [vmem:[#allocation9_spill] sm:$0xff] %v11228_v62  ;;  %v7359_v52 = vsel %vm6980_vm8, %v7358_v60, %v7357_v47  ;;  %v5906_v18 = vcombine.high %v11167_v28, %v11167_v28  ;;  %v5928_v49 = vcombine.high %v11170_v40, %v11170_v40 }
 0x1cd   : > { %12011 = vst [vmem:[#allocation8_spill] sm:$0xff] %v11220_v39  ;;  %v11232_v20 = vld.sshfl [vmem:[%s9092_s7 + $0x1dc] sm:$0x11 pattern:$0x75316420]  ;;  %v5950_v63 = vcombine.high %v11181_v30, %v11181_v30  ;;  %v8133_v59 = vpop.f32.mrb[5].mxu1  ;;  %v7877_v14 = vpack.c.b16 %v7359_v52, %v7331_v31  ;;  %v5854_v21 = vrot.slane %v5840_v25, %v9110_v19  ;;  %v5876_v60 = vrot.slane %v5862_v42, %v9110_v19 }
 0x1ce   : > { %12013 = vst [vmem:[#allocation10_spill] sm:$0xff] %v11232_v20  ;;  %v11240_v43 = vpop.f32.mrb[6].mxu0  ;;  %v11243_v4 = vld.sshfl [vmem:[%s9092_s7 + $0x1de] sm:$0x11 pattern:$0x75316420]  ;;  %v5898_v53 = vrot.slane %v5884_v8, %v9110_v19  ;;  %v5920_v3 = vrot.slane %v5906_v18, %v9110_v19  ;;  %v5942_v46 = vrot.slane %v5928_v49, %v9110_v19  ;;  %v5972_v31 = vcombine.high %v11192_v2, %v11192_v2 }
 0x1cf   : > { %12014 = vst [vmem:[#allocation11_spill] sm:$0xff] %v11240_v43  ;;  %12015 = vst [vmem:[#allocation12_spill] sm:$0xff] %v11243_v4  ;;  %v11248_v11 = vpop.f32.mrb[6].mxu1  ;;  %v8072_v27 = vpop.f32.mrb[7].mxu0  ;;  %v5964_v16 = vrot.slane %v5950_v63, %v9110_v19  ;;  %8858 = vmatprep.mubr.msk.bf16.mxu0 %vm7969_vm9, %v7877_v14  ;;  %v5994_v25 = vcombine.high %v11205_v22, %v11205_v22  ;;  %v6016_v42 = vcombine.high %v11208_v7, %v11208_v7 }
 0x1d0   : > { %12016 = vst [vmem:[#allocation13_spill] sm:$0xff] %v11248_v11  ;;  %v8136_v47 = vpop.f32.mrb[7].mxu1  ;;  %v11255_v10 = vpop.f32.mrb[8].mxu0  ;;  %v6038_v8 = vcombine.high %v11220_v39, %v11220_v39  ;;  %v6060_v52 = vcombine.high %v11232_v20, %v11232_v20  ;;  %v5986_v63 = vrot.slane %v5972_v31, %v9110_v19  ;;  %v6082_v59 = vcombine.high %v11243_v4, %v11243_v4 }
 0x1d1   : > { %12017 = vst [vmem:[#allocation14_spill] sm:$0xff] %v11255_v10  ;;  %v11266_v18 = vpop.f32.mrb[8].mxu1  ;;  %v8077_v49 = vpop.f32.mrb[9].mxu0  ;;  %v6898_v14 = vunpack.c.l.b16 %v11195_v38  ;;  %v6900_v27 = vunpack.c.l.b16 %v11198_v61  ;;  %v6008_v11 = vrot.slane %v5994_v25, %v9110_v19  ;;  %v6030_v43 = vrot.slane %v6016_v42, %v9110_v19 }
 0x1d2   : > { %12018 = vst [vmem:[#allocation15_spill] sm:$0xff] %v11266_v18  ;;  %v8141_v47 = vpop.f32.mrb[9].mxu1  ;;  %v11273_v10 = vpop.f32.mrb[10].mxu0  ;;  %v6052_v62 = vrot.slane %v6038_v8, %v9110_v19  ;;  %v6074_v49 = vrot.slane %v6060_v52, %v9110_v19  ;;  %v6096_v24 = vrot.slane %v6082_v59, %v9110_v19  ;;  %v6902_v38 = vunpack.c.l.b16 %v11211_v5 }
 0x1d3   : > { %12019 = vst [vmem:[#allocation16_spill] sm:$0xff] %v11273_v10  ;;  %v11279_v18 = vpop.f32.mrb[10].mxu1  ;;  %v8080_v31 = vpop.f32.mrb[11].mxu0  ;;  %v6904_v61 = vunpack.c.l.b16 %v11214_v54  ;;  %v6906_v47 = vunpack.c.l.b16 %v5854_v21  ;;  %v6908_v10 = vunpack.c.l.b16 %v5876_v60  ;;  %v6910_v17 = vunpack.c.l.b16 %v5898_v53 }
 0x1d4   : > { %12020 = vst [vmem:[#allocation17_spill] sm:$0xff] %v11279_v18  ;;  %v8144_v51 = vpop.f32.mrb[11].mxu1  ;;  %v6912_v25 = vunpack.c.l.b16 %v5920_v3  ;;  %v6914_v55 = vunpack.c.l.b16 %v5942_v46  ;;  %v6916_v42 = vunpack.c.l.b16 %v5964_v16  ;;  %v6918_v41 = vunpack.c.l.b16 %v5986_v63 }
 0x1d5   : > { %v6920_v8 = vunpack.c.l.b16 %v6008_v11  ;;  %v6922_v4 = vunpack.c.l.b16 %v6030_v43  ;;  %v6924_v52 = vunpack.c.l.b16 %v6052_v62  ;;  %v6926_v20 = vunpack.c.l.b16 %v6074_v49 }
 0x1d6   : > { %v6928_v18 = vunpack.c.l.b16 %v6096_v24  ;;  %v7766_v31 = vrot.slane %v6900_v27, 7  ;;  %v7768_v39 = vrot.slane %v6902_v38, 6  ;;  %v7770_v59 = vrot.slane %v6904_v61, 5 }
 0x1d7   : > { %v7772_v7 = vrot.slane %v6906_v47, 4  ;;  %v7774_v5 = vrot.slane %v6908_v10, 3  ;;  %v7776_v21 = vrot.slane %v6910_v17, 2  ;;  %v7778_v51 = vrot.slane %v6912_v25, 1 }
 0x1d8   : > { %v7767_v54 = vsel %vm6962_vm2, %v7766_v31, %v6898_v14  ;;  %v7794_v60 = vrot.slane %v6916_v42, 7  ;;  %v7796_v3 = vrot.slane %v6918_v41, 6  ;;  %v7798_v46 = vrot.slane %v6920_v8, 5 }
 0x1d9   : > { %v7769_v53 = vsel %vm6965_vm3, %v7768_v39, %v7767_v54  ;;  %v7800_v16 = vrot.slane %v6922_v4, 4  ;;  %v7802_v24 = vrot.slane %v6924_v52, 3  ;;  %v7804_v11 = vrot.slane %v6926_v20, 2 }
 0x1da   : > { %v7771_v43 = vsel %vm6968_vm4, %v7770_v59, %v7769_v53  ;;  %v7795_v62 = vsel %vm6962_vm2, %v7794_v60, %v6914_v55  ;;  %v7806_v27 = vrot.slane %v6928_v18, 1  ;;  %v2943_v17 = vrot.slane %v11025_v9, %v9110_v19 }
 0x1db   : > { %v7773_v63 = vsel %vm6971_vm5, %v7772_v7, %v7771_v43  ;;  %v7797_v10 = vsel %vm6965_vm3, %v7796_v3, %v7795_v62  ;;  %v2965_v39 = vrot.slane %v11028_v29, %v9110_v19  ;;  %v2987_v55 = vrot.slane %v11031_v45, %v9110_v19 }
 0x1dc   : > { %v7775_v14 = vsel %vm6974_vm6, %v7774_v5, %v7773_v63  ;;  %v7799_v41 = vsel %vm6968_vm4, %v7798_v46, %v7797_v10  ;;  %v3009_v4 = vrot.slane %v11034_v58, %v9110_v19  ;;  %v3031_v9 = vrot.slane %v11039_v32, %v9110_v19 }
 0x1dd   : > { %v7777_v20 = vsel %vm6977_vm7, %v7776_v21, %v7775_v14  ;;  %v7801_v7 = vsel %vm6971_vm5, %v7800_v16, %v7799_v41  ;;  %v3053_v29 = vrot.slane %v11044_v36, %v9110_v19  ;;  %v3075_v45 = vrot.slane %v11047_v33, %v9110_v19 }
 0x1de   : > { %v7779_v18 = vsel %vm6980_vm8, %v7778_v51, %v7777_v20  ;;  %v7803_v49 = vsel %vm6974_vm6, %v7802_v24, %v7801_v7  ;;  %v3097_v61 = vrot.slane %v11050_v34, %v9110_v19  ;;  %v3119_v58 = vrot.slane %v11057_v12, %v9110_v19 }
 0x1df   : > { %v7805_v38 = vsel %vm6977_vm7, %v7804_v11, %v7803_v49  ;;  %v3141_v32 = vrot.slane %v11066_v26, %v9110_v19  ;;  %v3163_v25 = vrot.slane %v11076_v56, %v9110_v19  ;;  %v3185_v36 = vrot.slane %v11079_v48, %v9110_v19 }
 0x1e0   : > { %v7807_v47 = vsel %vm6980_vm8, %v7806_v27, %v7805_v38  ;;  %v3207_v33 = vrot.slane %v11086_v44, %v9110_v19  ;;  %v3229_v34 = vrot.slane %v11089_v15, %v9110_v19  ;;  %v3251_v12 = vrot.slane %v11096_v0, %v9110_v19 }
 0x1e1   : > { %v7893_v42 = vpack.c.b16 %v7807_v47, %v7779_v18  ;;  %v3273_v26 = vrot.slane %v11106_v23, %v9110_v19  ;;  %v6641_v8 = vunpack.c.l.b16 %v2943_v17  ;;  %v6643_v52 = vunpack.c.l.b16 %v2965_v39 }
 0x1e2   : > { %v6645_v31 = vunpack.c.l.b16 %v2987_v55  ;;  %v6647_v56 = vunpack.c.l.b16 %v3009_v4  ;;  %v6649_v48 = vunpack.c.l.b16 %v3031_v9  ;;  %v6651_v59 = vunpack.c.l.b16 %v3053_v29 }
 0x1e3   : > { %8866 = vmatprep.mubr.msk.bf16.mxu1 %vm7969_vm9, %v7893_v42  ;;  %v6653_v5 = vunpack.c.l.b16 %v3075_v45  ;;  %v6655_v44 = vunpack.c.l.b16 %v3097_v61  ;;  %v6657_v54 = vunpack.c.l.b16 %v3119_v58  ;;  %v6659_v21 = vunpack.c.l.b16 %v3141_v32 }
 0x1e4   : > { %v6661_v51 = vunpack.c.l.b16 %v3163_v25  ;;  %v6663_v15 = vunpack.c.l.b16 %v3185_v36  ;;  %v6665_v60 = vunpack.c.l.b16 %v3207_v33  ;;  %v6667_v53 = vunpack.c.l.b16 %v3229_v34 }
 0x1e5   : > { %v6669_v0 = vunpack.c.l.b16 %v3251_v12  ;;  %v6671_v3 = vunpack.c.l.b16 %v3273_v26  ;;  %v7304_v46 = vrot.slane %v6643_v52, 7  ;;  %v7306_v23 = vrot.slane %v6645_v31, 6  ;;  %v12021_v26 = vld [vmem:[#allocation6_spill] sm:$0xff] }
 0x1e6   : > { %v7308_v16 = vrot.slane %v6647_v56, 5  ;;  %v7310_v43 = vrot.slane %v6649_v48, 4  ;;  %v7312_v62 = vrot.slane %v6651_v59, 3  ;;  %v7314_v24 = vrot.slane %v6653_v5, 2  ;;  %v12024_v56 = vld [vmem:[#allocation12_spill] sm:$0xff] }
 0x1e7   : > { %v7316_v11 = vrot.slane %v6655_v44, 1  ;;  %v7332_v63 = vrot.slane %v6659_v21, 7  ;;  %v7305_v10 = vsel %vm6962_vm2, %v7304_v46, %v6641_v8  ;;  %v7334_v27 = vrot.slane %v6661_v51, 6 }
 0x1e8   : > { %v7336_v17 = vrot.slane %v6663_v15, 5  ;;  %v7338_v14 = vrot.slane %v6665_v60, 4  ;;  %v7307_v41 = vsel %vm6965_vm3, %v7306_v23, %v7305_v10  ;;  %v7340_v55 = vrot.slane %v6667_v53, 3 }
 0x1e9   : > { %v7333_v39 = vsel %vm6962_vm2, %v7332_v63, %v6657_v54  ;;  %v7342_v20 = vrot.slane %v6669_v0, 2  ;;  %v7309_v7 = vsel %vm6968_vm4, %v7308_v16, %v7307_v41  ;;  %v7344_v9 = vrot.slane %v6671_v3, 1  ;;  %v11378_v23 = vld.sshfl [vmem:[%s9092_s7 + $0xe0] sm:$0x11 pattern:$0x75316420] }
 0x1ea   : > { %v7335_v4 = vsel %vm6965_vm3, %v7334_v27, %v7333_v39  ;;  %v5759_v18 = vrot.slane %v11138_v13, %v9110_v19  ;;  %v7311_v49 = vsel %vm6971_vm5, %v7310_v43, %v7309_v7  ;;  %v5781_v45 = vrot.slane %v11141_v1, %v9110_v19  ;;  %v11384_v63 = vld.sshfl [vmem:[%s9092_s7 + $0xe4] sm:$0x11 pattern:$0x75316420] }
 0x1eb   : > { %v7337_v29 = vsel %vm6968_vm4, %v7336_v17, %v7335_v4  ;;  %v5803_v38 = vrot.slane %v11144_v57, %v9110_v19  ;;  %v7313_v61 = vsel %vm6974_vm6, %v7312_v62, %v7311_v49  ;;  %v5825_v32 = vrot.slane %v11147_v35, %v9110_v19  ;;  %v11387_v41 = vld.sshfl [vmem:[%s9092_s7 + $0xe6] sm:$0x11 pattern:$0x75316420] }
 0x1ec   : > { %v7339_v58 = vsel %vm6971_vm5, %v7338_v14, %v7337_v29  ;;  %v5847_v13 = vrot.slane %v11154_v37, %v9110_v19  ;;  %v7315_v47 = vsel %vm6977_vm7, %v7314_v24, %v7313_v61  ;;  %v5869_v1 = vrot.slane %v11157_v6, %v9110_v19 }
 0x1ed   : > { %v7341_v25 = vsel %vm6974_vm6, %v7340_v55, %v7339_v58  ;;  %v5891_v57 = vrot.slane %v11160_v50, %v9110_v19  ;;  %v7317_v36 = vsel %vm6980_vm8, %v7316_v11, %v7315_v47  ;;  %v5913_v35 = vrot.slane %v11167_v28, %v9110_v19  ;;  %v12022_v28 = vld [vmem:[#allocation8_spill] sm:$0xff]  ;;  %v11381_v11 = vld.sshfl [vmem:[%s9092_s7 + $0xe2] sm:$0x11 pattern:$0x75316420] }
 0x1ee   : > { %v7343_v33 = vsel %vm6977_vm7, %v7342_v20, %v7341_v25  ;;  %v5935_v37 = vrot.slane %v11170_v40, %v9110_v19  ;;  %v5957_v34 = vrot.slane %v11181_v30, %v9110_v19  ;;  %v5979_v6 = vrot.slane %v11192_v2, %v9110_v19  ;;  %v12023_v40 = vld [vmem:[#allocation10_spill] sm:$0xff]  ;;  %v11401_v47 = vld.sshfl [vmem:[%s9092_s7 + $0xea] sm:$0x11 pattern:$0x75316420] }
 0x1ef   : > { %v7345_v42 = vsel %vm6980_vm8, %v7344_v9, %v7343_v33  ;;  %v6001_v50 = vrot.slane %v11205_v22, %v9110_v19  ;;  %v6023_v8 = vrot.slane %v12021_v26, %v9110_v19  ;;  %v6045_v52 = vrot.slane %v12022_v28, %v9110_v19  ;;  %v11404_v25 = vld.sshfl [vmem:[%s9092_s7 + $0xec] sm:$0x11 pattern:$0x75316420] }
 0x1f0   : > { %v7876_v12 = vpack.c.b16 %v7345_v42, %v7317_v36  ;;  %v6067_v31 = vrot.slane %v12023_v40, %v9110_v19  ;;  %v6089_v48 = vrot.slane %v12024_v56, %v9110_v19  ;;  %v6897_v30 = vunpack.c.l.b16 %v5759_v18  ;;  %v11433_v40 = vld.sshfl [vmem:[%s9092_s7 + $0xf4] sm:$0x11 pattern:$0x75316420] }
 0x1f1   : > { %v6899_v59 = vunpack.c.l.b16 %v5781_v45  ;;  %v6901_v2 = vunpack.c.l.b16 %v5803_v38  ;;  %v6903_v5 = vunpack.c.l.b16 %v5825_v32  ;;  %v6905_v22 = vunpack.c.l.b16 %v5847_v13  ;;  %v11394_v38 = vld.sshfl [vmem:[%s9092_s7 + $0xe8] sm:$0x11 pattern:$0x75316420] }
 0x1f2   : > { %8106 = vmatmul.mubr.bf16.gmra.mrb[24].mxu0 %v7876_v12  ;;  %v6907_v44 = vunpack.c.l.b16 %v5869_v1  ;;  %v6909_v54 = vunpack.c.l.b16 %v5891_v57  ;;  %v6911_v21 = vunpack.c.l.b16 %v5913_v35  ;;  %v6913_v51 = vunpack.c.l.b16 %v5935_v37  ;;  %v11407_v1 = vld.sshfl [vmem:[%s9092_s7 + $0xee] sm:$0x11 pattern:$0x75316420] }
 0x1f3   : > { %v6915_v15 = vunpack.c.l.b16 %v5957_v34  ;;  %v6917_v60 = vunpack.c.l.b16 %v5979_v6  ;;  %v6919_v53 = vunpack.c.l.b16 %v6001_v50  ;;  %v6921_v0 = vunpack.c.l.b16 %v6023_v8  ;;  %v11414_v37 = vld.sshfl [vmem:[%s9092_s7 + $0xf0] sm:$0x11 pattern:$0x75316420] }
 0x1f4   : > { %v6923_v3 = vunpack.c.l.b16 %v6045_v52  ;;  %v6925_v46 = vunpack.c.l.b16 %v6067_v31  ;;  %v6927_v16 = vunpack.c.l.b16 %v6089_v48  ;;  %v7752_v43 = vrot.slane %v6899_v59, 7  ;;  %v11423_v12 = vld.sshfl [vmem:[%s9092_s7 + $0xf2] sm:$0x11 pattern:$0x75316420] }
 0x1f5   : > { %v7754_v62 = vrot.slane %v6901_v2, 6  ;;  %v7756_v24 = vrot.slane %v6903_v5, 5  ;;  %v7758_v10 = vrot.slane %v6905_v22, 4  ;;  %v7760_v27 = vrot.slane %v6907_v44, 3  ;;  %v11389_v39 = vpop.f32.mrb[12].mxu0 }
 0x1f6   : > { %v7762_v17 = vrot.slane %v6909_v54, 2  ;;  %v7764_v14 = vrot.slane %v6911_v21, 1  ;;  %12025 = vst [vmem:[#allocation6_spill] sm:$0xff] %v11389_v39  ;;  %v7753_v55 = vsel %vm6962_vm2, %v7752_v43, %v6897_v30  ;;  %v7780_v20 = vrot.slane %v6915_v15, 7  ;;  %v8085_v9 = vpop.f32.mrb[13].mxu0 }
 0x1f7   : > { %v7782_v7 = vrot.slane %v6917_v60, 6  ;;  %v7784_v4 = vrot.slane %v6919_v53, 5  ;;  %v7755_v18 = vsel %vm6965_vm3, %v7754_v62, %v7753_v55  ;;  %v7786_v49 = vrot.slane %v6921_v0, 4  ;;  %v11396_v61 = vpop.f32.mrb[14].mxu0 }
 0x1f8   : > { %v7788_v29 = vrot.slane %v6923_v3, 3  ;;  %v7790_v45 = vrot.slane %v6925_v46, 2  ;;  %12026 = vst [vmem:[#allocation8_spill] sm:$0xff] %v11396_v61  ;;  %v7757_v58 = vsel %vm6968_vm4, %v7756_v24, %v7755_v18  ;;  %v7781_v32 = vsel %vm6962_vm2, %v7780_v20, %v6913_v51  ;;  %v8088_v36 = vpop.f32.mrb[15].mxu0 }
 0x1f9   : > { %v7792_v13 = vrot.slane %v6927_v16, 1  ;;  %v3288_v57 = vcombine.high %v11378_v23, %v11378_v23  ;;  %v7759_v33 = vsel %vm6971_vm5, %v7758_v10, %v7757_v58  ;;  %v7783_v35 = vsel %vm6965_vm3, %v7782_v7, %v7781_v32  ;;  %v11436_v31 = vld.sshfl [vmem:[%s9092_s7 + $0xf6] sm:$0x11 pattern:$0x75316420] }
 0x1fa   : > { %v3310_v42 = vcombine.high %v11381_v11, %v11381_v11  ;;  %v3332_v34 = vcombine.high %v11384_v63, %v11384_v63  ;;  %v7761_v6 = vsel %vm6974_vm6, %v7760_v27, %v7759_v33  ;;  %v7785_v50 = vsel %vm6968_vm4, %v7784_v4, %v7783_v35  ;;  %v11443_v2 = vld.sshfl [vmem:[%s9092_s7 + $0xf8] sm:$0x11 pattern:$0x75316420] }
 0x1fb   : > { %v11426_v26 = vrot.slane %v3288_v57, %v9110_v19  ;;  %v3354_v8 = vcombine.high %v11387_v41, %v11387_v41  ;;  %v7763_v28 = vsel %vm6977_vm7, %v7762_v17, %v7761_v6  ;;  %v7787_v52 = vsel %vm6971_vm5, %v7786_v49, %v7785_v50  ;;  %v11446_v5 = vld.sshfl [vmem:[%s9092_s7 + $0xfa] sm:$0x11 pattern:$0x75316420] }
 0x1fc   : > { %v3324_v56 = vrot.slane %v3310_v42, %v9110_v19  ;;  %v3346_v48 = vrot.slane %v3332_v34, %v9110_v19  ;;  %v7765_v30 = vsel %vm6980_vm8, %v7764_v14, %v7763_v28  ;;  %v7789_v59 = vsel %vm6974_vm6, %v7788_v29, %v7787_v52  ;;  %v11453_v21 = vld.sshfl [vmem:[%s9092_s7 + $0xfc] sm:$0x11 pattern:$0x75316420] }
 0x1fd   : > { %v3368_v22 = vrot.slane %v3354_v8, %v9110_v19  ;;  %v3376_v44 = vcombine.high %v11394_v38, %v11394_v38  ;;  %v7791_v54 = vsel %vm6977_vm7, %v7790_v45, %v7789_v59  ;;  %v3398_v51 = vcombine.high %v11401_v47, %v11401_v47  ;;  %v11463_v0 = vld.sshfl [vmem:[%s9092_s7 + $0xfe] sm:$0x11 pattern:$0x75316420] }
 0x1fe   : > { %v3420_v15 = vcombine.high %v11404_v25, %v11404_v25  ;;  %v3442_v60 = vcombine.high %v11407_v1, %v11407_v1  ;;  %v7793_v53 = vsel %vm6980_vm8, %v7792_v13, %v7791_v54  ;;  %v3464_v46 = vcombine.high %v11414_v37, %v11414_v37 }
 0x1ff   : > { %v3390_v3 = vrot.slane %v3376_v44, %v9110_v19  ;;  %v3486_v16 = vcombine.high %v11423_v12, %v11423_v12  ;;  %v7892_v43 = vpack.c.b16 %v7793_v53, %v7765_v30  ;;  %v3412_v62 = vrot.slane %v3398_v51, %v9110_v19  ;;  %v11497_v51 = vld.sshfl [vmem:[%s9092_s7 + $0x1e0] sm:$0x11 pattern:$0x75316420] }
 0x200   : > { %v3434_v24 = vrot.slane %v3420_v15, %v9110_v19  ;;  %v3456_v10 = vrot.slane %v3442_v60, %v9110_v19  ;;  %v3478_v27 = vrot.slane %v3464_v46, %v9110_v19  ;;  %v3508_v14 = vcombine.high %v11433_v40, %v11433_v40  ;;  %v11500_v15 = vld.sshfl [vmem:[%s9092_s7 + $0x1e2] sm:$0x11 pattern:$0x75316420] }
 0x201   : > { %v3500_v17 = vrot.slane %v3486_v16, %v9110_v19  ;;  %v3530_v55 = vcombine.high %v11436_v31, %v11436_v31  ;;  %8170 = vmatmul.mubr.bf16.gmra.mrb[24].mxu1 %v7892_v43  ;;  %v3552_v20 = vcombine.high %v11443_v2, %v11443_v2  ;;  %v3574_v7 = vcombine.high %v11446_v5, %v11446_v5  ;;  %v11505_v43 = vld.sshfl [vmem:[%s9092_s7 + $0x1e4] sm:$0x11 pattern:$0x75316420] }
 0x202   : > { %v3596_v4 = vcombine.high %v11453_v21, %v11453_v21  ;;  %v3618_v9 = vcombine.high %v11463_v0, %v11463_v0  ;;  %v3522_v18 = vrot.slane %v3508_v14, %v9110_v19  ;;  %v6674_v29 = vunpack.c.l.b16 %v11426_v26 }
 0x203   : > { %v3544_v49 = vrot.slane %v3530_v55, %v9110_v19  ;;  %v6676_v45 = vunpack.c.l.b16 %v3324_v56  ;;  %v3566_v58 = vrot.slane %v3552_v20, %v9110_v19  ;;  %v3588_v32 = vrot.slane %v3574_v7, %v9110_v19 }
 0x204   : > { %v3610_v13 = vrot.slane %v3596_v4, %v9110_v19  ;;  %v3632_v57 = vrot.slane %v3618_v9, %v9110_v19  ;;  %v6678_v36 = vunpack.c.l.b16 %v3346_v48  ;;  %v6680_v33 = vunpack.c.l.b16 %v3368_v22 }
 0x205   : > { %v6682_v35 = vunpack.c.l.b16 %v3390_v3  ;;  %v6684_v42 = vunpack.c.l.b16 %v3412_v62  ;;  %v6686_v34 = vunpack.c.l.b16 %v3434_v24  ;;  %v6688_v6 = vunpack.c.l.b16 %v3456_v10  ;;  %v11494_v26 = vpop.f32.mrb[12].mxu1  ;;  %v11508_v62 = vld.sshfl [vmem:[%s9092_s7 + $0x1e6] sm:$0x11 pattern:$0x75316420] }
 0x206   : > { %v6690_v50 = vunpack.c.l.b16 %v3478_v27  ;;  %v6692_v8 = vunpack.c.l.b16 %v3500_v17  ;;  %12027 = vst [vmem:[#allocation10_spill] sm:$0xff] %v11494_v26  ;;  %v6694_v28 = vunpack.c.l.b16 %v3522_v18  ;;  %v6696_v52 = vunpack.c.l.b16 %v3544_v49  ;;  %v8149_v59 = vpop.f32.mrb[13].mxu1 }
 0x207   : > { %v6698_v56 = vunpack.c.l.b16 %v3566_v58  ;;  %v6700_v30 = vunpack.c.l.b16 %v3588_v32  ;;  %v6702_v44 = vunpack.c.l.b16 %v3610_v13  ;;  %v6704_v48 = vunpack.c.l.b16 %v3632_v57  ;;  %v11502_v60 = vpop.f32.mrb[14].mxu1  ;;  %v11515_v58 = vld.sshfl [vmem:[%s9092_s7 + $0x1e8] sm:$0x11 pattern:$0x75316420] }
 0x208   : > { %v7374_v22 = vrot.slane %v6676_v45, 7  ;;  %v7376_v54 = vrot.slane %v6678_v36, 6  ;;  %12028 = vst [vmem:[#allocation12_spill] sm:$0xff] %v11502_v60  ;;  %v7378_v53 = vrot.slane %v6680_v33, 5  ;;  %v7380_v3 = vrot.slane %v6682_v35, 4  ;;  %v8152_v24 = vpop.f32.mrb[15].mxu1 }
 0x209   : > { %v7382_v46 = vrot.slane %v6684_v42, 3  ;;  %v7384_v16 = vrot.slane %v6686_v34, 2  ;;  %v7386_v27 = vrot.slane %v6688_v6, 1  ;;  %v7402_v17 = vrot.slane %v6692_v8, 7 }
 0x20a   : > { %v7375_v10 = vsel %vm6962_vm2, %v7374_v22, %v6674_v29  ;;  %v7404_v14 = vrot.slane %v6694_v28, 6  ;;  %v7406_v20 = vrot.slane %v6696_v52, 5  ;;  %v7408_v7 = vrot.slane %v6698_v56, 4 }
 0x20b   : > { %v7377_v55 = vsel %vm6965_vm3, %v7376_v54, %v7375_v10  ;;  %v7410_v4 = vrot.slane %v6700_v30, 3  ;;  %v7403_v18 = vsel %vm6962_vm2, %v7402_v17, %v6690_v50  ;;  %v7412_v49 = vrot.slane %v6702_v44, 2  ;;  %v11518_v29 = vld.sshfl [vmem:[%s9092_s7 + $0x1ea] sm:$0x11 pattern:$0x75316420] }
 0x20c   : > { %v7379_v9 = vsel %vm6968_vm4, %v7378_v53, %v7377_v55  ;;  %v7414_v45 = vrot.slane %v6704_v48, 1  ;;  %v11521_v32 = vld.sshfl [vmem:[%s9092_s7 + $0x1ec] sm:$0x11 pattern:$0x75316420]  ;;  %v7405_v57 = vsel %vm6965_vm3, %v7404_v14, %v7403_v18  ;;  %v6104_v35 = vcombine.high %v11497_v51, %v11497_v51 }
 0x20d   : > { %v7381_v13 = vsel %vm6971_vm5, %v7380_v3, %v7379_v9  ;;  %v11526_v36 = vld.sshfl [vmem:[%s9092_s7 + $0x1ee] sm:$0x11 pattern:$0x75316420]  ;;  %v6126_v42 = vcombine.high %v11500_v15, %v11500_v15  ;;  %v7407_v6 = vsel %vm6968_vm4, %v7406_v20, %v7405_v57  ;;  %v6148_v8 = vcombine.high %v11505_v43, %v11505_v43 }
 0x20e   : > { %v11529_v33 = vld.sshfl [vmem:[%s9092_s7 + $0x1f0] sm:$0x11 pattern:$0x75316420]  ;;  %v7383_v34 = vsel %vm6974_vm6, %v7382_v46, %v7381_v13  ;;  %v6170_v28 = vcombine.high %v11508_v62, %v11508_v62  ;;  %v7409_v56 = vsel %vm6971_vm5, %v7408_v7, %v7407_v6  ;;  %v6118_v59 = vrot.slane %v6104_v35, %v9110_v19 }
 0x20f   : > { %v11538_v50 = vld.sshfl [vmem:[%s9092_s7 + $0x1f2] sm:$0x11 pattern:$0x75316420]  ;;  %v7385_v52 = vsel %vm6977_vm7, %v7384_v16, %v7383_v34  ;;  %v6140_v44 = vrot.slane %v6126_v42, %v9110_v19  ;;  %v7411_v22 = vsel %vm6974_vm6, %v7410_v4, %v7409_v56  ;;  %v6162_v3 = vrot.slane %v6148_v8, %v9110_v19 }
 0x210   : > { %v11547_v30 = vld.sshfl [vmem:[%s9092_s7 + $0x1f4] sm:$0x11 pattern:$0x75316420]  ;;  %v7387_v48 = vsel %vm6980_vm8, %v7386_v27, %v7385_v52  ;;  %v6184_v46 = vrot.slane %v6170_v28, %v9110_v19  ;;  %v7413_v16 = vsel %vm6977_vm7, %v7412_v49, %v7411_v22  ;;  %v6192_v10 = vcombine.high %v11515_v58, %v11515_v58 }
 0x211   : > { %v11554_v54 = vld.sshfl [vmem:[%s9092_s7 + $0x1f6] sm:$0x11 pattern:$0x75316420]  ;;  %v6214_v27 = vcombine.high %v11518_v29, %v11518_v29  ;;  %v6236_v17 = vcombine.high %v11521_v32, %v11521_v32  ;;  %v7415_v14 = vsel %vm6980_vm8, %v7414_v45, %v7413_v16  ;;  %v6258_v20 = vcombine.high %v11526_v36, %v11526_v36 }
 0x212   : > { %12029 = vst [vmem:[#allocation18_spill] sm:$0xff] %v11554_v54  ;;  %v11557_v53 = vld.sshfl [vmem:[%s9092_s7 + $0x1f8] sm:$0x11 pattern:$0x75316420]  ;;  %v6280_v7 = vcombine.high %v11529_v33, %v11529_v33  ;;  %v6302_v4 = vcombine.high %v11538_v50, %v11538_v50  ;;  %v7879_v9 = vpack.c.b16 %v7415_v14, %v7387_v48  ;;  %v6206_v49 = vrot.slane %v6192_v10, %v9110_v19 }
 0x213   : > { %12030 = vst [vmem:[#allocation19_spill] sm:$0xff] %v11557_v53  ;;  %v11563_v24 = vld.sshfl [vmem:[%s9092_s7 + $0x1fa] sm:$0x11 pattern:$0x75316420]  ;;  %v6228_v13 = vrot.slane %v6214_v27, %v9110_v19  ;;  %v6250_v45 = vrot.slane %v6236_v17, %v9110_v19  ;;  %v6272_v57 = vrot.slane %v6258_v20, %v9110_v19  ;;  %v6324_v34 = vcombine.high %v11547_v30, %v11547_v30 }
 0x214   : > { %12031 = vst [vmem:[#allocation20_spill] sm:$0xff] %v11563_v24  ;;  %v11573_v55 = vld.sshfl [vmem:[%s9092_s7 + $0x1fc] sm:$0x11 pattern:$0x75316420]  ;;  %v6294_v35 = vrot.slane %v6280_v7, %v9110_v19  ;;  %v6316_v42 = vrot.slane %v6302_v4, %v9110_v19  ;;  %8859 = vmatprep.mubr.msk.bf16.mxu0 %vm7969_vm9, %v7879_v9  ;;  %v6346_v6 = vcombine.high %v11554_v54, %v11554_v54  ;;  %v6930_v22 = vunpack.c.l.b16 %v6118_v59 }
 0x215   : > { %12032 = vst [vmem:[#allocation21_spill] sm:$0xff] %v11573_v55  ;;  %v11582_v18 = vld.sshfl [vmem:[%s9092_s7 + $0x1fe] sm:$0x11 pattern:$0x75316420]  ;;  %v6368_v8 = vcombine.high %v11557_v53, %v11557_v53  ;;  %v6390_v28 = vcombine.high %v11563_v24, %v11563_v24  ;;  %v6412_v52 = vcombine.high %v11573_v55, %v11573_v55  ;;  %v6338_v56 = vrot.slane %v6324_v34, %v9110_v19 }
 0x216   : > { %12033 = vst [vmem:[#allocation22_spill] sm:$0xff] %v11582_v18  ;;  %v6434_v48 = vcombine.high %v11582_v18, %v11582_v18  ;;  %v6932_v16 = vunpack.c.l.b16 %v6140_v44  ;;  %v6360_v10 = vrot.slane %v6346_v6, %v9110_v19  ;;  %v6934_v7 = vunpack.c.l.b16 %v6162_v3 }
 0x217   : > { %v6382_v27 = vrot.slane %v6368_v8, %v9110_v19  ;;  %v6404_v17 = vrot.slane %v6390_v28, %v9110_v19  ;;  %v6426_v14 = vrot.slane %v6412_v52, %v9110_v19  ;;  %v6936_v4 = vunpack.c.l.b16 %v6184_v46 }
 0x218   : > { %v6448_v20 = vrot.slane %v6434_v48, %v9110_v19  ;;  %v6938_v9 = vunpack.c.l.b16 %v6206_v49  ;;  %v6940_v60 = vunpack.c.l.b16 %v6228_v13  ;;  %v6942_v34 = vunpack.c.l.b16 %v6250_v45 }
 0x219   : > { %v6944_v61 = vunpack.c.l.b16 %v6272_v57  ;;  %v6946_v26 = vunpack.c.l.b16 %v6294_v35  ;;  %v6948_v39 = vunpack.c.l.b16 %v6316_v42  ;;  %v6950_v59 = vunpack.c.l.b16 %v6338_v56 }
 0x21a   : > { %v6952_v44 = vunpack.c.l.b16 %v6360_v10  ;;  %v6954_v18 = vunpack.c.l.b16 %v6382_v27  ;;  %v6956_v6 = vunpack.c.l.b16 %v6404_v17  ;;  %v6958_v55 = vunpack.c.l.b16 %v6426_v14 }
 0x21b   : > { %v6960_v8 = vunpack.c.l.b16 %v6448_v20  ;;  %v7822_v24 = vrot.slane %v6932_v16, 7  ;;  %v7824_v28 = vrot.slane %v6934_v7, 6  ;;  %v7826_v53 = vrot.slane %v6936_v4, 5 }
 0x21c   : > { %v7828_v52 = vrot.slane %v6938_v9, 4  ;;  %v7830_v54 = vrot.slane %v6940_v60, 3  ;;  %v7832_v46 = vrot.slane %v6942_v34, 2  ;;  %v7834_v49 = vrot.slane %v6944_v61, 1 }
 0x21d   : > { %v7823_v3 = vsel %vm6962_vm2, %v7822_v24, %v6930_v22  ;;  %v7850_v13 = vrot.slane %v6948_v39, 7  ;;  %v7852_v57 = vrot.slane %v6950_v59, 6  ;;  %v7854_v35 = vrot.slane %v6952_v44, 5 }
 0x21e   : > { %v7825_v45 = vsel %vm6965_vm3, %v7824_v28, %v7823_v3  ;;  %v7856_v42 = vrot.slane %v6954_v18, 4  ;;  %v7858_v10 = vrot.slane %v6956_v6, 3  ;;  %v7860_v16 = vrot.slane %v6958_v55, 2 }
 0x21f   : > { %v7827_v56 = vsel %vm6968_vm4, %v7826_v53, %v7825_v45  ;;  %v7851_v48 = vsel %vm6962_vm2, %v7850_v13, %v6946_v26  ;;  %v7862_v17 = vrot.slane %v6960_v8, 1  ;;  %v3295_v61 = vrot.slane %v11378_v23, %v9110_v19 }
 0x220   : > { %v7829_v27 = vsel %vm6971_vm5, %v7828_v52, %v7827_v56  ;;  %v7853_v60 = vsel %vm6965_vm3, %v7852_v57, %v7851_v48  ;;  %v3317_v18 = vrot.slane %v11381_v11, %v9110_v19  ;;  %v3339_v26 = vrot.slane %v11384_v63, %v9110_v19 }
 0x221   : > { %v7831_v39 = vsel %vm6974_vm6, %v7830_v54, %v7829_v27  ;;  %v7855_v24 = vsel %vm6968_vm4, %v7854_v35, %v7853_v60  ;;  %v3361_v22 = vrot.slane %v11387_v41, %v9110_v19  ;;  %v3383_v23 = vrot.slane %v11394_v38, %v9110_v19 }
 0x222   : > { %v7833_v53 = vsel %vm6977_vm7, %v7832_v46, %v7831_v39  ;;  %v7857_v55 = vsel %vm6971_vm5, %v7856_v42, %v7855_v24  ;;  %v3405_v11 = vrot.slane %v11401_v47, %v9110_v19  ;;  %v3427_v63 = vrot.slane %v11404_v25, %v9110_v19 }
 0x223   : > { %v7835_v54 = vsel %vm6980_vm8, %v7834_v49, %v7833_v53  ;;  %v7859_v14 = vsel %vm6974_vm6, %v7858_v10, %v7857_v55  ;;  %v3449_v7 = vrot.slane %v11407_v1, %v9110_v19  ;;  %v3471_v41 = vrot.slane %v11414_v37, %v9110_v19 }
 0x224   : > { %v7861_v20 = vsel %vm6977_vm7, %v7860_v16, %v7859_v14  ;;  %v3493_v38 = vrot.slane %v11423_v12, %v9110_v19  ;;  %v3515_v9 = vrot.slane %v11433_v40, %v9110_v19  ;;  %v3537_v47 = vrot.slane %v11436_v31, %v9110_v19 }
 0x225   : > { %v7863_v4 = vsel %vm6980_vm8, %v7862_v17, %v7861_v20  ;;  %v3559_v25 = vrot.slane %v11443_v2, %v9110_v19  ;;  %v3581_v1 = vrot.slane %v11446_v5, %v9110_v19  ;;  %v3603_v37 = vrot.slane %v11453_v21, %v9110_v19 }
 0x226   : > { %v7895_v34 = vpack.c.b16 %v7863_v4, %v7835_v54  ;;  %v3625_v12 = vrot.slane %v11463_v0, %v9110_v19  ;;  %v6673_v59 = vunpack.c.l.b16 %v3295_v61  ;;  %v6675_v44 = vunpack.c.l.b16 %v3317_v18 }
 0x227   : > { %v6677_v6 = vunpack.c.l.b16 %v3339_v26  ;;  %v6679_v40 = vunpack.c.l.b16 %v3361_v22  ;;  %v6681_v31 = vunpack.c.l.b16 %v3383_v23  ;;  %v6683_v8 = vunpack.c.l.b16 %v3405_v11 }
 0x228   : > { %8867 = vmatprep.mubr.msk.bf16.mxu1 %vm7969_vm9, %v7895_v34  ;;  %v6685_v28 = vunpack.c.l.b16 %v3427_v63  ;;  %v6687_v2 = vunpack.c.l.b16 %v3449_v7  ;;  %v6689_v52 = vunpack.c.l.b16 %v3471_v41  ;;  %v6691_v3 = vunpack.c.l.b16 %v3493_v38 }
 0x229   : > { %v6693_v46 = vunpack.c.l.b16 %v3515_v9  ;;  %v6695_v5 = vunpack.c.l.b16 %v3537_v47  ;;  %v6697_v49 = vunpack.c.l.b16 %v3559_v25  ;;  %v6699_v13 = vunpack.c.l.b16 %v3581_v1 }
 0x22a   : > { %v6701_v21 = vunpack.c.l.b16 %v3603_v37  ;;  %v6703_v45 = vunpack.c.l.b16 %v3625_v12  ;;  %v7360_v57 = vrot.slane %v6675_v44, 7  ;;  %v7362_v0 = vrot.slane %v6677_v6, 6  ;;  %v12035_v12 = vld [vmem:[#allocation19_spill] sm:$0xff] }
 0x22b   : > { %v7364_v35 = vrot.slane %v6679_v40, 5  ;;  %v7366_v42 = vrot.slane %v6681_v31, 4  ;;  %v7368_v56 = vrot.slane %v6683_v8, 3  ;;  %v7370_v48 = vrot.slane %v6685_v28, 2 }
 0x22c   : > { %v7372_v10 = vrot.slane %v6687_v2, 1  ;;  %v7388_v16 = vrot.slane %v6691_v3, 7  ;;  %v7361_v27 = vsel %vm6962_vm2, %v7360_v57, %v6673_v59  ;;  %v7390_v60 = vrot.slane %v6693_v46, 6 }
 0x22d   : > { %v7392_v17 = vrot.slane %v6695_v5, 5  ;;  %v7394_v61 = vrot.slane %v6697_v49, 4  ;;  %v7363_v39 = vsel %vm6965_vm3, %v7362_v0, %v7361_v27  ;;  %v7396_v18 = vrot.slane %v6699_v13, 3 }
 0x22e   : > { %v7389_v24 = vsel %vm6962_vm2, %v7388_v16, %v6689_v52  ;;  %v7398_v26 = vrot.slane %v6701_v21, 2  ;;  %v7365_v53 = vsel %vm6968_vm4, %v7364_v35, %v7363_v39  ;;  %v7400_v22 = vrot.slane %v6703_v45, 1 }
 0x22f   : > { %v7391_v55 = vsel %vm6965_vm3, %v7390_v60, %v7389_v24  ;;  %v6111_v23 = vrot.slane %v11497_v51, %v9110_v19  ;;  %v7367_v54 = vsel %vm6971_vm5, %v7366_v42, %v7365_v53  ;;  %v6133_v11 = vrot.slane %v11500_v15, %v9110_v19 }
 0x230   : > { %v7393_v14 = vsel %vm6968_vm4, %v7392_v17, %v7391_v55  ;;  %v6155_v63 = vrot.slane %v11505_v43, %v9110_v19  ;;  %v7369_v20 = vsel %vm6974_vm6, %v7368_v56, %v7367_v54  ;;  %v6177_v41 = vrot.slane %v11508_v62, %v9110_v19  ;;  %v11727_v54 = vld [vmem:[%s11907_s3] ss:$0 sm:$0xff] }
 0x231   : > { %v7395_v7 = vsel %vm6971_vm5, %v7394_v61, %v7393_v14  ;;  %v6199_v51 = vrot.slane %v11515_v58, %v9110_v19  ;;  %v7371_v38 = vsel %vm6977_vm7, %v7370_v48, %v7369_v20  ;;  %v6221_v15 = vrot.slane %v11518_v29, %v9110_v19  ;;  %v11712_v48 = vld [vmem:[%s11906_s2] ss:$0 sm:$0xff] }
 0x232   : > { %v7397_v4 = vsel %vm6974_vm6, %v7396_v18, %v7395_v7  ;;  %v6243_v43 = vrot.slane %v11521_v32, %v9110_v19  ;;  %v7373_v9 = vsel %vm6980_vm8, %v7372_v10, %v7371_v38  ;;  %v6265_v62 = vrot.slane %v11526_v36, %v9110_v19  ;;  %v12034_v32 = vld [vmem:[#allocation18_spill] sm:$0xff]  ;;  %v12036_v36 = vld [vmem:[#allocation20_spill] sm:$0xff] }
 0x233   : > { %v7399_v47 = vsel %vm6977_vm7, %v7398_v26, %v7397_v4  ;;  %v6287_v58 = vrot.slane %v11529_v33, %v9110_v19  ;;  %v6309_v34 = vrot.slane %v11538_v50, %v9110_v19  ;;  %v6331_v29 = vrot.slane %v11547_v30, %v9110_v19  ;;  %v12037_v33 = vld [vmem:[#allocation21_spill] sm:$0xff]  ;;  %v12038_v50 = vld [vmem:[#allocation22_spill] sm:$0xff] }
 0x234   : > { %v7401_v25 = vsel %vm6980_vm8, %v7400_v22, %v7399_v47  ;;  %v6353_v1 = vrot.slane %v12034_v32, %v9110_v19  ;;  %v6375_v59 = vrot.slane %v12035_v12, %v9110_v19  ;;  %v6397_v44 = vrot.slane %v12036_v36, %v9110_v19  ;;  %v12040_v7 = vld [vmem:[#allocation2_spill] sm:$0xff] }
 0x235   : > { %v7878_v37 = vpack.c.b16 %v7401_v25, %v7373_v9  ;;  %v6419_v6 = vrot.slane %v12037_v33, %v9110_v19  ;;  %v6441_v40 = vrot.slane %v12038_v50, %v9110_v19  ;;  %v6929_v31 = vunpack.c.l.b16 %v6111_v23 }
 0x236   : > { %v6931_v30 = vunpack.c.l.b16 %v6133_v11  ;;  %v6933_v8 = vunpack.c.l.b16 %v6155_v63  ;;  %v6935_v28 = vunpack.c.l.b16 %v6177_v41  ;;  %v6937_v2 = vunpack.c.l.b16 %v6199_v51 }
 0x237   : > { %8114 = vmatmul.mubr.bf16.gmra.mrb[28].mxu0 %v7878_v37  ;;  %v6939_v52 = vunpack.c.l.b16 %v6221_v15  ;;  %v6941_v3 = vunpack.c.l.b16 %v6243_v43  ;;  %v6943_v46 = vunpack.c.l.b16 %v6265_v62  ;;  %v6945_v5 = vunpack.c.l.b16 %v6287_v58  ;;  %v12041_v15 = vld [vmem:[#allocation3_spill] sm:$0xff]  ;;  %v12042_v58 = vld [vmem:[#allocation4_spill] sm:$0xff] }
 0x238   : > { %v6947_v49 = vunpack.c.l.b16 %v6309_v34  ;;  %v6949_v13 = vunpack.c.l.b16 %v6331_v29  ;;  %v6951_v21 = vunpack.c.l.b16 %v6353_v1  ;;  %v6953_v45 = vunpack.c.l.b16 %v6375_v59  ;;  %v12043_v1 = vld [vmem:[#allocation5_spill] sm:$0xff] }
 0x239   : > { %v6955_v19 = vunpack.c.l.b16 %v6397_v44  ;;  %v6957_v57 = vunpack.c.l.b16 %v6419_v6  ;;  %v6959_v0 = vunpack.c.l.b16 %v6441_v40  ;;  %v7808_v35 = vrot.slane %v6931_v30, 7  ;;  %v12044_v40 = vld [vmem:[#allocation7_spill] sm:$0xff] }
 0x23a   : > { %v7810_v42 = vrot.slane %v6933_v8, 6  ;;  %v7812_v56 = vrot.slane %v6935_v28, 5  ;;  %v7814_v10 = vrot.slane %v6937_v2, 4  ;;  %v7816_v16 = vrot.slane %v6939_v52, 3  ;;  %v11714_v17 = vpop.f32.mrb[16].mxu0  ;;  %v12045_v2 = vld [vmem:[#allocation9_spill] sm:$0xff] }
 0x23b   : > { %v7818_v27 = vrot.slane %v6941_v3, 2  ;;  %v7820_v60 = vrot.slane %v6943_v46, 1  ;;  %v7809_v61 = vsel %vm6962_vm2, %v7808_v35, %v6929_v31  ;;  %v7836_v39 = vrot.slane %v6947_v49, 7  ;;  %v8093_v26 = vpop.f32.mrb[17].mxu0 }
 0x23c   : > { %v7838_v24 = vrot.slane %v6949_v13, 6  ;;  %v7840_v18 = vrot.slane %v6951_v21, 5  ;;  %v7811_v53 = vsel %vm6965_vm3, %v7810_v42, %v7809_v61  ;;  %v7842_v55 = vrot.slane %v6953_v45, 4  ;;  %v11729_v14 = vpop.f32.mrb[18].mxu0  ;;  %v12046_v45 = vld [vmem:[#allocation11_spill] sm:$0xff] }
 0x23d   : > { %v7844_v22 = vrot.slane %v6955_v19, 3  ;;  %v7846_v23 = vrot.slane %v6957_v57, 2  ;;  %v7813_v11 = vsel %vm6968_vm4, %v7812_v56, %v7811_v53  ;;  %v7837_v63 = vsel %vm6962_vm2, %v7836_v39, %v6945_v5  ;;  %v8096_v51 = vpop.f32.mrb[19].mxu0  ;;  %v12047_v57 = vld [vmem:[#allocation13_spill] sm:$0xff]  ;;  %v12048_v56 = vld [vmem:[#allocation14_spill] sm:$0xff] }
 0x23e   : > { %v7848_v20 = vrot.slane %v6959_v0, 1  ;;  %v8193_v41 = vmul.f32 %v11712_v48, %v12040_v7  ;;  %v7815_v38 = vsel %vm6971_vm5, %v7814_v10, %v7813_v11  ;;  %v7839_v4 = vsel %vm6965_vm3, %v7838_v24, %v7837_v63  ;;  %v12050_v24 = vld [vmem:[#allocation16_spill] sm:$0xff] }
 0x23f   : > { %v8209_v43 = vmul.f32 %v11712_v48, %v12041_v15  ;;  %v7817_v9 = vsel %vm6974_vm6, %v7816_v16, %v7815_v38  ;;  %v7841_v47 = vsel %vm6968_vm4, %v7840_v18, %v7839_v4  ;;  %v8194_v25 = vmul.f32 %v11712_v48, %v12042_v58  ;;  %v12049_v16 = vld [vmem:[#allocation15_spill] sm:$0xff]  ;;  %v12052_v4 = vld [vmem:[#allocation6_spill] sm:$0xff] }
 0x240   : > { %v8232_v62 = vadd.f32 %v11727_v54, %v8193_v41  ;;  %v7819_v34 = vsel %vm6977_vm7, %v7818_v27, %v7817_v9  ;;  %v7843_v29 = vsel %vm6971_vm5, %v7842_v55, %v7841_v47  ;;  %v8210_v37 = vmul.f32 %v11712_v48, %v12043_v1  ;;  %v12053_v58 = vld [vmem:[#allocation10_spill] sm:$0xff] }
 0x241   : > { %v8248_v32 = vadd.f32 %v11727_v54, %v8209_v43  ;;  %v7821_v12 = vsel %vm6980_vm8, %v7820_v60, %v7819_v34  ;;  %v7845_v59 = vsel %vm6974_vm6, %v7844_v22, %v7843_v29  ;;  %v8233_v44 = vadd.f32 %v11727_v54, %v8194_v25  ;;  %v12051_v22 = vld [vmem:[#allocation17_spill] sm:$0xff] }
 0x242   : > { %v8264_v36 = vmax.f32 %v8232_v62, 0.0  ;;  %v7847_v33 = vsel %vm6977_vm7, %v7846_v23, %v7845_v59  ;;  %v8249_v50 = vadd.f32 %v11727_v54, %v8210_v37  ;;  %v8195_v31 = vmul.f32 %v11712_v48, %v12044_v40 }
 0x243   : > { %v8280_v6 = vmax.f32 %v8248_v32, 0.0  ;;  %v7849_v30 = vsel %vm6980_vm8, %v7848_v20, %v7847_v33  ;;  %v8265_v28 = vmax.f32 %v8233_v44, 0.0  ;;  %v8211_v52 = vmul.f32 %v11712_v48, %v12045_v2  ;;  %v12054_v44 = vld [vmem:[#allocation8_spill] sm:$0xff] }
 0x244   : > { %v8904_v8 = vpack.c.bf16 %v8264_v36, %v8264_v36  ;;  %v7894_v3 = vpack.c.b16 %v7849_v30, %v7821_v12  ;;  %v8281_v5 = vmax.f32 %v8249_v50, 0.0  ;;  %v8234_v49 = vadd.f32 %v11727_v54, %v8195_v31 }
 0x245   : > { %v8920_v46 = vpack.c.bf16 %v8280_v6, %v8280_v6  ;;  %v8905_v13 = vpack.c.bf16 %v8265_v28, %v8265_v28  ;;  %v8250_v21 = vadd.f32 %v11727_v54, %v8211_v52  ;;  %v8196_v19 = vmul.f32 %v11712_v48, %v12046_v45  ;;  %v12055_v6 = vld [vmem:[#allocation12_spill] sm:$0xff] }
 0x246   : > { %8425 = vst.msk [vmem:[%s11757_s30] sm:$0xf] %vm8424_vm10, %v8904_v8  ;;  %v8212_v0 = vmul.f32 %v11712_v48, %v12047_v57  ;;  %8178 = vmatmul.mubr.bf16.gmra.mrb[28].mxu1 %v7894_v3  ;;  %v8921_v35 = vpack.c.bf16 %v8281_v5, %v8281_v5  ;;  %v8266_v42 = vmax.f32 %v8234_v49, 0.0  ;;  %v8197_v10 = vmul.f32 %v11712_v48, %v12048_v56 }
 0x247   : > { %8441 = vst.msk [vmem:[%s11757_s30 + $0x40] sm:$0xf] %vm8424_vm10, %v8920_v46  ;;  %v8213_v27 = vmul.f32 %v11712_v48, %v12049_v16  ;;  %8426 = vst.msk [vmem:[%s11757_s30 + $0x4] sm:$0xf] %vm8424_vm10, %v8905_v13  ;;  %v8282_v60 = vmax.f32 %v8250_v21, 0.0  ;;  %v8235_v61 = vadd.f32 %v11727_v54, %v8196_v19  ;;  %v8198_v18 = vmul.f32 %v11712_v48, %v12050_v24 }
 0x248   : > { %v8251_v39 = vadd.f32 %v11727_v54, %v8212_v0  ;;  %8442 = vst.msk [vmem:[%s11757_s30 + $0x44] sm:$0xf] %vm8424_vm10, %v8921_v35  ;;  %v8906_v26 = vpack.c.bf16 %v8266_v42, %v8266_v42  ;;  %v8236_v53 = vadd.f32 %v11727_v54, %v8197_v10  ;;  %v8214_v23 = vmul.f32 %v11712_v48, %v12051_v22 }
 0x249   : > { %v8252_v55 = vadd.f32 %v11727_v54, %v8213_v27  ;;  %v8922_v11 = vpack.c.bf16 %v8282_v60, %v8282_v60  ;;  %v8267_v63 = vmax.f32 %v8235_v61, 0.0  ;;  %v8237_v7 = vadd.f32 %v11727_v54, %v8198_v18 }
 0x24a   : > { %v8283_v20 = vmax.f32 %v8251_v39, 0.0  ;;  %8427 = vst.msk [vmem:[%s11757_s30 + $0x8] sm:$0xf] %vm8424_vm10, %v8906_v26  ;;  %v8268_v41 = vmax.f32 %v8236_v53, 0.0  ;;  %v8253_v38 = vadd.f32 %v11727_v54, %v8214_v23  ;;  %v8199_v15 = vmul.f32 %v11712_v48, %v12052_v4  ;;  %v8155_v43 = vpop.f32.mrb[16].mxu1 }
 0x24b   : > { %v8284_v51 = vmax.f32 %v8252_v55, 0.0  ;;  %8443 = vst.msk [vmem:[%s11757_s30 + $0x48] sm:$0xf] %vm8424_vm10, %v8922_v11  ;;  %v8907_v9 = vpack.c.bf16 %v8267_v63, %v8267_v63  ;;  %v8269_v62 = vmax.f32 %v8237_v7, 0.0  ;;  %v8215_v25 = vmul.f32 %v11712_v48, %v12053_v58  ;;  %v8157_v34 = vpop.f32.mrb[17].mxu1 }
 0x24c   : > { %v8923_v47 = vpack.c.bf16 %v8283_v20, %v8283_v20  ;;  %v8908_v29 = vpack.c.bf16 %v8268_v41, %v8268_v41  ;;  %v8285_v1 = vmax.f32 %v8253_v38, 0.0  ;;  %v8238_v37 = vadd.f32 %v11727_v54, %v8199_v15  ;;  %v8158_v12 = vpop.f32.mrb[18].mxu1 }
 0x24d   : > { %v8924_v32 = vpack.c.bf16 %v8284_v51, %v8284_v51  ;;  %8428 = vst.msk [vmem:[%s11757_s30 + $0xc] sm:$0xf] %vm8424_vm10, %v8907_v9  ;;  %v8909_v59 = vpack.c.bf16 %v8269_v62, %v8269_v62  ;;  %v8254_v36 = vadd.f32 %v11727_v54, %v8215_v25  ;;  %v8200_v33 = vmul.f32 %v11712_v48, %v12054_v44  ;;  %v8160_v40 = vpop.f32.mrb[19].mxu1 }
 0x24e   : > { %8444 = vst.msk [vmem:[%s11757_s30 + $0x4c] sm:$0xf] %vm8424_vm10, %v8923_v47  ;;  %v8216_v50 = vmul.f32 %v11712_v48, %v12055_v6  ;;  %8429 = vst.msk [vmem:[%s11757_s30 + $0x10] sm:$0xf] %vm8424_vm10, %v8908_v29  ;;  %v8925_v31 = vpack.c.bf16 %v8285_v1, %v8285_v1  ;;  %v8270_v30 = vmax.f32 %v8238_v37, 0.0  ;;  %v8201_v8 = vmul.f32 %v11712_v48, %v11714_v17 }
 0x24f   : > { %8445 = vst.msk [vmem:[%s11757_s30 + $0x50] sm:$0xf] %vm8424_vm10, %v8924_v32  ;;  %v8217_v28 = vmul.f32 %v11712_v48, %v8155_v43  ;;  %8430 = vst.msk [vmem:[%s11757_s30 + $0x14] sm:$0xf] %vm8424_vm10, %v8909_v59  ;;  %v8286_v2 = vmax.f32 %v8254_v36, 0.0  ;;  %v8239_v52 = vadd.f32 %v11727_v54, %v8200_v33  ;;  %v8202_v46 = vmul.f32 %v11712_v48, %v11729_v14 }
 0x250   : > { %v8255_v3 = vadd.f32 %v11727_v54, %v8216_v50  ;;  %8446 = vst.msk [vmem:[%s11757_s30 + $0x54] sm:$0xf] %vm8424_vm10, %v8925_v31  ;;  %v8910_v5 = vpack.c.bf16 %v8270_v30, %v8270_v30  ;;  %v8240_v49 = vadd.f32 %v11727_v54, %v8201_v8  ;;  %v8218_v13 = vmul.f32 %v11712_v48, %v8158_v12 }
 0x251   : > { %v8256_v17 = vadd.f32 %v11727_v54, %v8217_v28  ;;  %v8926_v21 = vpack.c.bf16 %v8286_v2, %v8286_v2  ;;  %v8271_v45 = vmax.f32 %v8239_v52, 0.0  ;;  %v8241_v57 = vadd.f32 %v11727_v54, %v8202_v46 }
 0x252   : > { %v8287_v19 = vmax.f32 %v8255_v3, 0.0  ;;  %8431 = vst.msk [vmem:[%s11757_s30 + $0x18] sm:$0xf] %vm8424_vm10, %v8910_v5  ;;  %v8272_v14 = vmax.f32 %v8240_v49, 0.0  ;;  %v8257_v35 = vadd.f32 %v11727_v54, %v8218_v13 }
 0x253   : > { %v8288_v0 = vmax.f32 %v8256_v17, 0.0  ;;  %8447 = vst.msk [vmem:[%s11757_s30 + $0x58] sm:$0xf] %vm8424_vm10, %v8926_v21  ;;  %v8911_v42 = vpack.c.bf16 %v8271_v45, %v8271_v45  ;;  %v8273_v10 = vmax.f32 %v8241_v57, 0.0 }
 0x254   : > { %v8927_v56 = vpack.c.bf16 %v8287_v19, %v8287_v19  ;;  %v8912_v16 = vpack.c.bf16 %v8272_v14, %v8272_v14  ;;  %v8289_v60 = vmax.f32 %v8257_v35, 0.0 }
 0x255   : > { %v8928_v27 = vpack.c.bf16 %v8288_v0, %v8288_v0  ;;  %8432 = vst.msk [vmem:[%s11757_s30 + $0x1c] sm:$0xf] %vm8424_vm10, %v8911_v42  ;;  %v8913_v61 = vpack.c.bf16 %v8273_v10, %v8273_v10 }
 0x256   : > { %8448 = vst.msk [vmem:[%s11757_s30 + $0x5c] sm:$0xf] %vm8424_vm10, %v8927_v56  ;;  %8433 = vst.msk [vmem:[%s11757_s30 + $0x20] sm:$0xf] %vm8424_vm10, %v8912_v16  ;;  %v8929_v39 = vpack.c.bf16 %v8289_v60, %v8289_v60 }
 0x257   : > { %8449 = vst.msk [vmem:[%s11757_s30 + $0x60] sm:$0xf] %vm8424_vm10, %v8928_v27  ;;  %8434 = vst.msk [vmem:[%s11757_s30 + $0x24] sm:$0xf] %vm8424_vm10, %v8913_v61 }
 0x258   : > { %8450 = vst.msk [vmem:[%s11757_s30 + $0x64] sm:$0xf] %vm8424_vm10, %v8929_v39 }
 0x27f   : > { %v8099_v24 = vpop.f32.mrb[20].mxu0 }
 0x280   : > { %v8203_v18 = vmul.f32 %v11712_v48, %v8099_v24  ;;  %v8101_v26 = vpop.f32.mrb[21].mxu0 }
 0x281   : > { %v8102_v53 = vpop.f32.mrb[22].mxu0 }
 0x282   : > { %v8242_v55 = vadd.f32 %v11727_v54, %v8203_v18  ;;  %v8204_v22 = vmul.f32 %v11712_v48, %v8102_v53  ;;  %v8104_v23 = vpop.f32.mrb[23].mxu0 }
 0x284   : > { %v8274_v11 = vmax.f32 %v8242_v55, 0.0  ;;  %v8243_v63 = vadd.f32 %v11727_v54, %v8204_v22 }
 0x286   : > { %v8914_v20 = vpack.c.bf16 %v8274_v11, %v8274_v11  ;;  %v8275_v7 = vmax.f32 %v8243_v63, 0.0 }
 0x288   : > { %8435 = vst.msk [vmem:[%s11757_s30 + $0x28] sm:$0xf] %vm8424_vm10, %v8914_v20  ;;  %v8915_v41 = vpack.c.bf16 %v8275_v7, %v8275_v7 }
 0x28a   : > { %8436 = vst.msk [vmem:[%s11757_s30 + $0x2c] sm:$0xf] %vm8424_vm10, %v8915_v41 }
 0x28f   : > { %v8163_v51 = vpop.f32.mrb[20].mxu1 }
 0x290   : > { %v8219_v38 = vmul.f32 %v11712_v48, %v8163_v51  ;;  %v8165_v4 = vpop.f32.mrb[21].mxu1 }
 0x291   : > { %v8166_v15 = vpop.f32.mrb[22].mxu1 }
 0x292   : > { %v8258_v43 = vadd.f32 %v11727_v54, %v8219_v38  ;;  %v8220_v9 = vmul.f32 %v11712_v48, %v8166_v15  ;;  %v8168_v47 = vpop.f32.mrb[23].mxu1 }
 0x294   : > { %v8290_v62 = vmax.f32 %v8258_v43, 0.0  ;;  %v8259_v58 = vadd.f32 %v11727_v54, %v8220_v9 }
 0x296   : > { %v8930_v25 = vpack.c.bf16 %v8290_v62, %v8290_v62  ;;  %v8291_v34 = vmax.f32 %v8259_v58, 0.0 }
 0x298   : > { %8451 = vst.msk [vmem:[%s11757_s30 + $0x68] sm:$0xf] %vm8424_vm10, %v8930_v25  ;;  %v8931_v29 = vpack.c.bf16 %v8291_v34, %v8291_v34 }
 0x29a   : > { %8452 = vst.msk [vmem:[%s11757_s30 + $0x6c] sm:$0xf] %vm8424_vm10, %v8931_v29 }
 0x2c5   : > { %v8107_v32 = vpop.f32.mrb[24].mxu0 }
 0x2c6   : > { %v8205_v1 = vmul.f32 %v11712_v48, %v8107_v32  ;;  %v8109_v37 = vpop.f32.mrb[25].mxu0 }
 0x2c7   : > { %v8110_v12 = vpop.f32.mrb[26].mxu0 }
 0x2c8   : > { %v8244_v59 = vadd.f32 %v11727_v54, %v8205_v1  ;;  %v8206_v36 = vmul.f32 %v11712_v48, %v8110_v12  ;;  %v8112_v44 = vpop.f32.mrb[27].mxu0 }
 0x2ca   : > { %v8276_v33 = vmax.f32 %v8244_v59, 0.0  ;;  %v8245_v6 = vadd.f32 %v11727_v54, %v8206_v36 }
 0x2cc   : > { %v8916_v50 = vpack.c.bf16 %v8276_v33, %v8276_v33  ;;  %v8277_v40 = vmax.f32 %v8245_v6, 0.0 }
 0x2ce   : > { %8437 = vst.msk [vmem:[%s11757_s30 + $0x30] sm:$0xf] %vm8424_vm10, %v8916_v50  ;;  %v8917_v31 = vpack.c.bf16 %v8277_v40, %v8277_v40 }
 0x2d0   : > { %8438 = vst.msk [vmem:[%s11757_s30 + $0x34] sm:$0xf] %vm8424_vm10, %v8917_v31 }
 0x2d4   : > { %v8171_v30 = vpop.f32.mrb[24].mxu1 }
 0x2d5   : > { %v8221_v8 = vmul.f32 %v11712_v48, %v8171_v30  ;;  %v8173_v28 = vpop.f32.mrb[25].mxu1 }
 0x2d6   : > { %v8174_v2 = vpop.f32.mrb[26].mxu1 }
 0x2d7   : > { %v8260_v52 = vadd.f32 %v11727_v54, %v8221_v8  ;;  %v8222_v3 = vmul.f32 %v11712_v48, %v8174_v2  ;;  %v8176_v46 = vpop.f32.mrb[27].mxu1 }
 0x2d9   : > { %v8292_v5 = vmax.f32 %v8260_v52, 0.0  ;;  %v8261_v49 = vadd.f32 %v11727_v54, %v8222_v3 }
 0x2db   : > { %v8932_v17 = vpack.c.bf16 %v8292_v5, %v8292_v5  ;;  %v8293_v13 = vmax.f32 %v8261_v49, 0.0 }
 0x2dd   : > { %8453 = vst.msk [vmem:[%s11757_s30 + $0x70] sm:$0xf] %vm8424_vm10, %v8932_v17  ;;  %v8933_v21 = vpack.c.bf16 %v8293_v13, %v8293_v13 }
 0x2df   : > { %8454 = vst.msk [vmem:[%s11757_s30 + $0x74] sm:$0xf] %vm8424_vm10, %v8933_v21 }
 0x30a   : > { %v8115_v45 = vpop.f32.mrb[28].mxu0 }
 0x30b   : > { %v8207_v19 = vmul.f32 %v11712_v48, %v8115_v45  ;;  %v8117_v57 = vpop.f32.mrb[29].mxu0 }
 0x30c   : > { %v8118_v14 = vpop.f32.mrb[30].mxu0 }
 0x30d   : > { %v8246_v0 = vadd.f32 %v11727_v54, %v8207_v19  ;;  %v8208_v35 = vmul.f32 %v11712_v48, %v8118_v14  ;;  %v8120_v42 = vpop.f32.mrb[31].mxu0 }
 0x30f   : > { %v8278_v56 = vmax.f32 %v8246_v0, 0.0  ;;  %v8247_v10 = vadd.f32 %v11727_v54, %v8208_v35 }
 0x311   : > { %v8918_v16 = vpack.c.bf16 %v8278_v56, %v8278_v56  ;;  %v8279_v27 = vmax.f32 %v8247_v10, 0.0 }
 0x313   : > { %8439 = vst.msk [vmem:[%s11757_s30 + $0x38] sm:$0xf] %vm8424_vm10, %v8918_v16  ;;  %v8919_v60 = vpack.c.bf16 %v8279_v27, %v8279_v27 }
 0x315   : > { %8440 = vst.msk [vmem:[%s11757_s30 + $0x3c] sm:$0xf] %vm8424_vm10, %v8919_v60 }
 0x319   : > { %v8179_v61 = vpop.f32.mrb[28].mxu1 }
 0x31a   : > { %v8223_v39 = vmul.f32 %v11712_v48, %v8179_v61  ;;  %v8181_v24 = vpop.f32.mrb[29].mxu1 }
 0x31b   : > { %v8182_v18 = vpop.f32.mrb[30].mxu1 }
 0x31c   : > { %v8262_v26 = vadd.f32 %v11727_v54, %v8223_v39  ;;  %v8224_v53 = vmul.f32 %v11712_v48, %v8182_v18  ;;  %v8184_v55 = vpop.f32.mrb[31].mxu1 }
 0x31e   : > { %v8294_v22 = vmax.f32 %v8262_v26, 0.0  ;;  %v8263_v23 = vadd.f32 %v11727_v54, %v8224_v53 }
 0x320   : > { %v8934_v11 = vpack.c.bf16 %v8294_v22, %v8294_v22  ;;  %v8295_v63 = vmax.f32 %v8263_v23, 0.0 }
 0x322   : > { %8455 = vst.msk [vmem:[%s11757_s30 + $0x78] sm:$0xf] %vm8424_vm10, %v8934_v11  ;;  %v8935_v20 = vpack.c.bf16 %v8295_v63, %v8295_v63 }
 0x324   : > { %8456 = vst.msk [vmem:[%s11757_s30 + $0x7c] sm:$0xf] %vm8424_vm10, %v8935_v20 }
 0x325 PF: > { %s14_s17 = sadd.s32 1, %s9015_s17   ;;  %s12056_s15 = smov %s9011_s16 }
 0x326   : > { %p11_p6 = scmp.ge.s32.totalorder %s14_s17, 10   ;;  %s12057_s16 = smov %s12059_s18 }
 0x328   :  { %13 = sbr.rel (!%p11_p6) target bundleno = 2 (0x2), region = 75 }

</bundles_post_ra>
